<compile_context>
chip_gen: v5e
topology: v5e:2x2
jax: 0.10.0
libtpu: 0.0.40
codegen_flags: <defaults>
</compile_context>

<pallas_src>
import functools
import math

import jax
import jax.numpy as jnp
from jax import lax
from jax.experimental import pallas as pl
from jax.experimental.pallas import tpu as pltpu


_DEFAULT_ROW_TILE = 1024     # mem-bound row-tiled passes; _pick_row_tile caps to M


def _pick_row_tile(m, target):
    """Largest tile <= target that divides m and is a multiple of 8 (else full m)."""
    if m <= target:
        return m
    t = (min(target, m) // 8) * 8
    while t >= 8:
        if m % t == 0:
            return t
        t -= 8
    return m  # TODO(synk): cdiv grid + masked last tile for awkward M


def _nbytes(shape, dtype):
    return math.prod(shape) * jnp.dtype(dtype).itemsize


def _compiler_params(block_bytes, n_axes=1):
    """VMEM limit derived from double-buffered block bytes (fits v7x 64 MiB)."""
    need = 2 * int(block_bytes) + (4 << 20)
    limit = int(min(max(need, 32 << 20), 60 << 20))
    return pltpu.CompilerParams(
        dimension_semantics=("parallel",) * n_axes,
        vmem_limit_bytes=limit)


# ---------------------------------------------------------------------------
# Pallas kernels
# ---------------------------------------------------------------------------
def _matmul_stats_kernel(x_ref, w_ref, y_ref, stats_ref):
    """bf16 x bf16 -> f32 matmul (1x1 conv); store bf16; lane-dense BN partials."""
    c = w_ref.shape[1]
    y = jnp.dot(x_ref[...], w_ref[...], preferred_element_type=jnp.float32)
    y_ref[...] = y.astype(y_ref.dtype)
    stats_ref[0, :, 0:c] = jnp.sum(y, axis=0, keepdims=True)
    stats_ref[0, :, c:2 * c] = jnp.sum(y * y, axis=0, keepdims=True)


def _bn_relu_pad_kernel(y_ref, scale_ref, shift_ref, o_ref, *, h, w):
    """Fused BN1 (precomputed scale/shift) + ReLU + zero-pad -> padded bf16."""
    o_ref[...] = jnp.zeros_like(o_ref)
    v = y_ref[0].astype(jnp.float32) * scale_ref[...] + shift_ref[...]
    o_ref[0, 1:h + 1, 1:w + 1, :] = jnp.maximum(v, 0.0).astype(o_ref.dtype)


def _conv3x3_slab_stats_kernel(ph_ref, w_ref, y_ref, stats_ref, slab_ref, *,
                               stride, ho, wo):
    """Grouped 3x3 conv: build (ho*wo, 9C) slab in VMEM scratch from 9 shifted
    tap views of the stride-phase decomposition, then one K=9C MXU matmul."""
    c = y_ref.shape[-1]
    for t in range(9):                               # static unroll, 9 taps
        ky, kx = t // 3, t % 3
        q = (ky % stride) * stride + (kx % stride)   # phase index
        r0, c0 = ky // stride, kx // stride
        slab_ref[:, :, t * c:(t + 1) * c] = ph_ref[0, q,
                                                   r0:r0 + ho, c0:c0 + wo, :]
    y = jnp.dot(slab_ref[...].reshape(ho * wo, 9 * c), w_ref[...],
                preferred_element_type=jnp.float32)
    y_ref[0] = y.astype(y_ref.dtype)
    stats_ref[0, :, 0:c] = jnp.sum(y, axis=0, keepdims=True)
    stats_ref[0, :, c:2 * c] = jnp.sum(y * y, axis=0, keepdims=True)


def _norm_relu_matmul_stats_kernel(y_ref, scale_ref, shift_ref, w_ref,
                                   o_ref, stats_ref):
    """Fused: BN2-normalize (f32), ReLU, bf16 cast, conv3 (1x1) matmul, stats."""
    c = w_ref.shape[1]
    hact = jnp.maximum(
        y_ref[...].astype(jnp.float32) * scale_ref[...] + shift_ref[...], 0.0)
    y = jnp.dot(hact.astype(jnp.bfloat16), w_ref[...],
                preferred_element_type=jnp.float32)
    o_ref[...] = y.astype(o_ref.dtype)
    stats_ref[0, :, 0:c] = jnp.sum(y, axis=0, keepdims=True)
    stats_ref[0, :, c:2 * c] = jnp.sum(y * y, axis=0, keepdims=True)


def _final_fuse_identity_kernel(y_ref, scale_ref, shift_ref, res_ref, o_ref):
    """BN3 + identity residual add + ReLU (no shortcut-BN math)."""
    main = y_ref[...].astype(jnp.float32) * scale_ref[...] + shift_ref[...]
    o_ref[...] = jnp.maximum(main + res_ref[...], 0.0)


def _final_fuse_proj_kernel(y_ref, scale_ref, shift_ref, res_ref, rscale_ref,
                            rshift_ref, o_ref):
    """BN3 + shortcut-BN + residual add + ReLU."""
    main = y_ref[...].astype(jnp.float32) * scale_ref[...] + shift_ref[...]
    res = res_ref[...].astype(jnp.float32) * rscale_ref[...] + rshift_ref[...]
    o_ref[...] = jnp.maximum(main + res, 0.0)


# ---------------------------------------------------------------------------
# Pallas wrappers (tiled grids)
# ---------------------------------------------------------------------------
def matmul_stats(x_bf16, w_bf16, *, row_tile=_DEFAULT_ROW_TILE):
    m, k = x_bf16.shape
    c = w_bf16.shape[1]
    tm = _pick_row_tile(m, row_tile)
    gm = m // tm
    blk = (_nbytes((tm, k), jnp.bfloat16) + _nbytes((k, c), jnp.bfloat16)
           + _nbytes((tm, c), jnp.bfloat16)
           + _nbytes((1, 1, 2 * c), jnp.float32))
    return pl.pallas_call(
        _matmul_stats_kernel,
        out_shape=(jax.ShapeDtypeStruct((m, c), jnp.bfloat16),
                   jax.ShapeDtypeStruct((gm, 1, 2 * c), jnp.float32)),
        grid=(gm,),
        in_specs=[pl.BlockSpec((tm, k), lambda i: (i, 0)),
                  pl.BlockSpec((k, c), lambda i: (0, 0))],
        out_specs=(pl.BlockSpec((tm, c), lambda i: (i, 0)),
                   pl.BlockSpec((1, 1, 2 * c), lambda i: (i, 0, 0))),
        compiler_params=_compiler_params(blk),
        cost_estimate=pl.CostEstimate(
            flops=2 * m * k * c, transcendentals=0,
            bytes_accessed=2 * m * k + 2 * k * c + 2 * m * c),
    )(x_bf16, w_bf16)


def bn_relu_pad(y_nhwc, scale, shift, *, hp_tot, wp_tot):
    n, h, w, c = y_nhwc.shape
    blk = (_nbytes((1, h, w, c), y_nhwc.dtype)
           + 2 * _nbytes((1, c), jnp.float32)
           + _nbytes((1, hp_tot, wp_tot, c), jnp.bfloat16))
    return pl.pallas_call(
        functools.partial(_bn_relu_pad_kernel, h=h, w=w),
        out_shape=jax.ShapeDtypeStruct((n, hp_tot, wp_tot, c), jnp.bfloat16),
        grid=(n,),
        in_specs=[pl.BlockSpec((1, h, w, c), lambda i: (i, 0, 0, 0)),
                  pl.BlockSpec((1, c), lambda i: (0, 0)),
                  pl.BlockSpec((1, c), lambda i: (0, 0))],
        out_specs=pl.BlockSpec((1, hp_tot, wp_tot, c), lambda i: (i, 0, 0, 0)),
        compiler_params=_compiler_params(blk),
    )(y_nhwc, scale, shift)


def conv3x3_grouped_stats(phases, w_slab, *, stride, ho, wo):
    n, s2, hs, ws, c = phases.shape
    blk = (_nbytes((1, s2, hs, ws, c), phases.dtype)
           + _nbytes(w_slab.shape, w_slab.dtype)
           + _nbytes((1, ho * wo, c), jnp.bfloat16)
           + _nbytes((1, 1, 2 * c), jnp.float32)
           + _nbytes((ho, wo, 9 * c), jnp.bfloat16))
    y, stats = pl.pallas_call(
        functools.partial(_conv3x3_slab_stats_kernel,
                          stride=stride, ho=ho, wo=wo),
        out_shape=(jax.ShapeDtypeStruct((n, ho * wo, c), jnp.bfloat16),
                   jax.ShapeDtypeStruct((n, 1, 2 * c), jnp.float32)),
        grid=(n,),
        in_specs=[pl.BlockSpec((1, s2, hs, ws, c),
                               lambda i: (i, 0, 0, 0, 0)),
                  pl.BlockSpec(w_slab.shape, lambda i: (0, 0))],
        out_specs=(pl.BlockSpec((1, ho * wo, c), lambda i: (i, 0, 0)),
                   pl.BlockSpec((1, 1, 2 * c), lambda i: (i, 0, 0))),
        scratch_shapes=[pltpu.VMEM((ho, wo, 9 * c), jnp.bfloat16)],
        compiler_params=_compiler_params(blk),
        cost_estimate=pl.CostEstimate(
            flops=2 * n * ho * wo * 9 * c * c, transcendentals=0,
            bytes_accessed=int(phases.size) * 2 + int(w_slab.size) * 2
                           + n * ho * wo * c * 2),
    )(phases, w_slab)
    return y.reshape(n * ho * wo, c), stats


def norm_relu_matmul_stats(y2, scale, shift, w_bf16, *,
                           row_tile=_DEFAULT_ROW_TILE):
    m, k = y2.shape
    c = w_bf16.shape[1]
    tm = _pick_row_tile(m, row_tile)
    gm = m // tm
    blk = (_nbytes((tm, k), y2.dtype) + 2 * _nbytes((1, k), jnp.float32)
           + _nbytes((k, c), jnp.bfloat16) + _nbytes((tm, c), jnp.bfloat16)
           + _nbytes((1, 1, 2 * c), jnp.float32))
    return pl.pallas_call(
        _norm_relu_matmul_stats_kernel,
        out_shape=(jax.ShapeDtypeStruct((m, c), jnp.bfloat16),
                   jax.ShapeDtypeStruct((gm, 1, 2 * c), jnp.float32)),
        grid=(gm,),
        in_specs=[pl.BlockSpec((tm, k), lambda i: (i, 0)),
                  pl.BlockSpec((1, k), lambda i: (0, 0)),
                  pl.BlockSpec((1, k), lambda i: (0, 0)),
                  pl.BlockSpec((k, c), lambda i: (0, 0))],
        out_specs=(pl.BlockSpec((tm, c), lambda i: (i, 0)),
                   pl.BlockSpec((1, 1, 2 * c), lambda i: (i, 0, 0))),
        compiler_params=_compiler_params(blk),
        cost_estimate=pl.CostEstimate(
            flops=2 * m * k * c, transcendentals=0,
            bytes_accessed=2 * m * k + 2 * k * c + 2 * m * c),
    )(y2, scale, shift, w_bf16)


def final_fuse_identity(y3, scale, shift, residual, *,
                        row_tile=_DEFAULT_ROW_TILE):
    m, c = y3.shape
    tm = _pick_row_tile(m, row_tile)
    gm = m // tm
    blk = (_nbytes((tm, c), y3.dtype) + 2 * _nbytes((1, c), jnp.float32)
           + _nbytes((tm, c), jnp.float32) + _nbytes((tm, c), jnp.float32))
    return pl.pallas_call(
        _final_fuse_identity_kernel,
        out_shape=jax.ShapeDtypeStruct((m, c), jnp.float32),
        grid=(gm,),
        in_specs=[pl.BlockSpec((tm, c), lambda i: (i, 0)),
                  pl.BlockSpec((1, c), lambda i: (0, 0)),
                  pl.BlockSpec((1, c), lambda i: (0, 0)),
                  pl.BlockSpec((tm, c), lambda i: (i, 0))],
        out_specs=pl.BlockSpec((tm, c), lambda i: (i, 0)),
        compiler_params=_compiler_params(blk),
    )(y3, scale, shift, residual)


def final_fuse_proj(y3, scale, shift, res_raw, rscale, rshift, *,
                    row_tile=_DEFAULT_ROW_TILE):
    m, c = y3.shape
    tm = _pick_row_tile(m, row_tile)
    gm = m // tm
    blk = (_nbytes((tm, c), y3.dtype) + 4 * _nbytes((1, c), jnp.float32)
           + _nbytes((tm, c), res_raw.dtype) + _nbytes((tm, c), jnp.float32))
    return pl.pallas_call(
        _final_fuse_proj_kernel,
        out_shape=jax.ShapeDtypeStruct((m, c), jnp.float32),
        grid=(gm,),
        in_specs=[pl.BlockSpec((tm, c), lambda i: (i, 0)),
                  pl.BlockSpec((1, c), lambda i: (0, 0)),
                  pl.BlockSpec((1, c), lambda i: (0, 0)),
                  pl.BlockSpec((tm, c), lambda i: (i, 0)),
                  pl.BlockSpec((1, c), lambda i: (0, 0)),
                  pl.BlockSpec((1, c), lambda i: (0, 0))],
        out_specs=pl.BlockSpec((tm, c), lambda i: (i, 0)),
        compiler_params=_compiler_params(blk),
    )(y3, scale, shift, res_raw, rscale, rshift)


# ---------------------------------------------------------------------------
# Tiny XLA glue: combine per-tile BN partials -> per-channel scale/shift
# ---------------------------------------------------------------------------
def _bn_scale_shift(stats, gamma, beta, n_rows, eps):
    c = gamma.shape[0]
    total = jnp.sum(stats.reshape(-1, 2 * c), axis=0)     # (2C,)
    mean = total[:c] / n_rows
    var = jnp.maximum(total[c:] / n_rows - mean * mean, 0.0)   # one-pass, biased
    inv = lax.rsqrt(var + eps)
    scale = (gamma * inv).astype(jnp.float32)
    shift = (beta - mean * scale).astype(jnp.float32)
    return scale.reshape(1, c), shift.reshape(1, c)


# ---------------------------------------------------------------------------
# Parameter construction / hoisted weight-layout preparation
# ---------------------------------------------------------------------------
def conv1x1_weight_to_matmul(w):
    """[Cout, Cin, 1, 1] -> [Cin, Cout]."""
    return jnp.transpose(w.reshape(w.shape[0], w.shape[1]), (1, 0))


def grouped3x3_to_slab_matrix(w, groups):
    """[Cout, Cin/g, 3, 3] grouped weight -> [9*Cin, Cout] block-diagonal dense
    per-tap matrix, row index = tap*Cin + cin (tap = ky*3 + kx)."""
    cout, cpg, kh, kw = w.shape
    opg = cout // groups
    cin = cpg * groups
    taps = jnp.zeros((kh * kw, cin, cout), w.dtype)
    for g in range(groups):
        blk = w[g * opg:(g + 1) * opg]                       # [opg, cpg, 3, 3]
        blk = jnp.transpose(blk, (2, 3, 1, 0)).reshape(kh * kw, cpg, opg)
        taps = taps.at[:, g * cpg:(g + 1) * cpg,
                       g * opg:(g + 1) * opg].set(blk)
    return taps.reshape(kh * kw * cin, cout)


def prepare_params(params, groups):
    """Hoisted once per model (NOT per forward): layout conversion + bf16 cast."""
    prep = {
        "w1": conv1x1_weight_to_matmul(params["w1"]).astype(jnp.bfloat16),
        "w2_slab": grouped3x3_to_slab_matrix(params["w2"], groups).astype(jnp.bfloat16),
        "w3": conv1x1_weight_to_matmul(params["w3"]).astype(jnp.bfloat16),
        "g1": params["g1"], "b1": params["b1"],
        "g2": params["g2"], "b2": params["b2"],
        "g3": params["g3"], "b3": params["b3"],
    }
    if "w_sc" in params:
        prep["w_sc"] = conv1x1_weight_to_matmul(params["w_sc"]).astype(jnp.bfloat16)
        prep["g_sc"] = params["g_sc"]
        prep["b_sc"] = params["b_sc"]
    return prep


def make_params(key, in_channels, mid_channels, out_channels, groups):
    ks = jax.random.split(key, 12)
    scale = 0.1
    p = {
        "w1": jax.random.normal(ks[0], (mid_channels, in_channels, 1, 1), jnp.float32) * scale,
        "g1": 1.0 + 0.1 * jax.random.normal(ks[1], (mid_channels,), jnp.float32),
        "b1": 0.05 * jax.random.normal(ks[2], (mid_channels,), jnp.float32),
        "w2": jax.random.normal(ks[3], (mid_channels, mid_channels // groups, 3, 3), jnp.float32) * scale,
        "g2": 1.0 + 0.1 * jax.random.normal(ks[4], (mid_channels,), jnp.float32),
        "b2": 0.05 * jax.random.normal(ks[5], (mid_channels,), jnp.float32),
        "w3": jax.random.normal(ks[6], (out_channels, mid_channels, 1, 1), jnp.float32) * scale,
        "g3": 1.0 + 0.1 * jax.random.normal(ks[7], (out_channels,), jnp.float32),
        "b3": 0.05 * jax.random.normal(ks[8], (out_channels,), jnp.float32),
    }
    if in_channels != out_channels:
        p["w_sc"] = jax.random.normal(ks[9], (out_channels, in_channels, 1, 1), jnp.float32) * scale
        p["g_sc"] = 1.0 + 0.1 * jax.random.normal(ks[10], (out_channels,), jnp.float32)
        p["b_sc"] = 0.05 * jax.random.normal(ks[11], (out_channels,), jnp.float32)
    return p


# ---------------------------------------------------------------------------
# Bottleneck forward (Pallas hot path)
# ---------------------------------------------------------------------------
def bottleneck_forward(x_nchw, prep, *, in_channels, mid_channels,
                       out_channels, groups=32, stride=1, eps=1e-5,
                       row_tile=_DEFAULT_ROW_TILE):
    n, c, h, w = x_nchw.shape
    assert c == in_channels and mid_channels % groups == 0
    x = jnp.transpose(x_nchw, (0, 2, 3, 1)).astype(jnp.float32)   # NHWC, f32
    x_bf = x.astype(jnp.bfloat16)                                  # MXU operand, cast once
    ho = (h + 2 - 3) // stride + 1
    wo = (w + 2 - 3) // stride + 1
    m1 = n * h * w
    m2 = n * ho * wo

    # ---- conv1 (1x1): bf16 out + one-pass BN partials ----------------------
    y1_raw, st1 = matmul_stats(x_bf.reshape(m1, in_channels), prep["w1"],
                               row_tile=row_tile)
    sc1, sh1 = _bn_scale_shift(st1, prep["g1"], prep["b1"], m1, eps)

    # ---- fused BN1 + ReLU + zero-pad -> padded bf16 -------------------------
    hp_tot = -(-(h + 2) // stride) * stride
    wp_tot = -(-(w + 2) // stride) * stride
    xp = bn_relu_pad(y1_raw.reshape(n, h, w, mid_channels), sc1, sh1,
                     hp_tot=hp_tot, wp_tot=wp_tot)
    if stride == 1:
        phases = xp.reshape(n, 1, hp_tot, wp_tot, mid_channels)   # free reshape
    else:
        phases = jnp.transpose(
            xp.reshape(n, hp_tot // stride, stride, wp_tot // stride, stride,
                       mid_channels),
            (0, 2, 4, 1, 3, 5)).reshape(
            n, stride * stride, hp_tot // stride, wp_tot // stride,
            mid_channels)

    # ---- grouped 3x3 conv via K=9C slab matmul + partials -------------------
    y2_raw, st2 = conv3x3_grouped_stats(phases, prep["w2_slab"],
                                        stride=stride, ho=ho, wo=wo)
    sc2, sh2 = _bn_scale_shift(st2, prep["g2"], prep["b2"], m2, eps)

    # ---- BN2 + ReLU + conv3 (1x1) + partials (single fused pass) ------------
    y3_raw, st3 = norm_relu_matmul_stats(y2_raw, sc2, sh2, prep["w3"],
                                         row_tile=row_tile)
    sc3, sh3 = _bn_scale_shift(st3, prep["g3"], prep["b3"], m2, eps)

    # ---- shortcut + BN3 + residual add + ReLU (fused epilogue) --------------
    if in_channels == out_channels:
        # nn.Module uses an identity shortcut here; it only type-checks with
        # stride == 1 (same spatial dims on both branches).
        assert stride == 1, "identity shortcut requires stride == 1"
        residual = x.reshape(m2, out_channels)
        out2d = final_fuse_identity(y3_raw, sc3, sh3, residual,
                                    row_tile=row_tile)
    else:
        xs = x_bf[:, ::stride, ::stride, :].reshape(m2, in_channels)
        res_raw, st_sc = matmul_stats(xs, prep["w_sc"], row_tile=row_tile)
        rsc, rsh = _bn_scale_shift(st_sc, prep["g_sc"], prep["b_sc"], m2, eps)
        out2d = final_fuse_proj(y3_raw, sc3, sh3, res_raw, rsc, rsh,
                                row_tile=row_tile)

    out = out2d.reshape(n, ho, wo, out_channels)
    return jnp.transpose(out, (0, 3, 1, 2))                  # back to NCHW


# ---------------------------------------------------------------------------
# Pure-JAX reference (mirrors the PyTorch forward; f32 HIGHEST)
# ---------------------------------------------------------------------------
def ref_forward(x, params, *, in_channels, mid_channels, out_channels,
                groups, stride, eps=1e-5):
    def conv(x, w, s=1, p=0, g=1):
        return lax.conv_general_dilated(
            x, w, (s, s), ((p, p), (p, p)), feature_group_count=g,
            dimension_numbers=("NCHW", "OIHW", "NCHW"),
            precision=lax.Precision.HIGHEST)

    def bn(x, gamma, beta):
        mean = x.mean(axis=(0, 2, 3), keepdims=True)
        var = ((x - mean) ** 2).mean(axis=(0, 2, 3), keepdims=True)
        xn = (x - mean) * lax.rsqrt(var + eps)
        return xn * gamma.reshape(1, -1, 1, 1) + beta.reshape(1, -1, 1, 1)

    if in_channels == out_channels:
        residual = x
    else:
        residual = bn(conv(x, params["w_sc"], s=stride),
                      params["g_sc"], params["b_sc"])
    h = jnp.maximum(bn(conv(x, params["w1"]), params["g1"], params["b1"]), 0.0)
    h = jnp.maximum(bn(conv(h, params["w2"], s=stride, p=1, g=groups),
                       params["g2"], params["b2"]), 0.0)
    h = bn(conv(h, params["w3"]), params["g3"], params["b3"])
    return jnp.maximum(h + residual, 0.0)


# ---------------------------------------------------------------------------
if __name__ == "__main__":
    key = jax.random.PRNGKey(0)

    configs = [
        # (in, mid, out, groups, stride, N, H, W)
        (64, 64, 128, 32, 2, 2, 16, 16),    # projection shortcut, strided
        (128, 64, 128, 32, 1, 2, 16, 16),   # identity shortcut
    ]
    for cin, cmid, cout, groups, stride, n, h, w in configs:
        kx, kp, key = jax.random.split(key, 3)
        x = jax.random.normal(kx, (n, cin, h, w), jnp.float32)
        params = make_params(kp, cin, cmid, cout, groups)
        prep = prepare_params(params, groups)          # hoisted, not per-forward

        fwd = jax.jit(functools.partial(
            bottleneck_forward, in_channels=cin, mid_channels=cmid,
            out_channels=cout, groups=groups, stride=stride))
        out = jax.block_until_ready(fwd(x, prep))

        ref = jax.block_until_ready(
            ref_forward(x, params, in_channels=cin, mid_channels=cmid,
                        out_channels=cout, groups=groups, stride=stride))

        assert out.shape == ref.shape, (out.shape, ref.shape)
        max_err = float(jnp.max(jnp.abs(out - ref)))
        # bf16 MXU operands / bf16 intermediates vs the f32-HIGHEST reference.
        assert jnp.allclose(out, ref, rtol=3e-2, atol=3e-2), max_err

    print("KERNEL_OK")
</pallas_src>

<mosaic_0001>
module attributes {stable_mosaic.version = 11 : i64} {
  func.func @_bn_relu_pad_kernel(%arg0: i32, %arg1: memref<1x16x16x64xbf16, #tpu.memory_space<vmem>>, %arg2: memref<1x64xf32, #tpu.memory_space<vmem>>, %arg3: memref<1x64xf32, #tpu.memory_space<vmem>>, %arg4: memref<1x18x18x64xbf16, #tpu.memory_space<vmem>>) attributes {dimension_semantics = [#tpu.dimension_semantics<parallel>], iteration_bounds = array<i64: 2>, scalar_prefetch = 0 : i64, scratch_operands = 0 : i64, tpu.core_type = #tpu.core_type<tc>, window_params = [{transform_indices = @transform_0, window_bounds = array<i64: 1, 16, 16, 64>}, {pipeline_mode = #tpu.pipeline_mode<synchronous>, transform_indices = @transform_1, window_bounds = array<i64: 1, 64>}, {pipeline_mode = #tpu.pipeline_mode<synchronous>, transform_indices = @transform_2, window_bounds = array<i64: 1, 64>}, {transform_indices = @transform_3, window_bounds = array<i64: 1, 18, 18, 64>}]} {
    %cst = arith.constant 0.000000e+00 : bf16
    %0 = vector.broadcast %cst : bf16 to vector<1x18x18x64xbf16>
    %c0 = arith.constant 0 : index
    %c0_0 = arith.constant 0 : index
    %c0_1 = arith.constant 0 : index
    %c0_2 = arith.constant 0 : index
    %1 = vector.load %arg4[%c0, %c0_0, %c0_1, %c0_2] : memref<1x18x18x64xbf16, #tpu.memory_space<vmem>>, vector<1x18x18x64xbf16>
    tpu.vector_store %arg4[%c0, %c0_0, %c0_1, %c0_2], %0 {strides = array<i32>} : memref<1x18x18x64xbf16, #tpu.memory_space<vmem>>, vector<1x18x18x64xbf16>,
    %c0_3 = arith.constant 0 : index
    %c0_4 = arith.constant 0 : index
    %c0_5 = arith.constant 0 : index
    %c0_6 = arith.constant 0 : index
    %2 = vector.load %arg1[%c0_3, %c0_4, %c0_5, %c0_6] : memref<1x16x16x64xbf16, #tpu.memory_space<vmem>>, vector<1x16x16x64xbf16>
    %3 = vector.shape_cast %2 : vector<1x16x16x64xbf16> to vector<16x16x64xbf16>
    %4 = arith.extf %3 : vector<16x16x64xbf16> to vector<16x16x64xf32>
    %c0_7 = arith.constant 0 : index
    %c0_8 = arith.constant 0 : index
    %5 = vector.load %arg2[%c0_7, %c0_8] : memref<1x64xf32, #tpu.memory_space<vmem>>, vector<1x64xf32>
    %6 = vector.shape_cast %5 : vector<1x64xf32> to vector<1x1x64xf32>
    %7 = vector.broadcast %6 : vector<1x1x64xf32> to vector<16x16x64xf32>
    %8 = arith.mulf %4, %7 : vector<16x16x64xf32>
    %c0_9 = arith.constant 0 : index
    %c0_10 = arith.constant 0 : index
    %9 = vector.load %arg3[%c0_9, %c0_10] : memref<1x64xf32, #tpu.memory_space<vmem>>, vector<1x64xf32>
    %10 = vector.shape_cast %9 : vector<1x64xf32> to vector<1x1x64xf32>
    %11 = vector.broadcast %10 : vector<1x1x64xf32> to vector<16x16x64xf32>
    %12 = arith.addf %8, %11 : vector<16x16x64xf32>
    %cst_11 = arith.constant 0.000000e+00 : f32
    %13 = vector.broadcast %cst_11 : f32 to vector<16x16x64xf32>
    %14 = arith.maximumf %12, %13 : vector<16x16x64xf32>
    %15 = arith.truncf %14 : vector<16x16x64xf32> to vector<16x16x64xbf16>
    %c0_12 = arith.constant 0 : index
    %c1 = arith.constant 1 : index
    %c1_13 = arith.constant 1 : index
    %c0_14 = arith.constant 0 : index
    %16 = vector.load %arg4[%c0_12, %c1, %c1_13, %c0_14] : memref<1x18x18x64xbf16, #tpu.memory_space<vmem>>, vector<1x16x16x64xbf16>
    %17 = vector.shape_cast %16 : vector<1x16x16x64xbf16> to vector<16x16x64xbf16>
    %18 = vector.shape_cast %15 : vector<16x16x64xbf16> to vector<1x16x16x64xbf16>
    tpu.vector_store %arg4[%c0_12, %c1, %c1_13, %c0_14], %18 {strides = array<i32>} : memref<1x18x18x64xbf16, #tpu.memory_space<vmem>>, vector<1x16x16x64xbf16>,
    return
  }
  func.func @transform_0(%arg0: i32) -> (i32, i32, i32, i32) {
    %c0_i32 = arith.constant 0 : i32
    %c0_i32_0 = arith.constant 0 : i32
    %c0_i32_1 = arith.constant 0 : i32
    %c0_i32_2 = arith.constant 0 : i32
    return %arg0, %c0_i32, %c0_i32_0, %c0_i32_1 : i32, i32, i32, i32
  }
  func.func @transform_1(%arg0: i32) -> (i32, i32) {
    %c0_i32 = arith.constant 0 : i32
    %c0_i32_0 = arith.constant 0 : i32
    %c0_i32_1 = arith.constant 0 : i32
    return %c0_i32, %c0_i32_0 : i32, i32
  }
  func.func @transform_2(%arg0: i32) -> (i32, i32) {
    %c0_i32 = arith.constant 0 : i32
    %c0_i32_0 = arith.constant 0 : i32
    %c0_i32_1 = arith.constant 0 : i32
    return %c0_i32, %c0_i32_0 : i32, i32
  }
  func.func @transform_3(%arg0: i32) -> (i32, i32, i32, i32) {
    %c0_i32 = arith.constant 0 : i32
    %c0_i32_0 = arith.constant 0 : i32
    %c0_i32_1 = arith.constant 0 : i32
    %c0_i32_2 = arith.constant 0 : i32
    return %arg0, %c0_i32, %c0_i32_0, %c0_i32_1 : i32, i32, i32, i32
  }
}

module attributes {stable_mosaic.version = 11 : i64} {
  func.func @_matmul_stats_kernel(%arg0: i32, %arg1: memref<512x64xbf16, #tpu.memory_space<vmem>>, %arg2: memref<64x64xbf16, #tpu.memory_space<vmem>>, %arg3: memref<512x64xbf16, #tpu.memory_space<vmem>>, %arg4: memref<1x1x128xf32, #tpu.memory_space<vmem>>) attributes {dimension_semantics = [#tpu.dimension_semantics<parallel>], iteration_bounds = array<i64: 1>, scalar_prefetch = 0 : i64, scratch_operands = 0 : i64, tpu.core_type = #tpu.core_type<tc>, window_params = [{transform_indices = @transform_0, window_bounds = array<i64: 512, 64>}, {pipeline_mode = #tpu.pipeline_mode<synchronous>, transform_indices = @transform_1, window_bounds = array<i64: 64, 64>}, {transform_indices = @transform_2, window_bounds = array<i64: 512, 64>}, {transform_indices = @transform_3, window_bounds = array<i64: 1, 1, 128>}]} {
    %c0 = arith.constant 0 : index
    %c0_0 = arith.constant 0 : index
    %0 = vector.load %arg1[%c0, %c0_0] : memref<512x64xbf16, #tpu.memory_space<vmem>>, vector<512x64xbf16>
    %c0_1 = arith.constant 0 : index
    %c0_2 = arith.constant 0 : index
    %1 = vector.load %arg2[%c0_1, %c0_2] : memref<64x64xbf16, #tpu.memory_space<vmem>>, vector<64x64xbf16>
    %cst = arith.constant dense<0.000000e+00> : vector<512x64xf32>
    %2 = tpu.matmul %0, %1, %cst {dimension_numbers = #tpu.dot_dimension_numbers<[1], [0], [0], [1], [0, 0, 1, 1], [], []>} : vector<512x64xbf16>, vector<64x64xbf16>, vector<512x64xf32> -> vector<512x64xf32>
    %3 = arith.truncf %2 : vector<512x64xf32> to vector<512x64xbf16>
    %c0_3 = arith.constant 0 : index
    %c0_4 = arith.constant 0 : index
    %4 = vector.load %arg3[%c0_3, %c0_4] : memref<512x64xbf16, #tpu.memory_space<vmem>>, vector<512x64xbf16>
    tpu.vector_store %arg3[%c0_3, %c0_4], %3 {strides = array<i32>} : memref<512x64xbf16, #tpu.memory_space<vmem>>, vector<512x64xbf16>,
    %cst_5 = arith.constant dense<0.000000e+00> : vector<64xf32>
    %5 = vector.multi_reduction <add>, %2, %cst_5 [0] : vector<512x64xf32> to vector<64xf32>
    %6 = vector.shape_cast %5 : vector<64xf32> to vector<1x64xf32>
    %c0_6 = arith.constant 0 : index
    %c0_7 = arith.constant 0 : index
    %c0_8 = arith.constant 0 : index
    %7 = vector.load %arg4[%c0_6, %c0_7, %c0_8] : memref<1x1x128xf32, #tpu.memory_space<vmem>>, vector<1x1x64xf32>
    %8 = vector.shape_cast %7 : vector<1x1x64xf32> to vector<1x64xf32>
    %9 = vector.shape_cast %6 : vector<1x64xf32> to vector<1x1x64xf32>
    tpu.vector_store %arg4[%c0_6, %c0_7, %c0_8], %9 {strides = array<i32>} : memref<1x1x128xf32, #tpu.memory_space<vmem>>, vector<1x1x64xf32>,
    %10 = arith.mulf %2, %2 : vector<512x64xf32>
    %cst_9 = arith.constant dense<0.000000e+00> : vector<64xf32>
    %11 = vector.multi_reduction <add>, %10, %cst_9 [0] : vector<512x64xf32> to vector<64xf32>
    %12 = vector.shape_cast %11 : vector<64xf32> to vector<1x64xf32>
    %c0_10 = arith.constant 0 : index
    %c0_11 = arith.constant 0 : index
    %c64 = arith.constant 64 : index
    %13 = vector.load %arg4[%c0_10, %c0_11, %c64] : memref<1x1x128xf32, #tpu.memory_space<vmem>>, vector<1x1x64xf32>
    %14 = vector.shape_cast %13 : vector<1x1x64xf32> to vector<1x64xf32>
    %15 = vector.shape_cast %12 : vector<1x64xf32> to vector<1x1x64xf32>
    tpu.vector_store %arg4[%c0_10, %c0_11, %c64], %15 {strides = array<i32>} : memref<1x1x128xf32, #tpu.memory_space<vmem>>, vector<1x1x64xf32>,
    return
  }
  func.func @transform_0(%arg0: i32) -> (i32, i32) {
    %c0_i32 = arith.constant 0 : i32
    %c0_i32_0 = arith.constant 0 : i32
    return %arg0, %c0_i32 : i32, i32
  }
  func.func @transform_1(%arg0: i32) -> (i32, i32) {
    %c0_i32 = arith.constant 0 : i32
    %c0_i32_0 = arith.constant 0 : i32
    %c0_i32_1 = arith.constant 0 : i32
    return %c0_i32, %c0_i32_0 : i32, i32
  }
  func.func @transform_2(%arg0: i32) -> (i32, i32) {
    %c0_i32 = arith.constant 0 : i32
    %c0_i32_0 = arith.constant 0 : i32
    return %arg0, %c0_i32 : i32, i32
  }
  func.func @transform_3(%arg0: i32) -> (i32, i32, i32) {
    %c0_i32 = arith.constant 0 : i32
    %c0_i32_0 = arith.constant 0 : i32
    %c0_i32_1 = arith.constant 0 : i32
    return %arg0, %c0_i32, %c0_i32_0 : i32, i32, i32
  }
}

module attributes {stable_mosaic.version = 11 : i64} {
  func.func @_conv3x3_slab_stats_kernel(%arg0: i32, %arg1: memref<1x4x9x9x64xbf16, #tpu.memory_space<vmem>>, %arg2: memref<576x64xbf16, #tpu.memory_space<vmem>>, %arg3: memref<1x64x64xbf16, #tpu.memory_space<vmem>>, %arg4: memref<1x1x128xf32, #tpu.memory_space<vmem>>, %arg5: memref<8x8x576xbf16, #tpu.memory_space<vmem>>) attributes {dimension_semantics = [#tpu.dimension_semantics<parallel>], iteration_bounds = array<i64: 2>, scalar_prefetch = 0 : i64, scratch_operands = 1 : i64, tpu.core_type = #tpu.core_type<tc>, window_params = [{transform_indices = @transform_0, window_bounds = array<i64: 1, 4, 9, 9, 64>}, {pipeline_mode = #tpu.pipeline_mode<synchronous>, transform_indices = @transform_1, window_bounds = array<i64: 576, 64>}, {transform_indices = @transform_2, window_bounds = array<i64: 1, 64, 64>}, {transform_indices = @transform_3, window_bounds = array<i64: 1, 1, 128>}]} {
    %c0 = arith.constant 0 : index
    %c0_0 = arith.constant 0 : index
    %c0_1 = arith.constant 0 : index
    %c0_2 = arith.constant 0 : index
    %c0_3 = arith.constant 0 : index
    %0 = vector.load %arg1[%c0, %c0_0, %c0_1, %c0_2, %c0_3] : memref<1x4x9x9x64xbf16, #tpu.memory_space<vmem>>, vector<1x1x8x8x64xbf16>
    %1 = vector.shape_cast %0 : vector<1x1x8x8x64xbf16> to vector<8x8x64xbf16>
    %c0_4 = arith.constant 0 : index
    %c0_5 = arith.constant 0 : index
    %c0_6 = arith.constant 0 : index
    %2 = vector.load %arg5[%c0_4, %c0_5, %c0_6] : memref<8x8x576xbf16, #tpu.memory_space<vmem>>, vector<8x8x64xbf16>
    tpu.vector_store %arg5[%c0_4, %c0_5, %c0_6], %1 {strides = array<i32>} : memref<8x8x576xbf16, #tpu.memory_space<vmem>>, vector<8x8x64xbf16>,
    %c0_7 = arith.constant 0 : index
    %c1 = arith.constant 1 : index
    %c0_8 = arith.constant 0 : index
    %c0_9 = arith.constant 0 : index
    %c0_10 = arith.constant 0 : index
    %3 = vector.load %arg1[%c0_7, %c1, %c0_8, %c0_9, %c0_10] : memref<1x4x9x9x64xbf16, #tpu.memory_space<vmem>>, vector<1x1x8x8x64xbf16>
    %4 = vector.shape_cast %3 : vector<1x1x8x8x64xbf16> to vector<8x8x64xbf16>
    %c0_11 = arith.constant 0 : index
    %c0_12 = arith.constant 0 : index
    %c64 = arith.constant 64 : index
    %5 = vector.load %arg5[%c0_11, %c0_12, %c64] : memref<8x8x576xbf16, #tpu.memory_space<vmem>>, vector<8x8x64xbf16>
    tpu.vector_store %arg5[%c0_11, %c0_12, %c64], %4 {strides = array<i32>} : memref<8x8x576xbf16, #tpu.memory_space<vmem>>, vector<8x8x64xbf16>,
    %c0_13 = arith.constant 0 : index
    %c0_14 = arith.constant 0 : index
    %c0_15 = arith.constant 0 : index
    %c1_16 = arith.constant 1 : index
    %c0_17 = arith.constant 0 : index
    %6 = vector.load %arg1[%c0_13, %c0_14, %c0_15, %c1_16, %c0_17] : memref<1x4x9x9x64xbf16, #tpu.memory_space<vmem>>, vector<1x1x8x8x64xbf16>
    %7 = vector.shape_cast %6 : vector<1x1x8x8x64xbf16> to vector<8x8x64xbf16>
    %c0_18 = arith.constant 0 : index
    %c0_19 = arith.constant 0 : index
    %c128 = arith.constant 128 : index
    %8 = vector.load %arg5[%c0_18, %c0_19, %c128] : memref<8x8x576xbf16, #tpu.memory_space<vmem>>, vector<8x8x64xbf16>
    tpu.vector_store %arg5[%c0_18, %c0_19, %c128], %7 {strides = array<i32>} : memref<8x8x576xbf16, #tpu.memory_space<vmem>>, vector<8x8x64xbf16>,
    %c0_20 = arith.constant 0 : index
    %c2 = arith.constant 2 : index
    %c0_21 = arith.constant 0 : index
    %c0_22 = arith.constant 0 : index
    %c0_23 = arith.constant 0 : index
    %9 = vector.load %arg1[%c0_20, %c2, %c0_21, %c0_22, %c0_23] : memref<1x4x9x9x64xbf16, #tpu.memory_space<vmem>>, vector<1x1x8x8x64xbf16>
    %10 = vector.shape_cast %9 : vector<1x1x8x8x64xbf16> to vector<8x8x64xbf16>
    %c0_24 = arith.constant 0 : index
    %c0_25 = arith.constant 0 : index
    %c192 = arith.constant 192 : index
    %11 = vector.load %arg5[%c0_24, %c0_25, %c192] : memref<8x8x576xbf16, #tpu.memory_space<vmem>>, vector<8x8x64xbf16>
    tpu.vector_store %arg5[%c0_24, %c0_25, %c192], %10 {strides = array<i32>} : memref<8x8x576xbf16, #tpu.memory_space<vmem>>, vector<8x8x64xbf16>,
    %c0_26 = arith.constant 0 : index
    %c3 = arith.constant 3 : index
    %c0_27 = arith.constant 0 : index
    %c0_28 = arith.constant 0 : index
    %c0_29 = arith.constant 0 : index
    %12 = vector.load %arg1[%c0_26, %c3, %c0_27, %c0_28, %c0_29] : memref<1x4x9x9x64xbf16, #tpu.memory_space<vmem>>, vector<1x1x8x8x64xbf16>
    %13 = vector.shape_cast %12 : vector<1x1x8x8x64xbf16> to vector<8x8x64xbf16>
    %c0_30 = arith.constant 0 : index
    %c0_31 = arith.constant 0 : index
    %c256 = arith.constant 256 : index
    %14 = vector.load %arg5[%c0_30, %c0_31, %c256] : memref<8x8x576xbf16, #tpu.memory_space<vmem>>, vector<8x8x64xbf16>
    tpu.vector_store %arg5[%c0_30, %c0_31, %c256], %13 {strides = array<i32>} : memref<8x8x576xbf16, #tpu.memory_space<vmem>>, vector<8x8x64xbf16>,
    %c0_32 = arith.constant 0 : index
    %c2_33 = arith.constant 2 : index
    %c0_34 = arith.constant 0 : index
    %c1_35 = arith.constant 1 : index
    %c0_36 = arith.constant 0 : index
    %15 = vector.load %arg1[%c0_32, %c2_33, %c0_34, %c1_35, %c0_36] : memref<1x4x9x9x64xbf16, #tpu.memory_space<vmem>>, vector<1x1x8x8x64xbf16>
    %16 = vector.shape_cast %15 : vector<1x1x8x8x64xbf16> to vector<8x8x64xbf16>
    %c0_37 = arith.constant 0 : index
    %c0_38 = arith.constant 0 : index
    %c320 = arith.constant 320 : index
    %17 = vector.load %arg5[%c0_37, %c0_38, %c320] : memref<8x8x576xbf16, #tpu.memory_space<vmem>>, vector<8x8x64xbf16>
    tpu.vector_store %arg5[%c0_37, %c0_38, %c320], %16 {strides = array<i32>} : memref<8x8x576xbf16, #tpu.memory_space<vmem>>, vector<8x8x64xbf16>,
    %c0_39 = arith.constant 0 : index
    %c0_40 = arith.constant 0 : index
    %c1_41 = arith.constant 1 : index
    %c0_42 = arith.constant 0 : index
    %c0_43 = arith.constant 0 : index
    %18 = vector.load %arg1[%c0_39, %c0_40, %c1_41, %c0_42, %c0_43] : memref<1x4x9x9x64xbf16, #tpu.memory_space<vmem>>, vector<1x1x8x8x64xbf16>
    %19 = vector.shape_cast %18 : vector<1x1x8x8x64xbf16> to vector<8x8x64xbf16>
    %c0_44 = arith.constant 0 : index
    %c0_45 = arith.constant 0 : index
    %c384 = arith.constant 384 : index
    %20 = vector.load %arg5[%c0_44, %c0_45, %c384] : memref<8x8x576xbf16, #tpu.memory_space<vmem>>, vector<8x8x64xbf16>
    tpu.vector_store %arg5[%c0_44, %c0_45, %c384], %19 {strides = array<i32>} : memref<8x8x576xbf16, #tpu.memory_space<vmem>>, vector<8x8x64xbf16>,
    %c0_46 = arith.constant 0 : index
    %c1_47 = arith.constant 1 : index
    %c1_48 = arith.constant 1 : index
    %c0_49 = arith.constant 0 : index
    %c0_50 = arith.constant 0 : index
    %21 = vector.load %arg1[%c0_46, %c1_47, %c1_48, %c0_49, %c0_50] : memref<1x4x9x9x64xbf16, #tpu.memory_space<vmem>>, vector<1x1x8x8x64xbf16>
    %22 = vector.shape_cast %21 : vector<1x1x8x8x64xbf16> to vector<8x8x64xbf16>
    %c0_51 = arith.constant 0 : index
    %c0_52 = arith.constant 0 : index
    %c448 = arith.constant 448 : index
    %23 = vector.load %arg5[%c0_51, %c0_52, %c448] : memref<8x8x576xbf16, #tpu.memory_space<vmem>>, vector<8x8x64xbf16>
    tpu.vector_store %arg5[%c0_51, %c0_52, %c448], %22 {strides = array<i32>} : memref<8x8x576xbf16, #tpu.memory_space<vmem>>, vector<8x8x64xbf16>,
    %c0_53 = arith.constant 0 : index
    %c0_54 = arith.constant 0 : index
    %c1_55 = arith.constant 1 : index
    %c1_56 = arith.constant 1 : index
    %c0_57 = arith.constant 0 : index
    %24 = vector.load %arg1[%c0_53, %c0_54, %c1_55, %c1_56, %c0_57] : memref<1x4x9x9x64xbf16, #tpu.memory_space<vmem>>, vector<1x1x8x8x64xbf16>
    %25 = vector.shape_cast %24 : vector<1x1x8x8x64xbf16> to vector<8x8x64xbf16>
    %c0_58 = arith.constant 0 : index
    %c0_59 = arith.constant 0 : index
    %c512 = arith.constant 512 : index
    %26 = vector.load %arg5[%c0_58, %c0_59, %c512] : memref<8x8x576xbf16, #tpu.memory_space<vmem>>, vector<8x8x64xbf16>
    tpu.vector_store %arg5[%c0_58, %c0_59, %c512], %25 {strides = array<i32>} : memref<8x8x576xbf16, #tpu.memory_space<vmem>>, vector<8x8x64xbf16>,
    %c0_60 = arith.constant 0 : index
    %c0_61 = arith.constant 0 : index
    %c0_62 = arith.constant 0 : index
    %27 = vector.load %arg5[%c0_60, %c0_61, %c0_62] : memref<8x8x576xbf16, #tpu.memory_space<vmem>>, vector<8x8x576xbf16>
    %28 = vector.shape_cast %27 : vector<8x8x576xbf16> to vector<64x576xbf16>
    %c0_63 = arith.constant 0 : index
    %c0_64 = arith.constant 0 : index
    %29 = vector.load %arg2[%c0_63, %c0_64] : memref<576x64xbf16, #tpu.memory_space<vmem>>, vector<576x64xbf16>
    %cst = arith.constant dense<0.000000e+00> : vector<64x64xf32>
    %30 = tpu.matmul %28, %29, %cst {dimension_numbers = #tpu.dot_dimension_numbers<[1], [0], [0], [1], [0, 0, 1, 1], [], []>} : vector<64x576xbf16>, vector<576x64xbf16>, vector<64x64xf32> -> vector<64x64xf32>
    %31 = arith.truncf %30 : vector<64x64xf32> to vector<64x64xbf16>
    %c0_65 = arith.constant 0 : index
    %c0_66 = arith.constant 0 : index
    %c0_67 = arith.constant 0 : index
    %32 = vector.load %arg3[%c0_65, %c0_66, %c0_67] : memref<1x64x64xbf16, #tpu.memory_space<vmem>>, vector<1x64x64xbf16>
    %33 = vector.shape_cast %32 : vector<1x64x64xbf16> to vector<64x64xbf16>
    %34 = vector.shape_cast %31 : vector<64x64xbf16> to vector<1x64x64xbf16>
    tpu.vector_store %arg3[%c0_65, %c0_66, %c0_67], %34 {strides = array<i32>} : memref<1x64x64xbf16, #tpu.memory_space<vmem>>, vector<1x64x64xbf16>,
    %cst_68 = arith.constant dense<0.000000e+00> : vector<64xf32>
    %35 = vector.multi_reduction <add>, %30, %cst_68 [0] : vector<64x64xf32> to vector<64xf32>
    %36 = vector.shape_cast %35 : vector<64xf32> to vector<1x64xf32>
    %c0_69 = arith.constant 0 : index
    %c0_70 = arith.constant 0 : index
    %c0_71 = arith.constant 0 : index
    %37 = vector.load %arg4[%c0_69, %c0_70, %c0_71] : memref<1x1x128xf32, #tpu.memory_space<vmem>>, vector<1x1x64xf32>
    %38 = vector.shape_cast %37 : vector<1x1x64xf32> to vector<1x64xf32>
    %39 = vector.shape_cast %36 : vector<1x64xf32> to vector<1x1x64xf32>
    tpu.vector_store %arg4[%c0_69, %c0_70, %c0_71], %39 {strides = array<i32>} : memref<1x1x128xf32, #tpu.memory_space<vmem>>, vector<1x1x64xf32>,
    %40 = arith.mulf %30, %30 : vector<64x64xf32>
    %cst_72 = arith.constant dense<0.000000e+00> : vector<64xf32>
    %41 = vector.multi_reduction <add>, %40, %cst_72 [0] : vector<64x64xf32> to vector<64xf32>
    %42 = vector.shape_cast %41 : vector<64xf32> to vector<1x64xf32>
    %c0_73 = arith.constant 0 : index
    %c0_74 = arith.constant 0 : index
    %c64_75 = arith.constant 64 : index
    %43 = vector.load %arg4[%c0_73, %c0_74, %c64_75] : memref<1x1x128xf32, #tpu.memory_space<vmem>>, vector<1x1x64xf32>
    %44 = vector.shape_cast %43 : vector<1x1x64xf32> to vector<1x64xf32>
    %45 = vector.shape_cast %42 : vector<1x64xf32> to vector<1x1x64xf32>
    tpu.vector_store %arg4[%c0_73, %c0_74, %c64_75], %45 {strides = array<i32>} : memref<1x1x128xf32, #tpu.memory_space<vmem>>, vector<1x1x64xf32>,
    return
  }
  func.func @transform_0(%arg0: i32) -> (i32, i32, i32, i32, i32) {
    %c0_i32 = arith.constant 0 : i32
    %c0_i32_0 = arith.constant 0 : i32
    %c0_i32_1 = arith.constant 0 : i32
    %c0_i32_2 = arith.constant 0 : i32
    %c0_i32_3 = arith.constant 0 : i32
    return %arg0, %c0_i32, %c0_i32_0, %c0_i32_1, %c0_i32_2 : i32, i32, i32, i32, i32
  }
  func.func @transform_1(%arg0: i32) -> (i32, i32) {
    %c0_i32 = arith.constant 0 : i32
    %c0_i32_0 = arith.constant 0 : i32
    %c0_i32_1 = arith.constant 0 : i32
    return %c0_i32, %c0_i32_0 : i32, i32
  }
  func.func @transform_2(%arg0: i32) -> (i32, i32, i32) {
    %c0_i32 = arith.constant 0 : i32
    %c0_i32_0 = arith.constant 0 : i32
    %c0_i32_1 = arith.constant 0 : i32
    return %arg0, %c0_i32, %c0_i32_0 : i32, i32, i32
  }
  func.func @transform_3(%arg0: i32) -> (i32, i32, i32) {
    %c0_i32 = arith.constant 0 : i32
    %c0_i32_0 = arith.constant 0 : i32
    %c0_i32_1 = arith.constant 0 : i32
    return %arg0, %c0_i32, %c0_i32_0 : i32, i32, i32
  }
}

module attributes {stable_mosaic.version = 11 : i64} {
  func.func @_norm_relu_matmul_stats_kernel(%arg0: i32, %arg1: memref<128x64xbf16, #tpu.memory_space<vmem>>, %arg2: memref<1x64xf32, #tpu.memory_space<vmem>>, %arg3: memref<1x64xf32, #tpu.memory_space<vmem>>, %arg4: memref<64x128xbf16, #tpu.memory_space<vmem>>, %arg5: memref<128x128xbf16, #tpu.memory_space<vmem>>, %arg6: memref<1x1x256xf32, #tpu.memory_space<vmem>>) attributes {dimension_semantics = [#tpu.dimension_semantics<parallel>], iteration_bounds = array<i64: 1>, scalar_prefetch = 0 : i64, scratch_operands = 0 : i64, tpu.core_type = #tpu.core_type<tc>, window_params = [{transform_indices = @transform_0, window_bounds = array<i64: 128, 64>}, {pipeline_mode = #tpu.pipeline_mode<synchronous>, transform_indices = @transform_1, window_bounds = array<i64: 1, 64>}, {pipeline_mode = #tpu.pipeline_mode<synchronous>, transform_indices = @transform_2, window_bounds = array<i64: 1, 64>}, {pipeline_mode = #tpu.pipeline_mode<synchronous>, transform_indices = @transform_3, window_bounds = array<i64: 64, 128>}, {transform_indices = @transform_4, window_bounds = array<i64: 128, 128>}, {transform_indices = @transform_5, window_bounds = array<i64: 1, 1, 256>}]} {
    %c0 = arith.constant 0 : index
    %c0_0 = arith.constant 0 : index
    %0 = vector.load %arg1[%c0, %c0_0] : memref<128x64xbf16, #tpu.memory_space<vmem>>, vector<128x64xbf16>
    %1 = arith.extf %0 : vector<128x64xbf16> to vector<128x64xf32>
    %c0_1 = arith.constant 0 : index
    %c0_2 = arith.constant 0 : index
    %2 = vector.load %arg2[%c0_1, %c0_2] : memref<1x64xf32, #tpu.memory_space<vmem>>, vector<1x64xf32>
    %3 = vector.broadcast %2 : vector<1x64xf32> to vector<128x64xf32>
    %4 = arith.mulf %1, %3 : vector<128x64xf32>
    %c0_3 = arith.constant 0 : index
    %c0_4 = arith.constant 0 : index
    %5 = vector.load %arg3[%c0_3, %c0_4] : memref<1x64xf32, #tpu.memory_space<vmem>>, vector<1x64xf32>
    %6 = vector.broadcast %5 : vector<1x64xf32> to vector<128x64xf32>
    %7 = arith.addf %4, %6 : vector<128x64xf32>
    %cst = arith.constant 0.000000e+00 : f32
    %8 = vector.broadcast %cst : f32 to vector<128x64xf32>
    %9 = arith.maximumf %7, %8 : vector<128x64xf32>
    %10 = arith.truncf %9 : vector<128x64xf32> to vector<128x64xbf16>
    %c0_5 = arith.constant 0 : index
    %c0_6 = arith.constant 0 : index
    %11 = vector.load %arg4[%c0_5, %c0_6] : memref<64x128xbf16, #tpu.memory_space<vmem>>, vector<64x128xbf16>
    %cst_7 = arith.constant dense<0.000000e+00> : vector<128x128xf32>
    %12 = tpu.matmul %10, %11, %cst_7 {dimension_numbers = #tpu.dot_dimension_numbers<[1], [0], [0], [1], [0, 0, 1, 1], [], []>} : vector<128x64xbf16>, vector<64x128xbf16>, vector<128x128xf32> -> vector<128x128xf32>
    %13 = arith.truncf %12 : vector<128x128xf32> to vector<128x128xbf16>
    %c0_8 = arith.constant 0 : index
    %c0_9 = arith.constant 0 : index
    %14 = vector.load %arg5[%c0_8, %c0_9] : memref<128x128xbf16, #tpu.memory_space<vmem>>, vector<128x128xbf16>
    tpu.vector_store %arg5[%c0_8, %c0_9], %13 {strides = array<i32>} : memref<128x128xbf16, #tpu.memory_space<vmem>>, vector<128x128xbf16>,
    %cst_10 = arith.constant dense<0.000000e+00> : vector<128xf32>
    %15 = vector.multi_reduction <add>, %12, %cst_10 [0] : vector<128x128xf32> to vector<128xf32>
    %16 = vector.shape_cast %15 : vector<128xf32> to vector<1x128xf32>
    %c0_11 = arith.constant 0 : index
    %c0_12 = arith.constant 0 : index
    %c0_13 = arith.constant 0 : index
    %17 = vector.load %arg6[%c0_11, %c0_12, %c0_13] : memref<1x1x256xf32, #tpu.memory_space<vmem>>, vector<1x1x128xf32>
    %18 = vector.shape_cast %17 : vector<1x1x128xf32> to vector<1x128xf32>
    %19 = vector.shape_cast %16 : vector<1x128xf32> to vector<1x1x128xf32>
    tpu.vector_store %arg6[%c0_11, %c0_12, %c0_13], %19 {strides = array<i32>} : memref<1x1x256xf32, #tpu.memory_space<vmem>>, vector<1x1x128xf32>,
    %20 = arith.mulf %12, %12 : vector<128x128xf32>
    %cst_14 = arith.constant dense<0.000000e+00> : vector<128xf32>
    %21 = vector.multi_reduction <add>, %20, %cst_14 [0] : vector<128x128xf32> to vector<128xf32>
    %22 = vector.shape_cast %21 : vector<128xf32> to vector<1x128xf32>
    %c0_15 = arith.constant 0 : index
    %c0_16 = arith.constant 0 : index
    %c128 = arith.constant 128 : index
    %23 = vector.load %arg6[%c0_15, %c0_16, %c128] : memref<1x1x256xf32, #tpu.memory_space<vmem>>, vector<1x1x128xf32>
    %24 = vector.shape_cast %23 : vector<1x1x128xf32> to vector<1x128xf32>
    %25 = vector.shape_cast %22 : vector<1x128xf32> to vector<1x1x128xf32>
    tpu.vector_store %arg6[%c0_15, %c0_16, %c128], %25 {strides = array<i32>} : memref<1x1x256xf32, #tpu.memory_space<vmem>>, vector<1x1x128xf32>,
    return
  }
  func.func @transform_0(%arg0: i32) -> (i32, i32) {
    %c0_i32 = arith.constant 0 : i32
    %c0_i32_0 = arith.constant 0 : i32
    return %arg0, %c0_i32 : i32, i32
  }
  func.func @transform_1(%arg0: i32) -> (i32, i32) {
    %c0_i32 = arith.constant 0 : i32
    %c0_i32_0 = arith.constant 0 : i32
    %c0_i32_1 = arith.constant 0 : i32
    return %c0_i32, %c0_i32_0 : i32, i32
  }
  func.func @transform_2(%arg0: i32) -> (i32, i32) {
    %c0_i32 = arith.constant 0 : i32
    %c0_i32_0 = arith.constant 0 : i32
    %c0_i32_1 = arith.constant 0 : i32
    return %c0_i32, %c0_i32_0 : i32, i32
  }
  func.func @transform_3(%arg0: i32) -> (i32, i32) {
    %c0_i32 = arith.constant 0 : i32
    %c0_i32_0 = arith.constant 0 : i32
    %c0_i32_1 = arith.constant 0 : i32
    return %c0_i32, %c0_i32_0 : i32, i32
  }
  func.func @transform_4(%arg0: i32) -> (i32, i32) {
    %c0_i32 = arith.constant 0 : i32
    %c0_i32_0 = arith.constant 0 : i32
    return %arg0, %c0_i32 : i32, i32
  }
  func.func @transform_5(%arg0: i32) -> (i32, i32, i32) {
    %c0_i32 = arith.constant 0 : i32
    %c0_i32_0 = arith.constant 0 : i32
    %c0_i32_1 = arith.constant 0 : i32
    return %arg0, %c0_i32, %c0_i32_0 : i32, i32, i32
  }
}

module attributes {stable_mosaic.version = 11 : i64} {
  func.func @_matmul_stats_kernel(%arg0: i32, %arg1: memref<128x64xbf16, #tpu.memory_space<vmem>>, %arg2: memref<64x128xbf16, #tpu.memory_space<vmem>>, %arg3: memref<128x128xbf16, #tpu.memory_space<vmem>>, %arg4: memref<1x1x256xf32, #tpu.memory_space<vmem>>) attributes {dimension_semantics = [#tpu.dimension_semantics<parallel>], iteration_bounds = array<i64: 1>, scalar_prefetch = 0 : i64, scratch_operands = 0 : i64, tpu.core_type = #tpu.core_type<tc>, window_params = [{transform_indices = @transform_0, window_bounds = array<i64: 128, 64>}, {pipeline_mode = #tpu.pipeline_mode<synchronous>, transform_indices = @transform_1, window_bounds = array<i64: 64, 128>}, {transform_indices = @transform_2, window_bounds = array<i64: 128, 128>}, {transform_indices = @transform_3, window_bounds = array<i64: 1, 1, 256>}]} {
    %c0 = arith.constant 0 : index
    %c0_0 = arith.constant 0 : index
    %0 = vector.load %arg1[%c0, %c0_0] : memref<128x64xbf16, #tpu.memory_space<vmem>>, vector<128x64xbf16>
    %c0_1 = arith.constant 0 : index
    %c0_2 = arith.constant 0 : index
    %1 = vector.load %arg2[%c0_1, %c0_2] : memref<64x128xbf16, #tpu.memory_space<vmem>>, vector<64x128xbf16>
    %cst = arith.constant dense<0.000000e+00> : vector<128x128xf32>
    %2 = tpu.matmul %0, %1, %cst {dimension_numbers = #tpu.dot_dimension_numbers<[1], [0], [0], [1], [0, 0, 1, 1], [], []>} : vector<128x64xbf16>, vector<64x128xbf16>, vector<128x128xf32> -> vector<128x128xf32>
    %3 = arith.truncf %2 : vector<128x128xf32> to vector<128x128xbf16>
    %c0_3 = arith.constant 0 : index
    %c0_4 = arith.constant 0 : index
    %4 = vector.load %arg3[%c0_3, %c0_4] : memref<128x128xbf16, #tpu.memory_space<vmem>>, vector<128x128xbf16>
    tpu.vector_store %arg3[%c0_3, %c0_4], %3 {strides = array<i32>} : memref<128x128xbf16, #tpu.memory_space<vmem>>, vector<128x128xbf16>,
    %cst_5 = arith.constant dense<0.000000e+00> : vector<128xf32>
    %5 = vector.multi_reduction <add>, %2, %cst_5 [0] : vector<128x128xf32> to vector<128xf32>
    %6 = vector.shape_cast %5 : vector<128xf32> to vector<1x128xf32>
    %c0_6 = arith.constant 0 : index
    %c0_7 = arith.constant 0 : index
    %c0_8 = arith.constant 0 : index
    %7 = vector.load %arg4[%c0_6, %c0_7, %c0_8] : memref<1x1x256xf32, #tpu.memory_space<vmem>>, vector<1x1x128xf32>
    %8 = vector.shape_cast %7 : vector<1x1x128xf32> to vector<1x128xf32>
    %9 = vector.shape_cast %6 : vector<1x128xf32> to vector<1x1x128xf32>
    tpu.vector_store %arg4[%c0_6, %c0_7, %c0_8], %9 {strides = array<i32>} : memref<1x1x256xf32, #tpu.memory_space<vmem>>, vector<1x1x128xf32>,
    %10 = arith.mulf %2, %2 : vector<128x128xf32>
    %cst_9 = arith.constant dense<0.000000e+00> : vector<128xf32>
    %11 = vector.multi_reduction <add>, %10, %cst_9 [0] : vector<128x128xf32> to vector<128xf32>
    %12 = vector.shape_cast %11 : vector<128xf32> to vector<1x128xf32>
    %c0_10 = arith.constant 0 : index
    %c0_11 = arith.constant 0 : index
    %c128 = arith.constant 128 : index
    %13 = vector.load %arg4[%c0_10, %c0_11, %c128] : memref<1x1x256xf32, #tpu.memory_space<vmem>>, vector<1x1x128xf32>
    %14 = vector.shape_cast %13 : vector<1x1x128xf32> to vector<1x128xf32>
    %15 = vector.shape_cast %12 : vector<1x128xf32> to vector<1x1x128xf32>
    tpu.vector_store %arg4[%c0_10, %c0_11, %c128], %15 {strides = array<i32>} : memref<1x1x256xf32, #tpu.memory_space<vmem>>, vector<1x1x128xf32>,
    return
  }
  func.func @transform_0(%arg0: i32) -> (i32, i32) {
    %c0_i32 = arith.constant 0 : i32
    %c0_i32_0 = arith.constant 0 : i32
    return %arg0, %c0_i32 : i32, i32
  }
  func.func @transform_1(%arg0: i32) -> (i32, i32) {
    %c0_i32 = arith.constant 0 : i32
    %c0_i32_0 = arith.constant 0 : i32
    %c0_i32_1 = arith.constant 0 : i32
    return %c0_i32, %c0_i32_0 : i32, i32
  }
  func.func @transform_2(%arg0: i32) -> (i32, i32) {
    %c0_i32 = arith.constant 0 : i32
    %c0_i32_0 = arith.constant 0 : i32
    return %arg0, %c0_i32 : i32, i32
  }
  func.func @transform_3(%arg0: i32) -> (i32, i32, i32) {
    %c0_i32 = arith.constant 0 : i32
    %c0_i32_0 = arith.constant 0 : i32
    %c0_i32_1 = arith.constant 0 : i32
    return %arg0, %c0_i32, %c0_i32_0 : i32, i32, i32
  }
}

module attributes {stable_mosaic.version = 11 : i64} {
  func.func @_final_fuse_proj_kernel(%arg0: i32, %arg1: memref<128x128xbf16, #tpu.memory_space<vmem>>, %arg2: memref<1x128xf32, #tpu.memory_space<vmem>>, %arg3: memref<1x128xf32, #tpu.memory_space<vmem>>, %arg4: memref<128x128xbf16, #tpu.memory_space<vmem>>, %arg5: memref<1x128xf32, #tpu.memory_space<vmem>>, %arg6: memref<1x128xf32, #tpu.memory_space<vmem>>, %arg7: memref<128x128xf32, #tpu.memory_space<vmem>>) attributes {dimension_semantics = [#tpu.dimension_semantics<parallel>], iteration_bounds = array<i64: 1>, scalar_prefetch = 0 : i64, scratch_operands = 0 : i64, tpu.core_type = #tpu.core_type<tc>, window_params = [{transform_indices = @transform_0, window_bounds = array<i64: 128, 128>}, {pipeline_mode = #tpu.pipeline_mode<synchronous>, transform_indices = @transform_1, window_bounds = array<i64: 1, 128>}, {pipeline_mode = #tpu.pipeline_mode<synchronous>, transform_indices = @transform_2, window_bounds = array<i64: 1, 128>}, {transform_indices = @transform_3, window_bounds = array<i64: 128, 128>}, {pipeline_mode = #tpu.pipeline_mode<synchronous>, transform_indices = @transform_4, window_bounds = array<i64: 1, 128>}, {pipeline_mode = #tpu.pipeline_mode<synchronous>, transform_indices = @transform_5, window_bounds = array<i64: 1, 128>}, {transform_indices = @transform_6, window_bounds = array<i64: 128, 128>}]} {
    %c0 = arith.constant 0 : index
    %c0_0 = arith.constant 0 : index
    %0 = vector.load %arg1[%c0, %c0_0] : memref<128x128xbf16, #tpu.memory_space<vmem>>, vector<128x128xbf16>
    %1 = arith.extf %0 : vector<128x128xbf16> to vector<128x128xf32>
    %c0_1 = arith.constant 0 : index
    %c0_2 = arith.constant 0 : index
    %2 = vector.load %arg2[%c0_1, %c0_2] : memref<1x128xf32, #tpu.memory_space<vmem>>, vector<1x128xf32>
    %3 = vector.broadcast %2 : vector<1x128xf32> to vector<128x128xf32>
    %4 = arith.mulf %1, %3 : vector<128x128xf32>
    %c0_3 = arith.constant 0 : index
    %c0_4 = arith.constant 0 : index
    %5 = vector.load %arg3[%c0_3, %c0_4] : memref<1x128xf32, #tpu.memory_space<vmem>>, vector<1x128xf32>
    %6 = vector.broadcast %5 : vector<1x128xf32> to vector<128x128xf32>
    %7 = arith.addf %4, %6 : vector<128x128xf32>
    %c0_5 = arith.constant 0 : index
    %c0_6 = arith.constant 0 : index
    %8 = vector.load %arg4[%c0_5, %c0_6] : memref<128x128xbf16, #tpu.memory_space<vmem>>, vector<128x128xbf16>
    %9 = arith.extf %8 : vector<128x128xbf16> to vector<128x128xf32>
    %c0_7 = arith.constant 0 : index
    %c0_8 = arith.constant 0 : index
    %10 = vector.load %arg5[%c0_7, %c0_8] : memref<1x128xf32, #tpu.memory_space<vmem>>, vector<1x128xf32>
    %11 = vector.broadcast %10 : vector<1x128xf32> to vector<128x128xf32>
    %12 = arith.mulf %9, %11 : vector<128x128xf32>
    %c0_9 = arith.constant 0 : index
    %c0_10 = arith.constant 0 : index
    %13 = vector.load %arg6[%c0_9, %c0_10] : memref<1x128xf32, #tpu.memory_space<vmem>>, vector<1x128xf32>
    %14 = vector.broadcast %13 : vector<1x128xf32> to vector<128x128xf32>
    %15 = arith.addf %12, %14 : vector<128x128xf32>
    %16 = arith.addf %7, %15 : vector<128x128xf32>
    %cst = arith.constant 0.000000e+00 : f32
    %17 = vector.broadcast %cst : f32 to vector<128x128xf32>
    %18 = arith.maximumf %16, %17 : vector<128x128xf32>
    %c0_11 = arith.constant 0 : index
    %c0_12 = arith.constant 0 : index
    %19 = vector.load %arg7[%c0_11, %c0_12] : memref<128x128xf32, #tpu.memory_space<vmem>>, vector<128x128xf32>
    tpu.vector_store %arg7[%c0_11, %c0_12], %18 {strides = array<i32>} : memref<128x128xf32, #tpu.memory_space<vmem>>, vector<128x128xf32>,
    return
  }
  func.func @transform_0(%arg0: i32) -> (i32, i32) {
    %c0_i32 = arith.constant 0 : i32
    %c0_i32_0 = arith.constant 0 : i32
    return %arg0, %c0_i32 : i32, i32
  }
  func.func @transform_1(%arg0: i32) -> (i32, i32) {
    %c0_i32 = arith.constant 0 : i32
    %c0_i32_0 = arith.constant 0 : i32
    %c0_i32_1 = arith.constant 0 : i32
    return %c0_i32, %c0_i32_0 : i32, i32
  }
  func.func @transform_2(%arg0: i32) -> (i32, i32) {
    %c0_i32 = arith.constant 0 : i32
    %c0_i32_0 = arith.constant 0 : i32
    %c0_i32_1 = arith.constant 0 : i32
    return %c0_i32, %c0_i32_0 : i32, i32
  }
  func.func @transform_3(%arg0: i32) -> (i32, i32) {
    %c0_i32 = arith.constant 0 : i32
    %c0_i32_0 = arith.constant 0 : i32
    return %arg0, %c0_i32 : i32, i32
  }
  func.func @transform_4(%arg0: i32) -> (i32, i32) {
    %c0_i32 = arith.constant 0 : i32
    %c0_i32_0 = arith.constant 0 : i32
    %c0_i32_1 = arith.constant 0 : i32
    return %c0_i32, %c0_i32_0 : i32, i32
  }
  func.func @transform_5(%arg0: i32) -> (i32, i32) {
    %c0_i32 = arith.constant 0 : i32
    %c0_i32_0 = arith.constant 0 : i32
    %c0_i32_1 = arith.constant 0 : i32
    return %c0_i32, %c0_i32_0 : i32, i32
  }
  func.func @transform_6(%arg0: i32) -> (i32, i32) {
    %c0_i32 = arith.constant 0 : i32
    %c0_i32_0 = arith.constant 0 : i32
    return %arg0, %c0_i32 : i32, i32
  }
}

</mosaic_0001>

<bundles_post_ra>
// kernel: bottleneck_forward.6
= control target key start
LH: loop header
LB: loop body
LE: loop exit
PB: predicated region body
PF: predicated region fallthrough
CT: control target
= control target key end

     0   :  { %vm270_vm0 = vcmask 523264   ;;  %vm600_vm1 = vcmask 519168   ;;  %vm798_vm2 = vcmask 516096   ;;  %s1236_s13 = smov 64   ;;  %vm1001_vm3 = vcmask 1040896   ;;  %s2171_s1 = inlined_call_operand.vmem [shape: bf16[64,64], index: 1, kind: input, shape index: {}]   ;;  %s2172_s0 = inlined_call_operand.vmem [shape: bf16[512,64], index: 0, kind: input, shape index: {}]   ;;  %s2173_s2 = inlined_call_operand.vmem [shape: bf16[512,64], index: 2, kind: output, shape index: {0}]   ;;  %s2174_s3 = inlined_call_operand.vmem [shape: f32[1,1,128], index: 3, kind: output, shape index: {1}]  }
   0x1   :  { %v1222_v0 = vld [vmem:[%s2171_s1 + $0x18] sm:$0xff]  ;;  %v1221_v1 = vld [vmem:[%s2171_s1 + $0x10] sm:$0xff]  ;;  %v1220_v2 = vld [vmem:[%s2171_s1 + $0x8] sm:$0xff] }
   0x2   :  { %371 = vmatpush.bf16.msra.mxu0 %v1222_v0  ;;  %1223 = vmatpush.bf16.msra.mxu1 %v1222_v0  ;;  %v1219_v3 = vld [vmem:[%s2171_s1] sm:$0xff]  ;;  %v1188_v6 = vld [vmem:[%s2172_s0 + $0x8] sm:$0xff]  ;;  %v1189_v9 = vld [vmem:[%s2172_s0 + $0x10] sm:$0xff] }
   0x3   :  { %1224 = vmatpush.bf16.msra.mxu2 %v1222_v0  ;;  %1225 = vmatpush.bf16.msra.mxu3 %v1222_v0  ;;  %v1187_v4 = vld [vmem:[%s2172_s0] sm:$0xff]  ;;  %v1196_v7 = vld [vmem:[%s2172_s0 + $0x48] sm:$0xff]  ;;  %v1197_v10 = vld [vmem:[%s2172_s0 + $0x50] sm:$0xff] }
   0x4   :  { %v1195_v5 = vld [vmem:[%s2172_s0 + $0x40] sm:$0xff]  ;;  %v1204_v11 = vld [vmem:[%s2172_s0 + $0x88] sm:$0xff]  ;;  %v1190_v12 = vld [vmem:[%s2172_s0 + $0x18] sm:$0xff] }
   0x5   :  { %v1203_v8 = vld [vmem:[%s2172_s0 + $0x80] sm:$0xff]  ;;  %v1198_v13 = vld [vmem:[%s2172_s0 + $0x58] sm:$0xff]  ;;  %v1205_v14 = vld [vmem:[%s2172_s0 + $0x90] sm:$0xff] }
   0x6   :  { %372 = vmatpush.bf16.msra.mxu0 %v1221_v1  ;;  %1226 = vmatpush.bf16.msra.mxu1 %v1221_v1  ;;  %v1211_v15 = vld [vmem:[%s2172_s0 + $0xc0] sm:$0xff]  ;;  %v1206_v18 = vld [vmem:[%s2172_s0 + $0x98] sm:$0xff]  ;;  %v1212_v19 = vld [vmem:[%s2172_s0 + $0xc8] sm:$0xff] }
   0x7   :  { %1227 = vmatpush.bf16.msra.mxu2 %v1221_v1  ;;  %1228 = vmatpush.bf16.msra.mxu3 %v1221_v1  ;;  %v1191_v16 = vld [vmem:[%s2172_s0 + $0x20] sm:$0xff]  ;;  %v1192_v20 = vld [vmem:[%s2172_s0 + $0x28] sm:$0xff]  ;;  %v1213_v23 = vld [vmem:[%s2172_s0 + $0xd0] sm:$0xff] }
   0x8   :  { %v1199_v17 = vld [vmem:[%s2172_s0 + $0x60] sm:$0xff]  ;;  %v1200_v21 = vld [vmem:[%s2172_s0 + $0x68] sm:$0xff]  ;;  %v1193_v24 = vld [vmem:[%s2172_s0 + $0x30] sm:$0xff] }
   0x9   :  { %v1207_v22 = vld [vmem:[%s2172_s0 + $0xa0] sm:$0xff]  ;;  %v1201_v25 = vld [vmem:[%s2172_s0 + $0x70] sm:$0xff]  ;;  %v1208_v26 = vld [vmem:[%s2172_s0 + $0xa8] sm:$0xff] }
   0xa   :  { %373 = vmatpush.bf16.msra.mxu0 %v1220_v2  ;;  %1229 = vmatpush.bf16.msra.mxu1 %v1220_v2  ;;  %v1214_v27 = vld [vmem:[%s2172_s0 + $0xd8] sm:$0xff]  ;;  %v1209_v30 = vld [vmem:[%s2172_s0 + $0xb0] sm:$0xff]  ;;  %v1215_v31 = vld [vmem:[%s2172_s0 + $0xe0] sm:$0xff] }
   0xb   :  { %1230 = vmatpush.bf16.msra.mxu2 %v1220_v2  ;;  %1231 = vmatpush.bf16.msra.mxu3 %v1220_v2  ;;  %v1194_v28 = vld [vmem:[%s2172_s0 + $0x38] sm:$0xff]  ;;  %v1216_v37 = vld [vmem:[%s2172_s0 + $0xe8] sm:$0xff]  ;;  %v1217_v58 = vld [vmem:[%s2172_s0 + $0xf0] sm:$0xff] }
   0xc   :  { %v1202_v29 = vld [vmem:[%s2172_s0 + $0x78] sm:$0xff] }
   0xd   :  { %v1210_v36 = vld [vmem:[%s2172_s0 + $0xb8] sm:$0xff] }
   0xe   :  { %374 = vmatpush.bf16.msra.mxu0 %v1219_v3  ;;  %1232 = vmatpush.bf16.msra.mxu1 %v1219_v3 }
   0xf   :  { %1233 = vmatpush.bf16.msra.mxu2 %v1219_v3  ;;  %1234 = vmatpush.bf16.msra.mxu3 %v1219_v3 }
  0x11   :  { %1155 = vmatmul.msk.bf16.vlgmr.msra.gmra.mxu0 %vm270_vm0, %v1187_v4  ;;  %1163 = vmatmul.msk.bf16.vlgmr.msra.gmra.mxu1 %vm270_vm0, %v1195_v5 }
  0x12   :  { %1171 = vmatmul.msk.bf16.vlgmr.msra.gmra.mxu2 %vm270_vm0, %v1203_v8  ;;  %1179 = vmatmul.msk.bf16.vlgmr.msra.gmra.mxu3 %vm270_vm0, %v1211_v15 }
  0x21   :  { %1156 = vmatmul.msk.bf16.gmra.mxu0 %vm270_vm0, %v1188_v6  ;;  %1164 = vmatmul.msk.bf16.gmra.mxu1 %vm270_vm0, %v1196_v7 }
  0x22   :  { %1172 = vmatmul.msk.bf16.gmra.mxu2 %vm270_vm0, %v1204_v11  ;;  %1180 = vmatmul.msk.bf16.gmra.mxu3 %vm270_vm0, %v1212_v19 }
  0x31   :  { %1157 = vmatmul.msk.bf16.gmra.mxu0 %vm270_vm0, %v1189_v9  ;;  %1165 = vmatmul.msk.bf16.gmra.mxu1 %vm270_vm0, %v1197_v10 }
  0x32   :  { %1173 = vmatmul.msk.bf16.gmra.mxu2 %vm270_vm0, %v1205_v14  ;;  %1181 = vmatmul.msk.bf16.gmra.mxu3 %vm270_vm0, %v1213_v23 }
  0x41   :  { %1158 = vmatmul.msk.bf16.gmra.mxu0 %vm270_vm0, %v1190_v12  ;;  %1166 = vmatmul.msk.bf16.gmra.mxu1 %vm270_vm0, %v1198_v13 }
  0x42   :  { %1174 = vmatmul.msk.bf16.gmra.mxu2 %vm270_vm0, %v1206_v18  ;;  %1182 = vmatmul.msk.bf16.gmra.mxu3 %vm270_vm0, %v1214_v27 }
  0x51   :  { %1159 = vmatmul.msk.bf16.gmra.mxu0 %vm270_vm0, %v1191_v16  ;;  %1167 = vmatmul.msk.bf16.gmra.mxu1 %vm270_vm0, %v1199_v17  ;;  %v1218_v17 = vld [vmem:[%s2172_s0 + $0xf8] sm:$0xff] }
  0x52   :  { %1175 = vmatmul.msk.bf16.gmra.mxu2 %vm270_vm0, %v1207_v22  ;;  %1183 = vmatmul.msk.bf16.gmra.mxu3 %vm270_vm0, %v1215_v31 }
  0x61   :  { %1160 = vmatmul.msk.bf16.gmra.mxu0 %vm270_vm0, %v1192_v20  ;;  %1168 = vmatmul.msk.bf16.gmra.mxu1 %vm270_vm0, %v1200_v21 }
  0x62   :  { %1176 = vmatmul.msk.bf16.gmra.mxu2 %vm270_vm0, %v1208_v26  ;;  %1184 = vmatmul.msk.bf16.gmra.mxu3 %vm270_vm0, %v1216_v37 }
  0x71   :  { %1161 = vmatmul.msk.bf16.gmra.mxu0 %vm270_vm0, %v1193_v24  ;;  %1169 = vmatmul.msk.bf16.gmra.mxu1 %vm270_vm0, %v1201_v25 }
  0x72   :  { %1177 = vmatmul.msk.bf16.gmra.mxu2 %vm270_vm0, %v1209_v30  ;;  %1185 = vmatmul.msk.bf16.gmra.mxu3 %vm270_vm0, %v1217_v58 }
  0x81   :  { %1162 = vmatmul.msk.bf16.gmra.mxu0 %vm270_vm0, %v1194_v28  ;;  %1170 = vmatmul.msk.bf16.gmra.mxu1 %vm270_vm0, %v1202_v29 }
  0x82   :  { %1178 = vmatmul.msk.bf16.gmra.mxu2 %vm270_vm0, %v1210_v36  ;;  %1186 = vmatmul.msk.bf16.gmra.mxu3 %vm270_vm0, %v1218_v17 }
  0x8e   :  { %v376_v32 = vpop.f32.mrf.mxu0  ;;  %v1381_v33 = vpop.f32.mrf.mxu1 }
  0x8f   :  { %v536_v34 = vpack.c.bf16 %v376_v32, %v376_v32  ;;  %v552_v35 = vpack.c.bf16 %v1381_v33, %v1381_v33  ;;  %v800_v38 = vmul.f32 %v376_v32, %v376_v32  ;;  %v665_v39 = vsel %vm270_vm0, %v376_v32, 0.0 }
  0x91   :  { %601 = vst.msk [vmem:[%s2173_s2] sm:$0xf] %vm600_vm1, %v536_v34  ;;  %v864_v47 = vsel %vm270_vm0, %v800_v38, 0.0 }
  0x92   :  { %617 = vst.msk [vmem:[%s2173_s2 + $0x40] sm:$0xf] %vm600_vm1, %v552_v35 }
  0x95   :  { %v1440_v2 = vpop.f32.mrf.mxu2  ;;  %v1545_v37 = vpop.f32.mrf.mxu3 }
  0x96   :  { %v378_v40 = vpop.f32.mrf.mxu0  ;;  %v1402_v41 = vpop.f32.mrf.mxu1  ;;  %v568_v6 = vpack.c.bf16 %v1440_v2, %v1440_v2 }
  0x97   :  { %v537_v42 = vpack.c.bf16 %v378_v40, %v378_v40  ;;  %v666_v43 = vsel %vm270_vm0, %v378_v40, 0.0  ;;  %v801_v44 = vmul.f32 %v378_v40, %v378_v40  ;;  %v553_v45 = vpack.c.bf16 %v1402_v41, %v1402_v41 }
  0x98   :  { %v667_v46 = vadd.f32 %v666_v43, %v665_v39  ;;  %633 = vst.msk [vmem:[%s2173_s2 + $0x80] sm:$0xf] %vm600_vm1, %v568_v6  ;;  %v584_v39 = vpack.c.bf16 %v1545_v37, %v1545_v37 }
  0x99   :  { %602 = vst.msk [vmem:[%s2173_s2 + $0x4] sm:$0xf] %vm600_vm1, %v537_v42  ;;  %v865_v48 = vsel %vm270_vm0, %v801_v44, 0.0 }
  0x9a   :  { %v866_v49 = vadd.f32 %v865_v48, %v864_v47  ;;  %618 = vst.msk [vmem:[%s2173_s2 + $0x44] sm:$0xf] %vm600_vm1, %v553_v45 }
  0x9b   :  { %649 = vst.msk [vmem:[%s2173_s2 + $0xc0] sm:$0xf] %vm600_vm1, %v584_v39 }
  0x9d   :  { %v1462_v13 = vpop.f32.mrf.mxu2 }
  0x9e   :  { %v381_v50 = vpop.f32.mrf.mxu0  ;;  %v1417_v51 = vpop.f32.mrf.mxu1  ;;  %v569_v15 = vpack.c.bf16 %v1462_v13, %v1462_v13 }
  0x9f   :  { %v538_v52 = vpack.c.bf16 %v381_v50, %v381_v50  ;;  %v668_v53 = vsel %vm270_vm0, %v381_v50, 0.0  ;;  %v802_v54 = vmul.f32 %v381_v50, %v381_v50  ;;  %v554_v55 = vpack.c.bf16 %v1417_v51, %v1417_v51 }
  0xa0   :  { %v669_v56 = vadd.f32 %v668_v53, %v667_v46  ;;  %634 = vst.msk [vmem:[%s2173_s2 + $0x84] sm:$0xf] %vm600_vm1, %v569_v15  ;;  %v1577_v46 = vpop.f32.mrf.mxu3 }
  0xa1   :  { %603 = vst.msk [vmem:[%s2173_s2 + $0x8] sm:$0xf] %vm600_vm1, %v538_v52  ;;  %v867_v57 = vsel %vm270_vm0, %v802_v54, 0.0  ;;  %v585_v48 = vpack.c.bf16 %v1577_v46, %v1577_v46 }
  0xa2   :  { %v868_v59 = vadd.f32 %v867_v57, %v866_v49  ;;  %619 = vst.msk [vmem:[%s2173_s2 + $0x48] sm:$0xf] %vm600_vm1, %v554_v55 }
  0xa3   :  { %650 = vst.msk [vmem:[%s2173_s2 + $0xc4] sm:$0xf] %vm600_vm1, %v585_v48 }
  0xa5   :  { %v1495_v23 = vpop.f32.mrf.mxu2 }
  0xa6   :  { %v383_v60 = vpop.f32.mrf.mxu0  ;;  %v1435_v61 = vpop.f32.mrf.mxu1  ;;  %v570_v24 = vpack.c.bf16 %v1495_v23, %v1495_v23 }
  0xa7   :  { %v539_v62 = vpack.c.bf16 %v383_v60, %v383_v60  ;;  %v670_v63 = vsel %vm270_vm0, %v383_v60, 0.0  ;;  %v803_v0 = vmul.f32 %v383_v60, %v383_v60  ;;  %v555_v1 = vpack.c.bf16 %v1435_v61, %v1435_v61 }
  0xa8   :  { %v671_v3 = vadd.f32 %v670_v63, %v669_v56  ;;  %635 = vst.msk [vmem:[%s2173_s2 + $0x88] sm:$0xf] %vm600_vm1, %v570_v24  ;;  %v1609_v55 = vpop.f32.mrf.mxu3 }
  0xa9   :  { %604 = vst.msk [vmem:[%s2173_s2 + $0xc] sm:$0xf] %vm600_vm1, %v539_v62  ;;  %v869_v4 = vsel %vm270_vm0, %v803_v0, 0.0  ;;  %v586_v57 = vpack.c.bf16 %v1609_v55, %v1609_v55 }
  0xaa   :  { %v870_v5 = vadd.f32 %v869_v4, %v868_v59  ;;  %620 = vst.msk [vmem:[%s2173_s2 + $0x4c] sm:$0xf] %vm600_vm1, %v555_v1 }
  0xab   :  { %651 = vst.msk [vmem:[%s2173_s2 + $0xc8] sm:$0xf] %vm600_vm1, %v586_v57 }
  0xad   :  { %v1519_v29 = vpop.f32.mrf.mxu2 }
  0xae   :  { %v386_v7 = vpop.f32.mrf.mxu0  ;;  %v1457_v8 = vpop.f32.mrf.mxu1  ;;  %v571_v30 = vpack.c.bf16 %v1519_v29, %v1519_v29 }
  0xaf   :  { %v540_v9 = vpack.c.bf16 %v386_v7, %v386_v7  ;;  %v672_v10 = vsel %vm270_vm0, %v386_v7, 0.0  ;;  %v804_v11 = vmul.f32 %v386_v7, %v386_v7  ;;  %v556_v12 = vpack.c.bf16 %v1457_v8, %v1457_v8 }
  0xb0   :  { %v1464_v14 = vadd.f32 %v672_v10, %v671_v3  ;;  %636 = vst.msk [vmem:[%s2173_s2 + $0x8c] sm:$0xf] %vm600_vm1, %v571_v30  ;;  %v1641_v0 = vpop.f32.mrf.mxu3 }
  0xb1   :  { %605 = vst.msk [vmem:[%s2173_s2 + $0x10] sm:$0xf] %vm600_vm1, %v540_v9  ;;  %v871_v16 = vsel %vm270_vm0, %v804_v11, 0.0  ;;  %v587_v3 = vpack.c.bf16 %v1641_v0, %v1641_v0 }
  0xb2   :  { %v1476_v18 = vadd.f32 %v871_v16, %v870_v5  ;;  %621 = vst.msk [vmem:[%s2173_s2 + $0x50] sm:$0xf] %vm600_vm1, %v556_v12 }
  0xb3   :  { %652 = vst.msk [vmem:[%s2173_s2 + $0xcc] sm:$0xf] %vm600_vm1, %v587_v3 }
  0xb5   :  { %v1543_v36 = vpop.f32.mrf.mxu2 }
  0xb6   :  { %v1487_v19 = vpop.f32.mrf.mxu0  ;;  %v1489_v20 = vpop.f32.mrf.mxu1  ;;  %v572_v38 = vpack.c.bf16 %v1543_v36, %v1543_v36 }
  0xb7   :  { %v541_v21 = vpack.c.bf16 %v1487_v19, %v1487_v19  ;;  %v557_v22 = vpack.c.bf16 %v1489_v20, %v1489_v20  ;;  %v805_v15 = vmul.f32 %v1487_v19, %v1487_v19 }
  0xb8   :  { %637 = vst.msk [vmem:[%s2173_s2 + $0x90] sm:$0xf] %vm600_vm1, %v572_v38  ;;  %v1669_v10 = vpop.f32.mrf.mxu3 }
  0xb9   :  { %606 = vst.msk [vmem:[%s2173_s2 + $0x14] sm:$0xf] %vm600_vm1, %v541_v21  ;;  %v588_v30 = vpack.c.bf16 %v1669_v10, %v1669_v10 }
  0xba   :  { %622 = vst.msk [vmem:[%s2173_s2 + $0x54] sm:$0xf] %vm600_vm1, %v557_v22 }
  0xbb   :  { %653 = vst.msk [vmem:[%s2173_s2 + $0xd0] sm:$0xf] %vm600_vm1, %v588_v30 }
  0xbd   :  { %v1575_v45 = vpop.f32.mrf.mxu2 }
  0xbe   :  { %v1511_v25 = vpop.f32.mrf.mxu0  ;;  %v1513_v26 = vpop.f32.mrf.mxu1  ;;  %v573_v47 = vpack.c.bf16 %v1575_v45, %v1575_v45 }
  0xbf   :  { %v542_v27 = vpack.c.bf16 %v1511_v25, %v1511_v25  ;;  %v558_v28 = vpack.c.bf16 %v1513_v26, %v1513_v26 }
  0xc0   :  { %638 = vst.msk [vmem:[%s2173_s2 + $0x94] sm:$0xf] %vm600_vm1, %v573_v47  ;;  %v1687_v22 = vpop.f32.mrf.mxu3 }
  0xc1   :  { %607 = vst.msk [vmem:[%s2173_s2 + $0x18] sm:$0xf] %vm600_vm1, %v542_v27  ;;  %v674_v27 = vsel %vm270_vm0, %v1487_v19, 0.0  ;;  %v873_v19 = vsel %vm270_vm0, %v805_v15, 0.0 }
  0xc2   :  { %623 = vst.msk [vmem:[%s2173_s2 + $0x58] sm:$0xf] %vm600_vm1, %v558_v28  ;;  %v806_v28 = vmul.f32 %v1511_v25, %v1511_v25  ;;  %v675_v39 = vadd.f32 %v674_v27, %v1464_v14  ;;  %v874_v14 = vadd.f32 %v873_v19, %v1476_v18 }
  0xc5   :  { %v1607_v54 = vpop.f32.mrf.mxu2 }
  0xc6   :  { %v1535_v31 = vpop.f32.mrf.mxu0  ;;  %v1537_v32 = vpop.f32.mrf.mxu1  ;;  %v574_v56 = vpack.c.bf16 %v1607_v54, %v1607_v54 }
  0xc7   :  { %v543_v34 = vpack.c.bf16 %v1535_v31, %v1535_v31  ;;  %v559_v35 = vpack.c.bf16 %v1537_v32, %v1537_v32 }
  0xc8   :  { %639 = vst.msk [vmem:[%s2173_s2 + $0x98] sm:$0xf] %vm600_vm1, %v574_v56 }
  0xc9   :  { %608 = vst.msk [vmem:[%s2173_s2 + $0x1c] sm:$0xf] %vm600_vm1, %v543_v34  ;;  %v807_v34 = vmul.f32 %v1535_v31, %v1535_v31 }
  0xca   :  { %624 = vst.msk [vmem:[%s2173_s2 + $0x5c] sm:$0xf] %vm600_vm1, %v559_v35  ;;  %v676_v35 = vsel %vm270_vm0, %v1511_v25, 0.0  ;;  %v875_v25 = vsel %vm270_vm0, %v806_v28, 0.0 }
  0xcb   :  { %v677_v48 = vadd.f32 %v676_v35, %v675_v39  ;;  %v876_v3 = vadd.f32 %v875_v25, %v874_v14 }
  0xcd   :  { %v1639_v63 = vpop.f32.mrf.mxu2 }
  0xce   :  { %v1567_v40 = vpop.f32.mrf.mxu0  ;;  %v1569_v42 = vpop.f32.mrf.mxu1  ;;  %v575_v1 = vpack.c.bf16 %v1639_v63, %v1639_v63 }
  0xcf   :  { %v544_v43 = vpack.c.bf16 %v1567_v40, %v1567_v40  ;;  %v560_v44 = vpack.c.bf16 %v1569_v42, %v1569_v42  ;;  %v808_v47 = vmul.f32 %v1567_v40, %v1567_v40 }
  0xd0   :  { %640 = vst.msk [vmem:[%s2173_s2 + $0x9c] sm:$0xf] %vm600_vm1, %v575_v1  ;;  %v1748_v1 = vpop.f32.mrf.mxu3 }
  0xd1   :  { %609 = vst.msk [vmem:[%s2173_s2 + $0x20] sm:$0xf] %vm600_vm1, %v544_v43  ;;  %v589_v43 = vpack.c.bf16 %v1687_v22, %v1687_v22 }
  0xd2   :  { %625 = vst.msk [vmem:[%s2173_s2 + $0x60] sm:$0xf] %vm600_vm1, %v560_v44  ;;  %v678_v44 = vsel %vm270_vm0, %v1535_v31, 0.0  ;;  %v680_v31 = vsel %vm270_vm0, %v1567_v40, 0.0 }
  0xd3   :  { %654 = vst.msk [vmem:[%s2173_s2 + $0xd4] sm:$0xf] %vm600_vm1, %v589_v43 }
  0xd5   :  { %v1667_v9 = vpop.f32.mrf.mxu2 }
  0xd6   :  { %v1599_v49 = vpop.f32.mrf.mxu0  ;;  %v1601_v50 = vpop.f32.mrf.mxu1  ;;  %v576_v24 = vpack.c.bf16 %v1667_v9, %v1667_v9 }
  0xd7   :  { %v545_v52 = vpack.c.bf16 %v1599_v49, %v1599_v49  ;;  %v561_v53 = vpack.c.bf16 %v1601_v50, %v1601_v50  ;;  %v809_v57 = vmul.f32 %v1599_v49, %v1599_v49  ;;  %v682_v15 = vsel %vm270_vm0, %v1599_v49, 0.0 }
  0xd8   :  { %641 = vst.msk [vmem:[%s2173_s2 + $0xa0] sm:$0xf] %vm600_vm1, %v576_v24 }
  0xd9   :  { %610 = vst.msk [vmem:[%s2173_s2 + $0x24] sm:$0xf] %vm600_vm1, %v545_v52  ;;  %v877_v52 = vsel %vm270_vm0, %v807_v34, 0.0  ;;  %v881_v27 = vsel %vm270_vm0, %v809_v57, 0.0 }
  0xda   :  { %626 = vst.msk [vmem:[%s2173_s2 + $0x64] sm:$0xf] %vm600_vm1, %v561_v53 }
  0xdd   :  { %v1685_v21 = vpop.f32.mrf.mxu2 }
  0xde   :  { %v1631_v58 = vpop.f32.mrf.mxu0  ;;  %v1633_v59 = vpop.f32.mrf.mxu1  ;;  %v577_v38 = vpack.c.bf16 %v1685_v21, %v1685_v21 }
  0xdf   :  { %v546_v60 = vpack.c.bf16 %v1631_v58, %v1631_v58  ;;  %v562_v62 = vpack.c.bf16 %v1633_v59, %v1633_v59  ;;  %v810_v40 = vmul.f32 %v1631_v58, %v1631_v58  ;;  %v684_v49 = vsel %vm270_vm0, %v1631_v58, 0.0 }
  0xe0   :  { %642 = vst.msk [vmem:[%s2173_s2 + $0xa4] sm:$0xf] %vm600_vm1, %v577_v38 }
  0xe1   :  { %611 = vst.msk [vmem:[%s2173_s2 + $0x28] sm:$0xf] %vm600_vm1, %v546_v60  ;;  %v883_v34 = vsel %vm270_vm0, %v810_v40, 0.0 }
  0xe2   :  { %627 = vst.msk [vmem:[%s2173_s2 + $0x68] sm:$0xf] %vm600_vm1, %v562_v62 }
  0xe5   :  { %v1746_v62 = vpop.f32.mrf.mxu2 }
  0xe6   :  { %v403_v4 = vpop.f32.mrf.mxu0  ;;  %v1663_v5 = vpop.f32.mrf.mxu1 }
  0xe7   :  { %v547_v6 = vpack.c.bf16 %v403_v4, %v403_v4  ;;  %v563_v7 = vpack.c.bf16 %v1663_v5, %v1663_v5  ;;  %v811_v24 = vmul.f32 %v403_v4, %v403_v4  ;;  %v686_v19 = vsel %vm270_vm0, %v403_v4, 0.0 }
  0xe9   :  { %612 = vst.msk [vmem:[%s2173_s2 + $0x2c] sm:$0xf] %vm600_vm1, %v547_v6  ;;  %v679_v6 = vadd.f32 %v678_v44, %v677_v48  ;;  %v885_v43 = vsel %vm270_vm0, %v811_v24, 0.0 }
  0xea   :  { %628 = vst.msk [vmem:[%s2173_s2 + $0x6c] sm:$0xf] %vm600_vm1, %v563_v7  ;;  %v879_v7 = vsel %vm270_vm0, %v808_v47, 0.0 }
  0xee   :  { %v406_v11 = vpop.f32.mrf.mxu0  ;;  %v1679_v12 = vpop.f32.mrf.mxu1 }
  0xef   :  { %v548_v16 = vpack.c.bf16 %v406_v11, %v406_v11  ;;  %v564_v17 = vpack.c.bf16 %v1679_v12, %v1679_v12  ;;  %v812_v35 = vmul.f32 %v406_v11, %v406_v11  ;;  %v688_v47 = vsel %vm270_vm0, %v406_v11, 0.0 }
  0xf1   :  { %613 = vst.msk [vmem:[%s2173_s2 + $0x30] sm:$0xf] %vm600_vm1, %v548_v16  ;;  %v878_v16 = vadd.f32 %v877_v52, %v876_v3  ;;  %v1774_v52 = vpop.f32.mrf.mxu2 }
  0xf2   :  { %629 = vst.msk [vmem:[%s2173_s2 + $0x70] sm:$0xf] %vm600_vm1, %v564_v17  ;;  %v681_v17 = vadd.f32 %v680_v31, %v679_v6  ;;  %v1776_v31 = vpop.f32.mrf.mxu3  ;;  %v590_v6 = vpack.c.bf16 %v1748_v1, %v1748_v1 }
  0xf3   :  { %v880_v28 = vadd.f32 %v879_v7, %v878_v16  ;;  %v579_v16 = vpack.c.bf16 %v1774_v52, %v1774_v52 }
  0xf4   :  { %v683_v30 = vadd.f32 %v682_v15, %v681_v17  ;;  %655 = vst.msk [vmem:[%s2173_s2 + $0xd8] sm:$0xf] %vm600_vm1, %v590_v6  ;;  %v698_v6 = vsel %vm270_vm0, %v1402_v41, 0.0 }
  0xf5   :  { %v882_v38 = vadd.f32 %v881_v27, %v880_v28  ;;  %v591_v27 = vpack.c.bf16 %v1776_v31, %v1776_v31  ;;  %644 = vst.msk [vmem:[%s2173_s2 + $0xac] sm:$0xf] %vm600_vm1, %v579_v16  ;;  %v816_v28 = vmul.f32 %v1381_v33, %v1381_v33  ;;  %v819_v16 = vmul.f32 %v1435_v61, %v1435_v61 }
  0xf6   :  { %v408_v53 = vpop.f32.mrf.mxu0  ;;  %v1734_v56 = vpop.f32.mrf.mxu1  ;;  %v685_v39 = vadd.f32 %v684_v49, %v683_v30 }
  0xf7   :  { %v549_v60 = vpack.c.bf16 %v408_v53, %v408_v53  ;;  %v565_v18 = vpack.c.bf16 %v1734_v56, %v1734_v56  ;;  %v813_v14 = vmul.f32 %v408_v53, %v408_v53  ;;  %v884_v4 = vadd.f32 %v883_v34, %v882_v38  ;;  %656 = vst.msk [vmem:[%s2173_s2 + $0xdc] sm:$0xf] %vm600_vm1, %v591_v27 }
  0xf8   :  { %v687_v57 = vadd.f32 %v686_v19, %v685_v39  ;;  %v690_v3 = vsel %vm270_vm0, %v408_v53, 0.0 }
  0xf9   :  { %614 = vst.msk [vmem:[%s2173_s2 + $0x34] sm:$0xf] %vm600_vm1, %v549_v60  ;;  %v578_v60 = vpack.c.bf16 %v1746_v62, %v1746_v62  ;;  %v886_v7 = vadd.f32 %v885_v43, %v884_v4  ;;  %v889_v40 = vsel %vm270_vm0, %v813_v14, 0.0  ;;  %v696_v4 = vsel %vm270_vm0, %v1381_v33, 0.0 }
  0xfa   :  { %630 = vst.msk [vmem:[%s2173_s2 + $0x74] sm:$0xf] %vm600_vm1, %v565_v18  ;;  %v887_v18 = vsel %vm270_vm0, %v812_v35, 0.0  ;;  %v689_v15 = vadd.f32 %v688_v47, %v687_v57  ;;  %v1822_v47 = vpop.f32.mrf.mxu2  ;;  %v1824_v14 = vpop.f32.mrf.mxu3  ;;  %v817_v57 = vmul.f32 %v1402_v41, %v1402_v41  ;;  %v895_v33 = vsel %vm270_vm0, %v816_v28, 0.0 }
  0xfb   :  { %643 = vst.msk [vmem:[%s2173_s2 + $0xa8] sm:$0xf] %vm600_vm1, %v578_v60  ;;  %v888_v17 = vadd.f32 %v887_v18, %v886_v7  ;;  %v818_v18 = vmul.f32 %v1417_v51, %v1417_v51  ;;  %v820_v41 = vmul.f32 %v1457_v8, %v1457_v8  ;;  %v580_v28 = vpack.c.bf16 %v1822_v47, %v1822_v47 }
  0xfc   :  { %v691_v24 = vadd.f32 %v690_v3, %v689_v15 }
  0xfd   :  { %v890_v30 = vadd.f32 %v889_v40, %v888_v17  ;;  %v897_v40 = vsel %vm270_vm0, %v817_v57, 0.0  ;;  %v899_v17 = vsel %vm270_vm0, %v818_v18, 0.0  ;;  %645 = vst.msk [vmem:[%s2173_s2 + $0xb0] sm:$0xf] %vm600_vm1, %v580_v28  ;;  %v706_v57 = vsel %vm270_vm0, %v1489_v20, 0.0 }
  0xfe   :  { %v411_v25 = vpop.f32.mrf.mxu0  ;;  %v1769_v44 = vpop.f32.mrf.mxu1 }
  0xff   :  { %v550_v48 = vpack.c.bf16 %v411_v25, %v411_v25  ;;  %v566_v58 = vpack.c.bf16 %v1769_v44, %v1769_v44  ;;  %v814_v11 = vmul.f32 %v411_v25, %v411_v25  ;;  %v692_v53 = vsel %vm270_vm0, %v411_v25, 0.0 }
 0x100   :  { %v693_v34 = vadd.f32 %v692_v53, %v691_v24  ;;  %v700_v53 = vsel %vm270_vm0, %v1417_v51, 0.0 }
 0x101   :  { %615 = vst.msk [vmem:[%s2173_s2 + $0x38] sm:$0xf] %vm600_vm1, %v550_v48  ;;  %v891_v49 = vsel %vm270_vm0, %v814_v11, 0.0 }
 0x102   :  { %631 = vst.msk [vmem:[%s2173_s2 + $0x78] sm:$0xf] %vm600_vm1, %v566_v58  ;;  %v892_v48 = vadd.f32 %v891_v49, %v890_v30  ;;  %v702_v49 = vsel %vm270_vm0, %v1435_v61, 0.0  ;;  %v592_v30 = vpack.c.bf16 %v1824_v14, %v1824_v14  ;;  %v1858_v51 = vpop.f32.mrf.mxu2  ;;  %v704_v61 = vsel %vm270_vm0, %v1457_v8, 0.0 }
 0x104   :  { %657 = vst.msk [vmem:[%s2173_s2 + $0xe0] sm:$0xf] %vm600_vm1, %v592_v30 }
 0x106   :  { %v413_v19 = vpop.f32.mrf.mxu0  ;;  %v1813_v35 = vpop.f32.mrf.mxu1 }
 0x107   :  { %v551_v38 = vpack.c.bf16 %v413_v19, %v413_v19  ;;  %v694_v39 = vsel %vm270_vm0, %v413_v19, 0.0  ;;  %v815_v43 = vmul.f32 %v413_v19, %v413_v19  ;;  %v567_v25 = vpack.c.bf16 %v1813_v35, %v1813_v35 }
 0x108   :  { %v695_v58 = vadd.f32 %v694_v39, %v693_v34  ;;  %v1860_v34 = vpop.f32.mrf.mxu3  ;;  %v901_v39 = vsel %vm270_vm0, %v819_v16, 0.0 }
 0x109   :  { %616 = vst.msk [vmem:[%s2173_s2 + $0x3c] sm:$0xf] %vm600_vm1, %v551_v38  ;;  %v893_v60 = vsel %vm270_vm0, %v815_v43, 0.0  ;;  %v821_v43 = vmul.f32 %v1489_v20, %v1489_v20  ;;  %v593_v8 = vpack.c.bf16 %v1860_v34, %v1860_v34  ;;  %v708_v20 = vsel %vm270_vm0, %v1513_v26, 0.0 }
 0x10a   :  { %v697_v3 = vadd.f32 %v696_v4, %v695_v58  ;;  %v894_v11 = vadd.f32 %v893_v60, %v892_v48  ;;  %632 = vst.msk [vmem:[%s2173_s2 + $0x7c] sm:$0xf] %vm600_vm1, %v567_v25  ;;  %v581_v25 = vpack.c.bf16 %v1858_v51, %v1858_v51  ;;  %v903_v4 = vsel %vm270_vm0, %v820_v41, 0.0  ;;  %v1902_v16 = vpop.f32.mrf.mxu2 }
 0x10b   :  { %v822_v60 = vmul.f32 %v1513_v26, %v1513_v26  ;;  %658 = vst.msk [vmem:[%s2173_s2 + $0xe4] sm:$0xf] %vm600_vm1, %v593_v8  ;;  %v825_v41 = vmul.f32 %v1601_v50, %v1601_v50 }
 0x10c   :  { %v699_v7 = vadd.f32 %v698_v6, %v697_v3  ;;  %v896_v15 = vadd.f32 %v895_v33, %v894_v11  ;;  %646 = vst.msk [vmem:[%s2173_s2 + $0xb4] sm:$0xf] %vm600_vm1, %v581_v25  ;;  %v905_v11 = vsel %vm270_vm0, %v821_v43, 0.0  ;;  %v823_v33 = vmul.f32 %v1537_v32, %v1537_v32 }
 0x10d   :  { %v913_v43 = vsel %vm270_vm0, %v825_v41, 0.0  ;;  %v827_v25 = vmul.f32 %v1663_v5, %v1663_v5  ;;  %v831_v41 = vmul.f32 %v1813_v35, %v1813_v35 }
 0x10e   :  { %v701_v24 = vadd.f32 %v700_v53, %v699_v7  ;;  %v898_v27 = vadd.f32 %v897_v40, %v896_v15  ;;  %v907_v15 = vsel %vm270_vm0, %v822_v60, 0.0  ;;  %v710_v40 = vsel %vm270_vm0, %v1537_v32, 0.0 }
 0x10f   :  { %v824_v53 = vmul.f32 %v1569_v42, %v1569_v42  ;;  %v909_v26 = vsel %vm270_vm0, %v823_v33, 0.0  ;;  %v826_v32 = vmul.f32 %v1633_v59, %v1633_v59  ;;  %v829_v33 = vmul.f32 %v1734_v56, %v1734_v56 }
 0x110   :  { %v703_v19 = vadd.f32 %v702_v49, %v701_v24  ;;  %v900_v38 = vadd.f32 %v899_v17, %v898_v27  ;;  %v1904_v17 = vpop.f32.mrf.mxu3  ;;  %v712_v49 = vsel %vm270_vm0, %v1569_v42, 0.0  ;;  %v716_v42 = vsel %vm270_vm0, %v1633_v59, 0.0 }
 0x111   :  { %v594_v60 = vpack.c.bf16 %v1904_v17, %v1904_v17 }
 0x112   :  { %v705_v48 = vadd.f32 %v704_v61, %v703_v19  ;;  %v902_v58 = vadd.f32 %v901_v39, %v900_v38  ;;  %v911_v19 = vsel %vm270_vm0, %v824_v53, 0.0  ;;  %v714_v38 = vsel %vm270_vm0, %v1601_v50, 0.0  ;;  %v1930_v59 = vpop.f32.mrf.mxu2 }
 0x113   :  { %v828_v50 = vmul.f32 %v1679_v12, %v1679_v12  ;;  %659 = vst.msk [vmem:[%s2173_s2 + $0xe8] sm:$0xf] %vm600_vm1, %v594_v60  ;;  %v722_v53 = vsel %vm270_vm0, %v1734_v56, 0.0  ;;  %v724_v56 = vsel %vm270_vm0, %v1769_v44, 0.0 }
 0x114   :  { %v707_v18 = vadd.f32 %v706_v57, %v705_v48  ;;  %v904_v3 = vadd.f32 %v903_v4, %v902_v58  ;;  %v915_v48 = vsel %vm270_vm0, %v826_v32, 0.0  ;;  %v718_v4 = vsel %vm270_vm0, %v1663_v5, 0.0 }
 0x115   :  { %v582_v57 = vpack.c.bf16 %v1902_v16, %v1902_v16  ;;  %v720_v5 = vsel %vm270_vm0, %v1679_v12, 0.0 }
 0x116   :  { %v906_v6 = vadd.f32 %v905_v11, %v904_v3  ;;  %v709_v7 = vadd.f32 %v708_v20, %v707_v18  ;;  %v917_v20 = vsel %vm270_vm0, %v827_v25, 0.0  ;;  %v925_v25 = vsel %vm270_vm0, %v831_v41, 0.0 }
 0x117   :  { %647 = vst.msk [vmem:[%s2173_s2 + $0xb8] sm:$0xf] %vm600_vm1, %v582_v57 }
 0x118   :  { %v711_v24 = vadd.f32 %v710_v40, %v709_v7  ;;  %v908_v27 = vadd.f32 %v907_v15, %v906_v6  ;;  %v1932_v18 = vpop.f32.mrf.mxu3  ;;  %v583_v6 = vpack.c.bf16 %v1930_v59, %v1930_v59  ;;  %v919_v40 = vsel %vm270_vm0, %v828_v50, 0.0 }
 0x119   :  { %v595_v12 = vpack.c.bf16 %v1932_v18, %v1932_v18 }
 0x11a   :  { %v713_v28 = vadd.f32 %v712_v49, %v711_v24  ;;  %v910_v30 = vadd.f32 %v909_v26, %v908_v27  ;;  %v830_v24 = vmul.f32 %v1769_v44, %v1769_v44  ;;  %648 = vst.msk [vmem:[%s2173_s2 + $0xbc] sm:$0xf] %vm600_vm1, %v583_v6  ;;  %v921_v49 = vsel %vm270_vm0, %v829_v33, 0.0 }
 0x11b   :  { %660 = vst.msk [vmem:[%s2173_s2 + $0xec] sm:$0xf] %vm600_vm1, %v595_v12  ;;  %v728_v44 = vsel %vm270_vm0, %v1440_v2, 0.0  ;;  %v836_v33 = vmul.f32 %v1543_v36, %v1543_v36 }
 0x11c   :  { %v715_v39 = vadd.f32 %v714_v38, %v713_v28  ;;  %v912_v61 = vadd.f32 %v911_v19, %v910_v30  ;;  %v832_v30 = vmul.f32 %v1440_v2, %v1440_v2  ;;  %v923_v19 = vsel %vm270_vm0, %v830_v24, 0.0 }
 0x11d   :  { %v726_v38 = vsel %vm270_vm0, %v1813_v35, 0.0  ;;  %v834_v35 = vmul.f32 %v1495_v23, %v1495_v23  ;;  %v732_v2 = vsel %vm270_vm0, %v1495_v23, 0.0 }
 0x11e   :  { %v717_v58 = vadd.f32 %v716_v42, %v715_v39  ;;  %v914_v8 = vadd.f32 %v913_v43, %v912_v61  ;;  %v833_v42 = vmul.f32 %v1462_v13, %v1462_v13 }
 0x120   :  { %v719_v3 = vadd.f32 %v718_v4, %v717_v58  ;;  %v916_v11 = vadd.f32 %v915_v48, %v914_v8  ;;  %v1974_v39 = vpop.f32.mrf.mxu3  ;;  %v927_v8 = vsel %vm270_vm0, %v832_v30, 0.0  ;;  %v730_v4 = vsel %vm270_vm0, %v1462_v13, 0.0 }
 0x121   :  { %v929_v60 = vsel %vm270_vm0, %v833_v42, 0.0  ;;  %v734_v13 = vsel %vm270_vm0, %v1519_v29, 0.0  ;;  %v596_v6 = vpack.c.bf16 %v1974_v39, %v1974_v39  ;;  %v839_v30 = vmul.f32 %v1639_v63, %v1639_v63 }
 0x122   :  { %v721_v7 = vadd.f32 %v720_v5, %v719_v3  ;;  %v918_v15 = vadd.f32 %v917_v20, %v916_v11  ;;  %v835_v3 = vmul.f32 %v1519_v29, %v1519_v29  ;;  %v931_v5 = vsel %vm270_vm0, %v834_v35, 0.0 }
 0x123   :  { %v837_v29 = vmul.f32 %v1575_v45, %v1575_v45  ;;  %661 = vst.msk [vmem:[%s2173_s2 + $0xf0] sm:$0xf] %vm600_vm1, %v596_v6 }
 0x124   :  { %v920_v27 = vadd.f32 %v919_v40, %v918_v15  ;;  %v723_v26 = vadd.f32 %v722_v53, %v721_v7  ;;  %v933_v40 = vsel %vm270_vm0, %v835_v3, 0.0  ;;  %v736_v53 = vsel %vm270_vm0, %v1543_v36, 0.0 }
 0x125   :  { %v738_v36 = vsel %vm270_vm0, %v1575_v45, 0.0  ;;  %v742_v45 = vsel %vm270_vm0, %v1639_v63, 0.0  ;;  %v746_v63 = vsel %vm270_vm0, %v1685_v21, 0.0  ;;  %v843_v3 = vmul.f32 %v1774_v52, %v1774_v52 }
 0x126   :  { %v922_v32 = vadd.f32 %v921_v49, %v920_v27  ;;  %v725_v28 = vadd.f32 %v724_v56, %v723_v26  ;;  %v935_v26 = vsel %vm270_vm0, %v836_v33, 0.0  ;;  %v838_v49 = vmul.f32 %v1607_v54, %v1607_v54 }
 0x128   :  { %v924_v61 = vadd.f32 %v923_v19, %v922_v32  ;;  %v727_v43 = vadd.f32 %v726_v38, %v725_v28  ;;  %v1998_v7 = vpop.f32.mrf.mxu3  ;;  %v937_v32 = vsel %vm270_vm0, %v837_v29, 0.0  ;;  %v740_v28 = vsel %vm270_vm0, %v1607_v54, 0.0 }
 0x129   :  { %v597_v12 = vpack.c.bf16 %v1998_v7, %v1998_v7  ;;  %v744_v54 = vsel %vm270_vm0, %v1667_v9, 0.0 }
 0x12a   :  { %v729_v48 = vadd.f32 %v728_v44, %v727_v43  ;;  %v926_v58 = vadd.f32 %v925_v25, %v924_v61  ;;  %v939_v61 = vsel %vm270_vm0, %v838_v49, 0.0  ;;  %v840_v43 = vmul.f32 %v1667_v9, %v1667_v9 }
 0x12b   :  { %662 = vst.msk [vmem:[%s2173_s2 + $0xf4] sm:$0xf] %vm600_vm1, %v597_v12  ;;  %v748_v9 = vsel %vm270_vm0, %v1746_v62, 0.0  ;;  %v949_v12 = vsel %vm270_vm0, %v843_v3, 0.0 }
 0x12c   :  { %v731_v50 = vadd.f32 %v730_v4, %v729_v48  ;;  %v928_v57 = vadd.f32 %v927_v8, %v926_v58  ;;  %v941_v48 = vsel %vm270_vm0, %v839_v30, 0.0  ;;  %v841_v58 = vmul.f32 %v1685_v21, %v1685_v21 }
 0x12d   :  { %v943_v35 = vsel %vm270_vm0, %v840_v43, 0.0  ;;  %v750_v21 = vsel %vm270_vm0, %v1774_v52, 0.0  ;;  %v845_v52 = vmul.f32 %v1858_v51, %v1858_v51  ;;  %v848_v30 = vmul.f32 %v1545_v37, %v1545_v37 }
 0x12e   :  { %v733_v11 = vadd.f32 %v732_v2, %v731_v50  ;;  %v930_v20 = vadd.f32 %v929_v60, %v928_v57  ;;  %v842_v50 = vmul.f32 %v1746_v62, %v1746_v62  ;;  %v945_v2 = vsel %vm270_vm0, %v841_v58, 0.0 }
 0x12f   :  { %v953_v49 = vsel %vm270_vm0, %v845_v52, 0.0 }
 0x130   :  { %v735_v15 = vadd.f32 %v734_v13, %v733_v11  ;;  %v932_v23 = vadd.f32 %v931_v5, %v930_v20  ;;  %v2030_v44 = vpop.f32.mrf.mxu3  ;;  %v947_v5 = vsel %vm270_vm0, %v842_v50, 0.0  ;;  %v844_v13 = vmul.f32 %v1822_v47, %v1822_v47 }
 0x131   :  { %v598_v33 = vpack.c.bf16 %v2030_v44, %v2030_v44 }
 0x132   :  { %v737_v24 = vadd.f32 %v736_v53, %v735_v15  ;;  %v934_v27 = vadd.f32 %v933_v40, %v932_v23  ;;  %v752_v40 = vsel %vm270_vm0, %v1822_v47, 0.0  ;;  %v754_v47 = vsel %vm270_vm0, %v1858_v51, 0.0 }
 0x133   :  { %663 = vst.msk [vmem:[%s2173_s2 + $0xf8] sm:$0xf] %vm600_vm1, %v598_v33 }
 0x134   :  { %v739_v56 = vadd.f32 %v738_v36, %v737_v24  ;;  %v936_v41 = vadd.f32 %v935_v26, %v934_v27  ;;  %v951_v24 = vsel %vm270_vm0, %v844_v13, 0.0  ;;  %v846_v27 = vmul.f32 %v1902_v16, %v1902_v16 }
 0x135   :  { %v854_v13 = vmul.f32 %v1748_v1, %v1748_v1 }
 0x136   :  { %v938_v19 = vadd.f32 %v937_v32, %v936_v41  ;;  %v741_v38 = vadd.f32 %v740_v28, %v739_v56  ;;  %v756_v56 = vsel %vm270_vm0, %v1902_v16, 0.0  ;;  %v847_v41 = vmul.f32 %v1930_v59, %v1930_v59 }
 0x137   :  { %v955_v51 = vsel %vm270_vm0, %v846_v27, 0.0  ;;  %v849_v16 = vmul.f32 %v1577_v46, %v1577_v46  ;;  %v971_v52 = vsel %vm270_vm0, %v854_v13, 0.0  ;;  %v857_v27 = vmul.f32 %v1860_v34, %v1860_v34 }
 0x138   :  { %v743_v42 = vadd.f32 %v742_v45, %v741_v38  ;;  %v940_v25 = vadd.f32 %v939_v61, %v938_v19  ;;  %v2054_v6 = vpop.f32.mrf.mxu3  ;;  %v758_v19 = vsel %vm270_vm0, %v1930_v59, 0.0  ;;  %v760_v45 = vsel %vm270_vm0, %v1545_v37, 0.0 }
 0x139   :  { %v599_v23 = vpack.c.bf16 %v2054_v6, %v2054_v6  ;;  %v957_v43 = vsel %vm270_vm0, %v847_v41, 0.0  ;;  %v850_v59 = vmul.f32 %v1609_v55, %v1609_v55  ;;  %v764_v37 = vsel %vm270_vm0, %v1609_v55, 0.0 }
 0x13a   :  { %v745_v8 = vadd.f32 %v744_v54, %v743_v42  ;;  %v942_v4 = vadd.f32 %v941_v48, %v940_v25  ;;  %v959_v48 = vsel %vm270_vm0, %v848_v30, 0.0  ;;  %v762_v54 = vsel %vm270_vm0, %v1577_v46, 0.0 }
 0x13b   :  { %664 = vst.msk [vmem:[%s2173_s2 + $0xfc] sm:$0xf] %vm600_vm1, %v599_v23  ;;  %v766_v46 = vsel %vm270_vm0, %v1641_v0, 0.0  ;;  %v768_v55 = vsel %vm270_vm0, %v1669_v10, 0.0  ;;  %v855_v23 = vmul.f32 %v1776_v31, %v1776_v31  ;;  %v859_v30 = vmul.f32 %v1932_v18, %v1932_v18 }
 0x13c   :  { %v747_v57 = vadd.f32 %v746_v63, %v745_v8  ;;  %v944_v60 = vadd.f32 %v943_v35, %v942_v4  ;;  %v961_v4 = vsel %vm270_vm0, %v849_v16, 0.0  ;;  %v851_v35 = vmul.f32 %v1641_v0, %v1641_v0 }
 0x13d   :  { %v770_v0 = vsel %vm270_vm0, %v1687_v22, 0.0 }
 0x13e   :  { %v749_v11 = vadd.f32 %v748_v9, %v747_v57  ;;  %v946_v20 = vadd.f32 %v945_v2, %v944_v60  ;;  %v963_v57 = vsel %vm270_vm0, %v850_v59, 0.0  ;;  %v852_v60 = vmul.f32 %v1669_v10, %v1669_v10 }
 0x13f   :  { %v965_v3 = vsel %vm270_vm0, %v851_v35, 0.0  ;;  %v772_v10 = vsel %vm270_vm0, %v1748_v1, 0.0  ;;  %v776_v1 = vsel %vm270_vm0, %v1824_v14, 0.0  ;;  %v862_v59 = vmul.f32 %v2030_v44, %v2030_v44 }
 0x140   :  { %v751_v15 = vadd.f32 %v750_v21, %v749_v11  ;;  %v948_v62 = vadd.f32 %v947_v5, %v946_v20  ;;  %v853_v11 = vmul.f32 %v1687_v22, %v1687_v22  ;;  %v967_v21 = vsel %vm270_vm0, %v852_v60, 0.0 }
 0x141   :  { %v774_v22 = vsel %vm270_vm0, %v1776_v31, 0.0  ;;  %v778_v31 = vsel %vm270_vm0, %v1860_v34, 0.0  ;;  %v782_v34 = vsel %vm270_vm0, %v1932_v18, 0.0  ;;  %v786_v18 = vsel %vm270_vm0, %v1998_v7, 0.0 }
 0x142   :  { %v950_v53 = vadd.f32 %v949_v12, %v948_v62  ;;  %v753_v29 = vadd.f32 %v752_v40, %v751_v15  ;;  %v969_v62 = vsel %vm270_vm0, %v853_v11, 0.0 }
 0x144   :  { %v952_v26 = vadd.f32 %v951_v24, %v950_v53  ;;  %v755_v36 = vadd.f32 %v754_v47, %v753_v29  ;;  %v856_v53 = vmul.f32 %v1824_v14, %v1824_v14  ;;  %v973_v47 = vsel %vm270_vm0, %v855_v23, 0.0 }
 0x145   :  { %v780_v14 = vsel %vm270_vm0, %v1904_v17, 0.0 }
 0x146   :  { %v954_v32 = vadd.f32 %v953_v49, %v952_v26  ;;  %v757_v28 = vadd.f32 %v756_v56, %v755_v36  ;;  %v975_v49 = vsel %vm270_vm0, %v856_v53, 0.0  ;;  %v858_v56 = vmul.f32 %v1904_v17, %v1904_v17 }
 0x147   :  { %v784_v17 = vsel %vm270_vm0, %v1974_v39, 0.0 }
 0x148   :  { %v956_v38 = vadd.f32 %v955_v51, %v954_v32  ;;  %v759_v61 = vadd.f32 %v758_v19, %v757_v28  ;;  %v977_v28 = vsel %vm270_vm0, %v857_v27, 0.0 }
 0x14a   :  { %v761_v42 = vadd.f32 %v760_v45, %v759_v61  ;;  %v958_v25 = vadd.f32 %v957_v43, %v956_v38  ;;  %v979_v38 = vsel %vm270_vm0, %v858_v56, 0.0  ;;  %v860_v61 = vmul.f32 %v1974_v39, %v1974_v39 }
 0x14b   :  { %v981_v43 = vsel %vm270_vm0, %v859_v30, 0.0  ;;  %v788_v39 = vsel %vm270_vm0, %v2030_v44, 0.0 }
 0x14c   :  { %v763_v58 = vadd.f32 %v762_v54, %v761_v42  ;;  %v960_v8 = vadd.f32 %v959_v48, %v958_v25  ;;  %v861_v42 = vmul.f32 %v1998_v7, %v1998_v7  ;;  %v983_v54 = vsel %vm270_vm0, %v860_v61, 0.0 }
 0x14d   :  { %v790_v7 = vsel %vm270_vm0, %v2054_v6, 0.0 }
 0x14e   :  { %v765_v63 = vadd.f32 %v764_v37, %v763_v58  ;;  %v962_v50 = vadd.f32 %v961_v4, %v960_v8  ;;  %v985_v4 = vsel %vm270_vm0, %v861_v42, 0.0  ;;  %v863_v37 = vmul.f32 %v2054_v6, %v2054_v6 }
 0x150   :  { %v767_v2 = vadd.f32 %v766_v46, %v765_v63  ;;  %v964_v9 = vadd.f32 %v963_v57, %v962_v50  ;;  %v987_v50 = vsel %vm270_vm0, %v862_v59, 0.0  ;;  %v989_v60 = vsel %vm270_vm0, %v863_v37, 0.0 }
 0x152   :  { %v769_v20 = vadd.f32 %v768_v55, %v767_v2  ;;  %v966_v5 = vadd.f32 %v965_v3, %v964_v9 }
 0x154   :  { %v771_v33 = vadd.f32 %v770_v0, %v769_v20  ;;  %v968_v15 = vadd.f32 %v967_v21, %v966_v5 }
 0x156   :  { %v970_v12 = vadd.f32 %v969_v62, %v968_v15  ;;  %v773_v40 = vadd.f32 %v772_v10, %v771_v33 }
 0x158   :  { %v775_v29 = vadd.f32 %v774_v22, %v773_v40  ;;  %v972_v24 = vadd.f32 %v971_v52, %v970_v12 }
 0x15a   :  { %v777_v26 = vadd.f32 %v776_v1, %v775_v29  ;;  %v974_v36 = vadd.f32 %v973_v47, %v972_v24 }
 0x15c   :  { %v779_v41 = vadd.f32 %v778_v31, %v777_v26  ;;  %v976_v32 = vadd.f32 %v975_v49, %v974_v36 }
 0x15e   :  { %v781_v51 = vadd.f32 %v780_v14, %v779_v41  ;;  %v978_v19 = vadd.f32 %v977_v28, %v976_v32 }
 0x160   :  { %v783_v45 = vadd.f32 %v782_v34, %v781_v51  ;;  %v980_v16 = vadd.f32 %v979_v38, %v978_v19 }
 0x162   :  { %v982_v25 = vadd.f32 %v981_v43, %v980_v16  ;;  %v785_v48 = vadd.f32 %v784_v17, %v783_v45 }
 0x164   :  { %v984_v58 = vadd.f32 %v983_v54, %v982_v25  ;;  %v787_v8 = vadd.f32 %v786_v18, %v785_v48 }
 0x166   :  { %v986_v35 = vadd.f32 %v985_v4, %v984_v58  ;;  %v789_v63 = vadd.f32 %v788_v39, %v787_v8 }
 0x168   :  { %v988_v57 = vadd.f32 %v987_v50, %v986_v35  ;;  %v791_v46 = vadd.f32 %v790_v7, %v789_v63 }
 0x16a   :  { %v792_v2 = vrot.slane %v791_v46, 4  ;;  %v990_v9 = vadd.f32 %v989_v60, %v988_v57 }
 0x16c   :  { %v793_v3 = vadd.f32 %v792_v2, %v791_v46  ;;  %v991_v55 = vrot.slane %v990_v9, 4 }
 0x16e   :  { %v794_v11 = vrot.slane %v793_v3, 2  ;;  %v992_v44 = vadd.f32 %v991_v55, %v990_v9 }
 0x170   :  { %v795_v20 = vadd.f32 %v794_v11, %v793_v3  ;;  %v993_v5 = vrot.slane %v992_v44, 2 }
 0x172   :  { %v796_v21 = vrot.slane %v795_v20, 1  ;;  %v994_v0 = vadd.f32 %v993_v5, %v992_v44 }
 0x174   :  { %v797_v13 = vadd.f32 %v796_v21, %v795_v20  ;;  %v995_v33 = vrot.slane %v994_v0, 1 }
 0x176   :  { %v996_v15 = vadd.f32 %v995_v33, %v994_v0  ;;  %799 = vst.msk [vmem:[%s2174_s3] sm:$0x1] %vm798_vm2, %v797_v13 }
 0x178   :  { %998 = vrot.lane.b32.xlu0 %v996_v15, %s1236_s13 }
 0x1ea   :  { %v999_v6 = vpop.permute.xlu0 %998 }
 0x1eb   :  { %1002 = vst.msk [vmem:[%s2174_s3] sm:$0x1] %vm1001_vm3, %v999_v6 }

// kernel: bottleneck_forward.7
= control target key start
LH: loop header
LB: loop body
LE: loop exit
PB: predicated region body
PF: predicated region fallthrough
CT: control target
= control target key end

     0   :  { %s1135_s12 = smov 0   ;;  %s1797_s0 = inlined_call_operand.vmem [shape: bf16[2,16,16,64], index: 0, kind: input, shape index: {}]   ;;  %s1798_s1 = inlined_call_operand.vmem [shape: f32[1,64], index: 1, kind: input, shape index: {}]   ;;  %s1799_s2 = inlined_call_operand.vmem [shape: f32[1,64], index: 2, kind: input, shape index: {}]   ;;  %s1800_s3 = inlined_call_operand.vmem [shape: bf16[2,18,18,64], index: 3, kind: output, shape index: {}]  }
   0x1 LB: > { %s924_s13 = sadd.s32 4294967295, %s1112_s12   ;;  %p928_p0 = scmp.ge.s32.totalorder %s1112_s12, 1  ;;  %s1112_s12 = sphi %s1135_s12, %s13_s12  }
   0x2   : > { %p137_p1 = scmp.lt.s32.totalorder %s1112_s12, 3 }
   0x4   : > { %p138_p2 = pnand %p928_p0, %p137_p1 }
   0x5   : > { %p161_p3 = scmp.lt.s32.totalorder (!%p138_p2), %s924_s13, 1 }
   0x6   : > { %141 = sbr.rel (%p138_p2) target bundleno = 123 (0x7b), region = 32 }
   0xb   : > { %s1808_s13 = smov (!%p161_p3, %s924_s13), 1  ;;  %vm172_vm0 = vcmask 519168   ;;  %v1114_v0 = vmov 0   ;;  %v1198_v5 = vld [vmem:[%s1798_s1] ss:$0 sm:$0xff]  ;;  %vm175_vm4 = vcmask 516096  }
   0xc   : > { %s1094_s14 = smul.u32 216, %s1808_s13  ;;  %s1014_s18 = sshll.u32 %s1808_s13, 7  ;;  %v1211_v14 = vld [vmem:[%s1799_s2] ss:$0 sm:$0xff]  ;;  %vm753_vm1 = vsmask.f32 7938 }
   0xd   : > { %s1178_s21 = scalar_lea.vmem %s1797_s0, %s1014_s18  ;;  %vm428_vm2 = vsmask.f32 256  ;;  %vm429_vm3 = vsmask.f32 4368  ;;  %vm1273_vm5 = vmand %vm172_vm0, %vm753_vm1 }
   0xe   : > { %s1146_s17 = scalar_lea.vmem %s1800_s3, %s1094_s14  ;;  %v1016_v1 = vld [vmem:[%s1178_s21] sm:$0xff]   ;;  %v1079_v2 = vld [vmem:[%s1178_s21 + $0x8] sm:$0xff]   ;;  %v1080_v3 = vld [vmem:[%s1178_s21 + $0x10] sm:$0xff]  }
   0xf   : > { %177 = vst.msk [vmem:[%s1146_s17 + $0xc] sm:$0xf] %vm172_vm0, %v1114_v0  ;;  %v1017_v4 = vunpack.c.l.bf16 %v1016_v1  ;;  %v1018_v6 = vunpack.c.h.bf16 %v1016_v1  ;;  %v1021_v7 = vunpack.c.l.bf16 %v1079_v2  ;;  %v1022_v8 = vunpack.c.h.bf16 %v1079_v2  ;;  %v1081_v9 = vld [vmem:[%s1178_s21 + $0x18] sm:$0xff]   ;;  %v1082_v38 = vld [vmem:[%s1178_s21 + $0x20] sm:$0xff]   ;;  %vm1291_vm6 = vmor %vm428_vm2, %vm429_vm3 }
  0x10   : > { %173 = vst.msk [vmem:[%s1146_s17] sm:$0xf] %vm172_vm0, %v1114_v0  ;;  %v1025_v10 = vunpack.c.l.bf16 %v1080_v3  ;;  %v1026_v11 = vunpack.c.h.bf16 %v1080_v3  ;;  %v1029_v12 = vunpack.c.l.bf16 %v1081_v9  ;;  %v1030_v21 = vunpack.c.h.bf16 %v1081_v9  ;;  %vm1406_vm7 = vmand %vm175_vm4, %vm428_vm2 }
  0x11   : > { %174 = vst.msk [vmem:[%s1146_s17 + $0x4] sm:$0xf] %vm172_vm0, %v1114_v0  ;;  %v296_v13 = vmul.f32 %v1198_v5, %v1017_v4  ;;  %v297_v15 = vmul.f32 %v1198_v5, %v1018_v6  ;;  %v298_v16 = vmul.f32 %v1198_v5, %v1021_v7  ;;  %v299_v17 = vmul.f32 %v1198_v5, %v1022_v8 }
  0x12   : > { %178 = vst.msk [vmem:[%s1146_s17 + $0x10] sm:$0xf] %vm172_vm0, %v1114_v0  ;;  %v300_v18 = vmul.f32 %v1198_v5, %v1025_v10  ;;  %v301_v19 = vmul.f32 %v1198_v5, %v1026_v11  ;;  %v302_v20 = vmul.f32 %v1198_v5, %v1029_v12  ;;  %v303_v29 = vmul.f32 %v1198_v5, %v1030_v21 }
  0x13   : > { %180 = vst.msk [vmem:[%s1146_s17 + $0x18] sm:$0xf] %vm172_vm0, %v1114_v0  ;;  %v332_v22 = vadd.f32 %v1211_v14, %v296_v13  ;;  %v333_v23 = vadd.f32 %v1211_v14, %v297_v15  ;;  %v334_v24 = vadd.f32 %v1211_v14, %v298_v16  ;;  %v335_v25 = vadd.f32 %v1211_v14, %v299_v17 }
  0x14   : > { %181 = vst.msk [vmem:[%s1146_s17 + $0x1c] sm:$0xf] %vm172_vm0, %v1114_v0  ;;  %v336_v26 = vadd.f32 %v1211_v14, %v300_v18  ;;  %v337_v27 = vadd.f32 %v1211_v14, %v301_v19  ;;  %v338_v28 = vadd.f32 %v1211_v14, %v302_v20  ;;  %v1243_v37 = vadd.f32 %v1211_v14, %v303_v29  ;;  %v1083_v19 = vld [vmem:[%s1178_s21 + $0x28] sm:$0xff]  }
  0x15   : > { %183 = vst.msk [vmem:[%s1146_s17 + $0x24] sm:$0xf] %vm172_vm0, %v1114_v0  ;;  %v364_v30 = vmax.f32 %v332_v22, 0.0  ;;  %v365_v31 = vmax.f32 %v333_v23, 0.0  ;;  %v366_v32 = vmax.f32 %v334_v24, 0.0  ;;  %v367_v33 = vmax.f32 %v335_v25, 0.0 }
  0x16   : > { %184 = vst.msk [vmem:[%s1146_s17 + $0x28] sm:$0xf] %vm172_vm0, %v1114_v0  ;;  %v368_v34 = vmax.f32 %v336_v26, 0.0  ;;  %v369_v35 = vmax.f32 %v337_v27, 0.0  ;;  %v370_v36 = vmax.f32 %v338_v28, 0.0  ;;  %v1033_v48 = vunpack.c.l.bf16 %v1082_v38 }
  0x17   : > { %186 = vst.msk [vmem:[%s1146_s17 + $0x30] sm:$0xf] %vm172_vm0, %v1114_v0  ;;  %v396_v39 = vpack.c.bf16 %v364_v30, %v364_v30  ;;  %v397_v40 = vpack.c.bf16 %v365_v31, %v365_v31  ;;  %v398_v41 = vpack.c.bf16 %v366_v32, %v366_v32  ;;  %v399_v42 = vpack.c.bf16 %v367_v33, %v367_v33  ;;  %v1263_v49 = vld [vmem:[%s1146_s17 + $0xc] sm:$0xf] }
  0x18   : > { %187 = vst.msk [vmem:[%s1146_s17 + $0x34] sm:$0xf] %vm172_vm0, %v1114_v0  ;;  %v400_v43 = vpack.c.bf16 %v368_v34, %v368_v34  ;;  %v1252_v44 = vpack.c.bf16 %v369_v35, %v369_v35  ;;  %v1254_v45 = vpack.c.bf16 %v370_v36, %v370_v36  ;;  %v1034_v52 = vunpack.c.h.bf16 %v1082_v38 }
  0x19   : > { %189 = vst.msk [vmem:[%s1146_s17 + $0x3c] sm:$0xf] %vm172_vm0, %v1114_v0  ;;  %v432_v46 = vshrl.u32 %v396_v39, 16  ;;  %v435_v47 = vshll.u32 %v396_v39, 16  ;;  %v440_v50 = vshrl.u32 %v397_v40, 16  ;;  %v443_v51 = vshll.u32 %v397_v40, 16 }
  0x1a   : > { %190 = vst.msk [vmem:[%s1146_s17 + $0x40] sm:$0xf] %vm172_vm0, %v1114_v0  ;;  %v449_v54 = vshrl.u32 %v398_v41, 16  ;;  %v452_v55 = vshll.u32 %v398_v41, 16  ;;  %v457_v56 = vshrl.u32 %v399_v42, 16  ;;  %v460_v60 = vshll.u32 %v399_v42, 16 }
  0x1b   : > { %192 = vst.msk [vmem:[%s1146_s17 + $0x48] sm:$0xf] %vm172_vm0, %v1114_v0  ;;  %v434_v53 = vrot.slane %v432_v46, 7  ;;  %v1277_v58 = vrot.slane %v440_v50, 7  ;;  %v1280_v59 = vld [vmem:[%s1146_s17 + $0x18] sm:$0xf]  ;;  %v304_v61 = vmul.f32 %v1198_v5, %v1033_v48  ;;  %v305_v62 = vmul.f32 %v1198_v5, %v1034_v52 }
  0x1c   : > { %193 = vst.msk [vmem:[%s1146_s17 + $0x4c] sm:$0xf] %vm172_vm0, %v1114_v0  ;;  %v451_v3 = vrot.slane %v449_v54, 7  ;;  %v1295_v4 = vrot.slane %v457_v56, 7  ;;  %v466_v8 = vshrl.u32 %v400_v43, 16  ;;  %v469_v9 = vshll.u32 %v400_v43, 16 }
  0x1d   : > { %195 = vst.msk [vmem:[%s1146_s17 + $0x54] sm:$0xf] %vm172_vm0, %v1114_v0  ;;  %v1287_v63 = vor.u32 %v435_v47, %v434_v53  ;;  %v438_v2 = vrot.slane %v434_v53, 4  ;;  %v445_v6 = vor.u32 %v443_v51, %v1277_v58  ;;  %v447_v7 = vrot.slane %v1277_v58, 4  ;;  %v1334_v22 = vld [vmem:[%s1146_s17 + $0x24] sm:$0xf] }
  0x1e   : > { %196 = vst.msk [vmem:[%s1146_s17 + $0x58] sm:$0xf] %vm172_vm0, %v1114_v0  ;;  %v1309_v11 = vor.u32 %v452_v55, %v451_v3  ;;  %v455_v12 = vrot.slane %v451_v3, 4  ;;  %v462_v13 = vor.u32 %v460_v60, %v1295_v4  ;;  %v464_v16 = vrot.slane %v1295_v4, 4  ;;  %v1362_v36 = vld [vmem:[%s1146_s17 + $0x30] sm:$0xf] }
  0x1f   : > { %198 = vst.msk [vmem:[%s1146_s17 + $0x60] sm:$0xf] %vm172_vm0, %v1114_v0  ;;  %v756_v10 = vsel %vm1273_vm5, %v1287_v63, %v1263_v49  ;;  %v1317_v15 = vsel %vm1291_vm6, %v438_v2, %v445_v6  ;;  %v468_v17 = vrot.slane %v466_v8, 7  ;;  %v474_v18 = vshrl.u32 %v1252_v44, 16  ;;  %v1084_v42 = vld [vmem:[%s1178_s21 + $0x30] sm:$0xff]  }
  0x20   : > { %199 = vst.msk [vmem:[%s1146_s17 + $0x64] sm:$0xf] %vm172_vm0, %v1114_v0  ;;  %v765_v20 = vsel %vm1273_vm5, %v1309_v11, %v1280_v59  ;;  %v1331_v21 = vsel %vm1291_vm6, %v455_v12, %v462_v13  ;;  %v477_v23 = vshll.u32 %v1252_v44, 16  ;;  %v483_v24 = vshrl.u32 %v1254_v45, 16 }
  0x21   : > { %201 = vst.msk [vmem:[%s1146_s17 + $0x6c] sm:$0xf] %vm172_vm0, %v1114_v0  ;;  %v1341_v25 = vor.u32 %v469_v9, %v468_v17  ;;  %v472_v26 = vrot.slane %v468_v17, 4  ;;  %v1343_v27 = vrot.slane %v474_v18, 7  ;;  %v486_v28 = vshll.u32 %v1254_v45, 16 }
  0x22   : > { %202 = vst.msk [vmem:[%s1146_s17 + $0x70] sm:$0xf] %vm172_vm0, %v1114_v0  ;;  %v485_v29 = vrot.slane %v483_v24, 7  ;;  %v371_v30 = vmax.f32 %v1243_v37, 0.0  ;;  %v340_v31 = vadd.f32 %v1211_v14, %v304_v61  ;;  %v341_v32 = vadd.f32 %v1211_v14, %v305_v62 }
  0x23   : > { %204 = vst.msk [vmem:[%s1146_s17 + $0x78] sm:$0xf] %vm172_vm0, %v1114_v0  ;;  %v772_v33 = vsel %vm1273_vm5, %v1341_v25, %v1334_v22  ;;  %v479_v34 = vor.u32 %v477_v23, %v1343_v27  ;;  %v481_v35 = vrot.slane %v1343_v27, 4  ;;  %v1037_v37 = vunpack.c.l.bf16 %v1083_v19 }
  0x24   : > { %205 = vst.msk [vmem:[%s1146_s17 + $0x7c] sm:$0xf] %vm172_vm0, %v1114_v0  ;;  %v1367_v38 = vor.u32 %v486_v28, %v485_v29  ;;  %v403_v39 = vpack.c.bf16 %v371_v30, %v371_v30  ;;  %v489_v40 = vrot.slane %v485_v29, 4  ;;  %v372_v41 = vmax.f32 %v340_v31, 0.0 }
  0x25   : > { %207 = vst.msk [vmem:[%s1146_s17 + $0x84] sm:$0xf] %vm172_vm0, %v1114_v0  ;;  %v1375_v43 = vsel %vm1291_vm6, %v472_v26, %v479_v34  ;;  %v373_v44 = vmax.f32 %v341_v32, 0.0  ;;  %v306_v45 = vmul.f32 %v1198_v5, %v1037_v37  ;;  %v1038_v46 = vunpack.c.h.bf16 %v1083_v19  ;;  %v1411_v19 = vld [vmem:[%s1146_s17 + $0x3c] sm:$0xf] }
  0x26   : > { %208 = vst.msk [vmem:[%s1146_s17 + $0x88] sm:$0xf] %vm172_vm0, %v1114_v0  ;;  %v779_v47 = vsel %vm1273_vm5, %v1367_v38, %v1362_v36  ;;  %v491_v48 = vshrl.u32 %v403_v39, 16  ;;  %v494_v50 = vshll.u32 %v403_v39, 16  ;;  %v404_v51 = vpack.c.bf16 %v372_v41, %v372_v41  ;;  %v1425_v34 = vld [vmem:[%s1178_s21 + $0x38] sm:$0xff]  }
  0x27   : > { %210 = vst.msk [vmem:[%s1146_s17 + $0x90] sm:$0xf] %vm172_vm0, %v1114_v0  ;;  %v405_v52 = vpack.c.bf16 %v373_v44, %v373_v44  ;;  %v342_v53 = vadd.f32 %v1211_v14, %v306_v45  ;;  %v307_v54 = vmul.f32 %v1198_v5, %v1038_v46  ;;  %v1041_v55 = vunpack.c.l.bf16 %v1084_v42  ;;  %v1566_v59 = vld [vmem:[%s1146_s17 + $0x60] sm:$0xf] }
  0x28   : > { %211 = vst.msk [vmem:[%s1146_s17 + $0x94] sm:$0xf] %vm172_vm0, %v1114_v0  ;;  %v493_v56 = vrot.slane %v491_v48, 7  ;;  %v500_v60 = vshrl.u32 %v404_v51, 16  ;;  %v503_v61 = vshll.u32 %v404_v51, 16  ;;  %v1042_v62 = vunpack.c.h.bf16 %v1084_v42 }
  0x29   : > { %213 = vst.msk [vmem:[%s1146_s17 + $0x9c] sm:$0xf] %vm172_vm0, %v1114_v0  ;;  %v508_v2 = vshrl.u32 %v405_v52, 16  ;;  %v511_v3 = vshll.u32 %v405_v52, 16  ;;  %v374_v6 = vmax.f32 %v342_v53, 0.0  ;;  %v343_v8 = vadd.f32 %v1211_v14, %v307_v54 }
  0x2a   : > { %214 = vst.msk [vmem:[%s1146_s17 + $0xa0] sm:$0xf] %vm172_vm0, %v1114_v0  ;;  %v496_v9 = vor.u32 %v494_v50, %v493_v56  ;;  %v498_v12 = vrot.slane %v493_v56, 4  ;;  %v502_v13 = vrot.slane %v500_v60, 7  ;;  %v308_v17 = vmul.f32 %v1198_v5, %v1041_v55  ;;  %v1445_v48 = vld [vmem:[%s1146_s17 + $0x48] sm:$0xf] }
  0x2b   : > { %216 = vst.msk [vmem:[%s1146_s17 + $0xa8] sm:$0xf] %vm172_vm0, %v1114_v0  ;;  %v510_v23 = vrot.slane %v508_v2, 7  ;;  %v406_v24 = vpack.c.bf16 %v374_v6, %v374_v6  ;;  %v375_v26 = vmax.f32 %v343_v8, 0.0  ;;  %v309_v28 = vmul.f32 %v1198_v5, %v1042_v62  ;;  %v1086_v62 = vld [vmem:[%s1178_s21 + $0x40] sm:$0xff]  }
  0x2c   : > { %217 = vst.msk [vmem:[%s1146_s17 + $0xac] sm:$0xf] %vm172_vm0, %v1114_v0  ;;  %v1419_v29 = vsel %vm1291_vm6, %v489_v40, %v496_v9  ;;  %v1421_v30 = vor.u32 %v503_v61, %v502_v13  ;;  %v506_v31 = vrot.slane %v502_v13, 4  ;;  %v344_v32 = vadd.f32 %v1211_v14, %v308_v17 }
  0x2d   : > { %219 = vst.msk [vmem:[%s1146_s17 + $0xb4] sm:$0xf] %vm172_vm0, %v1114_v0  ;;  %v513_v39 = vor.u32 %v511_v3, %v510_v23  ;;  %v515_v41 = vrot.slane %v510_v23, 4  ;;  %v517_v42 = vshrl.u32 %v406_v24, 16  ;;  %v407_v40 = vpack.c.bf16 %v375_v26, %v375_v26 }
  0x2e   : > { %220 = vst.msk [vmem:[%s1146_s17 + $0xb8] sm:$0xf] %vm172_vm0, %v1114_v0  ;;  %v786_v45 = vsel %vm1273_vm5, %v1421_v30, %v1411_v19  ;;  %v520_v46 = vshll.u32 %v406_v24, 16  ;;  %v376_v50 = vmax.f32 %v344_v32, 0.0  ;;  %v345_v53 = vadd.f32 %v1211_v14, %v309_v28  ;;  %v1632_v30 = vld [vmem:[%s1146_s17 + $0x78] sm:$0xf] }
  0x2f   : > { %222 = vst.msk [vmem:[%s1146_s17 + $0xc0] sm:$0xf] %vm172_vm0, %v1114_v0  ;;  %v519_v51 = vrot.slane %v517_v42, 7  ;;  %v525_v52 = vshrl.u32 %v407_v40, 16  ;;  %v528_v56 = vshll.u32 %v407_v40, 16  ;;  %v1045_v61 = vunpack.c.l.bf16 %v1425_v34 }
  0x30   : > { %223 = vst.msk [vmem:[%s1146_s17 + $0xc4] sm:$0xf] %vm172_vm0, %v1114_v0  ;;  %v408_v60 = vpack.c.bf16 %v376_v50, %v376_v50  ;;  %v1519_v40 = vld [vmem:[%s1146_s17 + $0x54] sm:$0xf]  ;;  %v1050_v50 = vunpack.c.h.bf16 %v1086_v62 }
  0x31   : > { %225 = vst.msk [vmem:[%s1146_s17 + $0xcc] sm:$0xf] %vm172_vm0, %v1114_v0  ;;  %v523_v3 = vrot.slane %v519_v51, 4  ;;  %v527_v6 = vrot.slane %v525_v52, 7  ;;  %v310_v13 = vmul.f32 %v1198_v5, %v1045_v61 }
  0x32   : > { %226 = vst.msk [vmem:[%s1146_s17 + $0xd0] sm:$0xf] %vm172_vm0, %v1114_v0  ;;  %v534_v9 = vshrl.u32 %v408_v60, 16 }
  0x33   : > { %179 = vst.msk [vmem:[%s1146_s17 + $0x14] sm:$0x1] %vm175_vm4, %v1114_v0  ;;  %v530_v23 = vor.u32 %v528_v56, %v527_v6  ;;  %v532_v24 = vrot.slane %v527_v6, 4  ;;  %v346_v32 = vadd.f32 %v1211_v14, %v310_v13  ;;  %v313_v56 = vmul.f32 %v1198_v5, %v1050_v50 }
  0x34   : > { %176 = vst.msk [vmem:[%s1146_s17 + $0x8] sm:$0x1] %vm175_vm4, %v1114_v0  ;;  %v536_v28 = vrot.slane %v534_v9, 7 }
  0x35   : > { %182 = vst.msk [vmem:[%s1146_s17 + $0x20] sm:$0x1] %vm175_vm4, %v1114_v0  ;;  %v378_v52 = vmax.f32 %v346_v32, 0.0  ;;  %v349_v49 = vadd.f32 %v1211_v14, %v313_v56 }
  0x36   : > { %185 = vst.msk [vmem:[%s1146_s17 + $0x2c] sm:$0x1] %vm175_vm4, %v1114_v0 }
  0x37   : > { %188 = vst.msk [vmem:[%s1146_s17 + $0x38] sm:$0x1] %vm175_vm4, %v1114_v0 }
  0x38   : > { %191 = vst.msk [vmem:[%s1146_s17 + $0x44] sm:$0x1] %vm175_vm4, %v1114_v0 }
  0x39   : > { %194 = vst.msk [vmem:[%s1146_s17 + $0x50] sm:$0x1] %vm175_vm4, %v1114_v0 }
  0x3a   : > { %197 = vst.msk [vmem:[%s1146_s17 + $0x5c] sm:$0x1] %vm175_vm4, %v1114_v0  ;;  %v935_v37 = vld [vmem:[%s1146_s17 + $0x14] sm:$0x1] }
  0x3b   : > { %200 = vst.msk [vmem:[%s1146_s17 + $0x68] sm:$0x1] %vm175_vm4, %v1114_v0  ;;  %v1438_v44 = vsel %vm1406_vm7, %v447_v7, %v935_v37  ;;  %v1453_v7 = vsel %vm1291_vm6, %v506_v31, %v513_v39  ;;  %v377_v31 = vmax.f32 %v345_v53, 0.0  ;;  %v1046_v37 = vunpack.c.h.bf16 %v1425_v34  ;;  %v1087_v39 = vld [vmem:[%s1178_s21 + $0x48] sm:$0xff]  }
  0x3c   : > { %203 = vst.msk [vmem:[%s1146_s17 + $0x74] sm:$0x1] %vm175_vm4, %v1114_v0  ;;  %v940_v58 = vld [vmem:[%s1146_s17 + $0x20] sm:$0x1]  ;;  %v1054_v13 = vunpack.c.h.bf16 %v1087_v39 }
  0x3d   : > { %206 = vst.msk [vmem:[%s1146_s17 + $0x80] sm:$0x1] %vm175_vm4, %v1114_v0  ;;  %v1463_v54 = vsel %vm1406_vm7, %v464_v16, %v940_v58  ;;  %v945_v55 = vld [vmem:[%s1146_s17 + $0x2c] sm:$0x1]  ;;  %v1478_v16 = vor.u32 %v520_v46, %v519_v51  ;;  %v1049_v46 = vunpack.c.l.bf16 %v1086_v62  ;;  %v409_v58 = vpack.c.bf16 %v377_v31, %v377_v31 }
  0x3e   : > { %209 = vst.msk [vmem:[%s1146_s17 + $0x8c] sm:$0x1] %vm175_vm4, %v1114_v0  ;;  %v1475_v2 = vsel %vm1406_vm7, %v481_v35, %v945_v55  ;;  %v950_v4 = vld [vmem:[%s1146_s17 + $0x38] sm:$0x1]  ;;  %v537_v35 = vshll.u32 %v408_v60, 16  ;;  %v540_v51 = vrot.slane %v536_v28, 4  ;;  %v311_v53 = vmul.f32 %v1198_v5, %v1046_v37 }
  0x3f   : > { %212 = vst.msk [vmem:[%s1146_s17 + $0x98] sm:$0x1] %vm175_vm4, %v1114_v0  ;;  %v1485_v8 = vsel %vm1406_vm7, %v498_v12, %v950_v4  ;;  %v955_v27 = vld [vmem:[%s1146_s17 + $0x44] sm:$0x1]  ;;  %v793_v12 = vsel %vm1273_vm5, %v1478_v16, %v1445_v48  ;;  %v312_v55 = vmul.f32 %v1198_v5, %v1049_v46  ;;  %v1053_v60 = vunpack.c.l.bf16 %v1087_v39 }
  0x40   : > { %215 = vst.msk [vmem:[%s1146_s17 + $0xa4] sm:$0x1] %vm175_vm4, %v1114_v0  ;;  %v1494_v17 = vsel %vm1406_vm7, %v515_v41, %v955_v27  ;;  %v960_v26 = vld [vmem:[%s1146_s17 + $0x50] sm:$0x1]  ;;  %v1512_v41 = vsel %vm1291_vm6, %v523_v3, %v530_v23  ;;  %v1524_v34 = vor.u32 %v537_v35, %v536_v28  ;;  %v542_v61 = vshrl.u32 %v409_v58, 16 }
  0x41   : > { %218 = vst.msk [vmem:[%s1146_s17 + $0xb0] sm:$0x1] %vm175_vm4, %v1114_v0  ;;  %v1516_v42 = vsel %vm1406_vm7, %v532_v24, %v960_v26  ;;  %v545_v62 = vshll.u32 %v409_v58, 16  ;;  %v410_v4 = vpack.c.bf16 %v378_v52, %v378_v52  ;;  %v965_v3 = vld [vmem:[%s1146_s17 + $0x5c] sm:$0x1]  ;;  %v347_v6 = vadd.f32 %v1211_v14, %v311_v53  ;;  %v1088_v58 = vld [vmem:[%s1178_s21 + $0x50] sm:$0xff]  }
  0x42   : > { %221 = vst.msk [vmem:[%s1146_s17 + $0xbc] sm:$0x1] %vm175_vm4, %v1114_v0  ;;  %v348_v27 = vadd.f32 %v1211_v14, %v312_v55  ;;  %v314_v63 = vmul.f32 %v1198_v5, %v1053_v60  ;;  %v381_v24 = vmax.f32 %v349_v49, 0.0  ;;  %v315_v32 = vmul.f32 %v1198_v5, %v1054_v13  ;;  %v1595_v53 = vld [vmem:[%s1146_s17 + $0x6c] sm:$0xf]  ;;  %v1089_v13 = vld [vmem:[%s1178_s21 + $0x58] sm:$0xff]  }
  0x43   : > { %224 = vst.msk [vmem:[%s1146_s17 + $0xc8] sm:$0x1] %vm175_vm4, %v1114_v0  ;;  %v551_v9 = vshrl.u32 %v410_v4, 16  ;;  %v554_v35 = vshll.u32 %v410_v4, 16  ;;  %v1057_v4 = vunpack.c.l.bf16 %v1088_v58  ;;  %v1058_v49 = vunpack.c.h.bf16 %v1088_v58 }
  0x44   : > { %227 = vst.msk [vmem:[%s1146_s17 + $0xd4] sm:$0x1] %vm175_vm4, %v1114_v0  ;;  %v800_v0 = vsel %vm1273_vm5, %v1524_v34, %v1519_v40  ;;  %v380_v23 = vmax.f32 %v348_v27, 0.0  ;;  %v350_v26 = vadd.f32 %v1211_v14, %v314_v63  ;;  %v413_v37 = vpack.c.bf16 %v381_v24, %v381_v24 }
  0x45   : > { %933 = vst [vmem:[%s1146_s17 + $0xc] sm:$0xf] %v756_v10  ;;  %v544_v10 = vrot.slane %v542_v61, 7  ;;  %v553_v31 = vrot.slane %v551_v9, 7 }
  0x46   : > { %934 = vst.msk [vmem:[%s1146_s17 + $0x10] sm:$0xf] %vm172_vm0, %v1317_v15  ;;  %v379_v15 = vmax.f32 %v347_v6, 0.0  ;;  %v382_v39 = vmax.f32 %v350_v26, 0.0  ;;  %v576_v55 = vshrl.u32 %v413_v37, 16  ;;  %v579_v56 = vshll.u32 %v413_v37, 16 }
  0x47   : > { %936 = vst [vmem:[%s1146_s17 + $0x14] sm:$0x1] %v1438_v44  ;;  %v547_v44 = vor.u32 %v545_v62, %v544_v10  ;;  %v549_v28 = vrot.slane %v544_v10, 4  ;;  %v1582_v46 = vor.u32 %v554_v35, %v553_v31  ;;  %v557_v50 = vrot.slane %v553_v31, 4  ;;  %v975_v10 = vld [vmem:[%s1146_s17 + $0x74] sm:$0x1] }
  0x48   : > { %938 = vst [vmem:[%s1146_s17 + $0x18] sm:$0xf] %v765_v20  ;;  %v411_v11 = vpack.c.bf16 %v379_v15, %v379_v15  ;;  %v412_v20 = vpack.c.bf16 %v380_v23, %v380_v23  ;;  %v414_v60 = vpack.c.bf16 %v382_v39, %v382_v39  ;;  %v351_v62 = vadd.f32 %v1211_v14, %v315_v32 }
  0x49   : > { %939 = vst.msk [vmem:[%s1146_s17 + $0x1c] sm:$0xf] %vm172_vm0, %v1331_v21  ;;  %v1576_v21 = vsel %vm1291_vm6, %v540_v51, %v547_v44  ;;  %v807_v51 = vsel %vm1273_vm5, %v1582_v46, %v1566_v59  ;;  %v317_v32 = vmul.f32 %v1198_v5, %v1058_v49  ;;  %v1062_v37 = vunpack.c.h.bf16 %v1089_v13 }
  0x4a   : > { %941 = vst [vmem:[%s1146_s17 + $0x20] sm:$0x1] %v1463_v54  ;;  %v1580_v54 = vsel %vm1406_vm7, %v549_v28, %v965_v3  ;;  %v559_v52 = vshrl.u32 %v411_v11, 16  ;;  %v562_v22 = vshll.u32 %v411_v11, 16  ;;  %v568_v25 = vshrl.u32 %v412_v20, 16  ;;  %v1090_v28 = vld [vmem:[%s1178_s21 + $0x60] sm:$0xff]  }
  0x4b   : > { %943 = vst [vmem:[%s1146_s17 + $0x24] sm:$0xf] %v772_v33  ;;  %v571_v33 = vshll.u32 %v412_v20, 16  ;;  %v578_v3 = vrot.slane %v576_v55, 7  ;;  %v585_v6 = vshrl.u32 %v414_v60, 16  ;;  %v588_v27 = vshll.u32 %v414_v60, 16 }
  0x4c   : > { %944 = vst.msk [vmem:[%s1146_s17 + $0x28] sm:$0xf] %vm172_vm0, %v1375_v43  ;;  %v561_v43 = vrot.slane %v559_v52, 7  ;;  %v570_v61 = vrot.slane %v568_v25, 7  ;;  %v1061_v11 = vunpack.c.l.bf16 %v1089_v13  ;;  %v1653_v20 = vld [vmem:[%s1178_s21 + $0x68] sm:$0xff]   ;;  %v1065_v52 = vunpack.c.l.bf16 %v1090_v28 }
  0x4d   : > { %946 = vst [vmem:[%s1146_s17 + $0x2c] sm:$0x1] %v1475_v2  ;;  %v970_v2 = vld [vmem:[%s1146_s17 + $0x68] sm:$0x1]  ;;  %v583_v9 = vrot.slane %v578_v3, 4  ;;  %v587_v35 = vrot.slane %v585_v6, 7  ;;  %v1066_v25 = vunpack.c.h.bf16 %v1090_v28 }
  0x4e   : > { %948 = vst [vmem:[%s1146_s17 + $0x30] sm:$0xf] %v779_v47  ;;  %v564_v36 = vor.u32 %v562_v22, %v561_v43  ;;  %v566_v38 = vrot.slane %v561_v43, 4  ;;  %v1610_v47 = vor.u32 %v571_v33, %v570_v61  ;;  %v574_v63 = vrot.slane %v570_v61, 4  ;;  %v980_v33 = vld [vmem:[%s1146_s17 + $0x80] sm:$0x1] }
  0x4f   : > { %949 = vst.msk [vmem:[%s1146_s17 + $0x34] sm:$0xf] %vm172_vm0, %v1419_v29  ;;  %v581_v29 = vor.u32 %v579_v56, %v578_v3  ;;  %v818_v24 = vsel %vm1406_vm7, %v583_v9, %v975_v10  ;;  %v1641_v26 = vor.u32 %v588_v27, %v587_v35  ;;  %v591_v31 = vrot.slane %v587_v35, 4  ;;  %v982_v3 = vld [vmem:[%s1146_s17 + $0x84] sm:$0xf]  ;;  %v1092_v28 = vld [vmem:[%s1178_s21 + $0x70] sm:$0xff]  }
  0x50   : > { %951 = vst [vmem:[%s1146_s17 + $0x38] sm:$0x1] %v1485_v8  ;;  %v383_v8 = vmax.f32 %v351_v62, 0.0  ;;  %v565_v15 = vsel %vm1291_vm6, %v557_v50, %v564_v36  ;;  %v811_v23 = vsel %vm1406_vm7, %v566_v38, %v970_v2  ;;  %v814_v19 = vsel %vm1273_vm5, %v1610_v47, %v1595_v53  ;;  %v985_v36 = vld [vmem:[%s1146_s17 + $0x8c] sm:$0x1] }
  0x51   : > { %953 = vst [vmem:[%s1146_s17 + $0x3c] sm:$0xf] %v786_v45  ;;  %v316_v45 = vmul.f32 %v1198_v5, %v1057_v4  ;;  %v821_v48 = vsel %vm1273_vm5, %v1641_v26, %v1632_v30  ;;  %v353_v50 = vadd.f32 %v1211_v14, %v317_v32  ;;  %v318_v58 = vmul.f32 %v1198_v5, %v1061_v11 }
  0x52   : > { %954 = vst.msk [vmem:[%s1146_s17 + $0x40] sm:$0xf] %vm172_vm0, %v1453_v7  ;;  %v582_v7 = vsel %vm1291_vm6, %v574_v63, %v581_v29  ;;  %v415_v44 = vpack.c.bf16 %v383_v8, %v383_v8  ;;  %v319_v22 = vmul.f32 %v1198_v5, %v1062_v37  ;;  %v320_v40 = vmul.f32 %v1198_v5, %v1065_v52  ;;  %v990_v37 = vld [vmem:[%s1146_s17 + $0x98] sm:$0x1] }
  0x53   : > { %956 = vst [vmem:[%s1146_s17 + $0x44] sm:$0x1] %v1494_v17  ;;  %v352_v17 = vadd.f32 %v1211_v14, %v316_v45  ;;  %v385_v55 = vmax.f32 %v353_v50, 0.0  ;;  %v354_v56 = vadd.f32 %v1211_v14, %v318_v58  ;;  %v321_v43 = vmul.f32 %v1198_v5, %v1066_v25 }
  0x54   : > { %958 = vst [vmem:[%s1146_s17 + $0x48] sm:$0xf] %v793_v12  ;;  %v593_v16 = vshrl.u32 %v415_v44, 16  ;;  %v596_v12 = vshll.u32 %v415_v44, 16  ;;  %v355_v60 = vadd.f32 %v1211_v14, %v319_v22  ;;  %v356_v59 = vadd.f32 %v1211_v14, %v320_v40  ;;  %v992_v22 = vld [vmem:[%s1146_s17 + $0x9c] sm:$0xf] }
  0x55   : > { %959 = vst.msk [vmem:[%s1146_s17 + $0x4c] sm:$0xf] %vm172_vm0, %v1512_v41  ;;  %v384_v39 = vmax.f32 %v352_v17, 0.0  ;;  %v417_v61 = vpack.c.bf16 %v385_v55, %v385_v55  ;;  %v386_v62 = vmax.f32 %v354_v56, 0.0  ;;  %v357_v63 = vadd.f32 %v1211_v14, %v321_v43 }
  0x56   : > { %961 = vst [vmem:[%s1146_s17 + $0x50] sm:$0x1] %v1516_v42  ;;  %v595_v41 = vrot.slane %v593_v16, 7  ;;  %v1069_v42 = vunpack.c.l.bf16 %v1653_v20  ;;  %v387_v6 = vmax.f32 %v355_v60, 0.0  ;;  %v388_v47 = vmax.f32 %v356_v59, 0.0 }
  0x57   : > { %963 = vst [vmem:[%s1146_s17 + $0x54] sm:$0xf] %v800_v0  ;;  %v416_v53 = vpack.c.bf16 %v384_v39, %v384_v39  ;;  %v613_v27 = vshll.u32 %v417_v61, 16  ;;  %v418_v49 = vpack.c.bf16 %v386_v62, %v386_v62  ;;  %v389_v32 = vmax.f32 %v357_v63, 0.0  ;;  %v995_v59 = vld [vmem:[%s1146_s17 + $0xa4] sm:$0x1] }
  0x58   : > { %964 = vst.msk [vmem:[%s1146_s17 + $0x58] sm:$0xf] %vm172_vm0, %v1576_v21  ;;  %v598_v34 = vor.u32 %v596_v12, %v595_v41  ;;  %v600_v0 = vrot.slane %v595_v41, 4  ;;  %v419_v38 = vpack.c.bf16 %v387_v6, %v387_v6  ;;  %v322_v10 = vmul.f32 %v1198_v5, %v1069_v42 }
  0x59   : > { %966 = vst [vmem:[%s1146_s17 + $0x5c] sm:$0x1] %v1580_v54  ;;  %v602_v21 = vshrl.u32 %v416_v53, 16  ;;  %v605_v2 = vshll.u32 %v416_v53, 16  ;;  %v619_v8 = vshrl.u32 %v418_v49, 16  ;;  %v622_v13 = vshll.u32 %v418_v49, 16 }
  0x5a   : > { %968 = vst [vmem:[%s1146_s17 + $0x60] sm:$0xf] %v807_v51  ;;  %v599_v54 = vsel %vm1291_vm6, %v591_v31, %v598_v34  ;;  %v825_v4 = vsel %vm1406_vm7, %v600_v0, %v980_v33  ;;  %v610_v51 = vshrl.u32 %v417_v61, 16  ;;  %v420_v30 = vpack.c.bf16 %v388_v47, %v388_v47  ;;  %v1093_v53 = vld [vmem:[%s1178_s21 + $0x78] sm:$0xff]  }
  0x5b   : > { %969 = vst.msk [vmem:[%s1146_s17 + $0x64] sm:$0xf] %vm172_vm0, %v565_v15  ;;  %v604_v46 = vrot.slane %v602_v21, 7  ;;  %v987_v15 = vld [vmem:[%s1146_s17 + $0x90] sm:$0xf]  ;;  %v621_v44 = vrot.slane %v619_v8, 7  ;;  %v421_v52 = vpack.c.bf16 %v389_v32, %v389_v32  ;;  %v358_v25 = vadd.f32 %v1211_v14, %v322_v10 }
  0x5c   : > { %971 = vst [vmem:[%s1146_s17 + $0x68] sm:$0x1] %v811_v23  ;;  %v612_v35 = vrot.slane %v610_v51, 7  ;;  %v627_v23 = vshrl.u32 %v419_v38, 16  ;;  %v636_v31 = vshrl.u32 %v420_v30, 16  ;;  %v639_v17 = vshll.u32 %v420_v30, 16 }
  0x5d   : > { %973 = vst [vmem:[%s1146_s17 + $0x6c] sm:$0xf] %v814_v19  ;;  %v607_v29 = vor.u32 %v605_v2, %v604_v46  ;;  %v608_v9 = vrot.slane %v604_v46, 4  ;;  %v630_v19 = vshll.u32 %v419_v38, 16  ;;  %v624_v16 = vor.u32 %v622_v13, %v621_v44  ;;  %v1000_v32 = vld [vmem:[%s1146_s17 + $0xb0] sm:$0x1] }
  0x5e   : > { %974 = vst.msk [vmem:[%s1146_s17 + $0x70] sm:$0xf] %vm172_vm0, %v582_v7  ;;  %v615_v7 = vor.u32 %v613_v27, %v612_v35  ;;  %v617_v26 = vrot.slane %v612_v35, 4  ;;  %v625_v12 = vrot.slane %v621_v44, 4  ;;  %v638_v58 = vrot.slane %v636_v31, 7 }
  0x5f   : > { %976 = vst [vmem:[%s1146_s17 + $0x74] sm:$0x1] %v818_v24  ;;  %v828_v45 = vsel %vm1273_vm5, %v607_v29, %v982_v3  ;;  %v629_v24 = vrot.slane %v627_v23, 7  ;;  %v835_v41 = vsel %vm1273_vm5, %v624_v16, %v987_v15  ;;  %v1070_v42 = vunpack.c.h.bf16 %v1653_v20  ;;  %v997_v23 = vld [vmem:[%s1146_s17 + $0xa8] sm:$0xf] }
  0x60   : > { %978 = vst [vmem:[%s1146_s17 + $0x78] sm:$0xf] %v821_v48  ;;  %v616_v11 = vsel %vm1291_vm6, %v608_v9, %v615_v7  ;;  %v832_v48 = vsel %vm1406_vm7, %v617_v26, %v985_v36  ;;  %v1073_v33 = vunpack.c.l.bf16 %v1092_v28  ;;  %v641_v40 = vor.u32 %v639_v17, %v638_v58 }
  0x61   : > { %979 = vst.msk [vmem:[%s1146_s17 + $0x7c] sm:$0xf] %vm172_vm0, %v599_v54  ;;  %v632_v39 = vor.u32 %v630_v19, %v629_v24  ;;  %v634_v50 = vrot.slane %v629_v24, 4  ;;  %v642_v34 = vrot.slane %v638_v58, 4  ;;  %v644_v0 = vshrl.u32 %v421_v52, 16 }
  0x62   : > { %981 = vst [vmem:[%s1146_s17 + $0x80] sm:$0x1] %v825_v4  ;;  %v647_v60 = vshll.u32 %v421_v52, 16  ;;  %v390_v43 = vmax.f32 %v358_v25, 0.0  ;;  %v323_v20 = vmul.f32 %v1198_v5, %v1070_v42  ;;  %v842_v21 = vsel %vm1273_vm5, %v641_v40, %v992_v22 }
  0x63   : > { %983 = vst [vmem:[%s1146_s17 + $0x84] sm:$0xf] %v828_v45  ;;  %v633_v55 = vsel %vm1291_vm6, %v625_v12, %v632_v39  ;;  %v839_v56 = vsel %vm1406_vm7, %v634_v50, %v990_v37  ;;  %v324_v2 = vmul.f32 %v1198_v5, %v1073_v33  ;;  %v1074_v61 = vunpack.c.h.bf16 %v1092_v28  ;;  %v1002_v50 = vld [vmem:[%s1146_s17 + $0xb4] sm:$0xf] }
  0x64   : > { %984 = vst.msk [vmem:[%s1146_s17 + $0x88] sm:$0xf] %vm172_vm0, %v616_v11  ;;  %v1077_v62 = vunpack.c.l.bf16 %v1093_v53  ;;  %v646_v54 = vrot.slane %v644_v0, 7  ;;  %v422_v4 = vpack.c.bf16 %v390_v43, %v390_v43  ;;  %v359_v3 = vadd.f32 %v1211_v14, %v323_v20  ;;  %v1007_v43 = vld [vmem:[%s1146_s17 + $0xc0] sm:$0xf] }
  0x65   : > { %986 = vst [vmem:[%s1146_s17 + $0x8c] sm:$0x1] %v832_v48  ;;  %v1078_v6 = vunpack.c.h.bf16 %v1093_v53  ;;  %v360_v46 = vadd.f32 %v1211_v14, %v324_v2  ;;  %v325_v51 = vmul.f32 %v1198_v5, %v1074_v61 }
  0x66   : > { %988 = vst [vmem:[%s1146_s17 + $0x90] sm:$0xf] %v835_v41  ;;  %v326_v27 = vmul.f32 %v1198_v5, %v1077_v62  ;;  %v649_v49 = vor.u32 %v647_v60, %v646_v54  ;;  %v651_v36 = vrot.slane %v646_v54, 4  ;;  %v653_v38 = vshrl.u32 %v422_v4, 16  ;;  %v1005_v60 = vld [vmem:[%s1146_s17 + $0xbc] sm:$0x1] }
  0x67   : > { %989 = vst.msk [vmem:[%s1146_s17 + $0x94] sm:$0xf] %vm172_vm0, %v633_v55  ;;  %v656_v47 = vshll.u32 %v422_v4, 16  ;;  %v391_v63 = vmax.f32 %v359_v3, 0.0  ;;  %v392_v10 = vmax.f32 %v360_v46, 0.0  ;;  %v361_v29 = vadd.f32 %v1211_v14, %v325_v51 }
  0x68   : > { %991 = vst [vmem:[%s1146_s17 + $0x98] sm:$0x1] %v839_v56  ;;  %v362_v9 = vadd.f32 %v1211_v14, %v326_v27  ;;  %v650_v35 = vsel %vm1291_vm6, %v642_v34, %v649_v49  ;;  %v846_v8 = vsel %vm1406_vm7, %v651_v36, %v995_v59  ;;  %v655_v13 = vrot.slane %v653_v38, 7  ;;  %v1010_v46 = vld [vmem:[%s1146_s17 + $0xc8] sm:$0x1] }
  0x69   : > { %993 = vst [vmem:[%s1146_s17 + $0x9c] sm:$0xf] %v842_v21  ;;  %v327_v15 = vmul.f32 %v1198_v5, %v1078_v6  ;;  %v423_v19 = vpack.c.bf16 %v391_v63, %v391_v63  ;;  %v424_v30 = vpack.c.bf16 %v392_v10, %v392_v10  ;;  %v393_v45 = vmax.f32 %v361_v29, 0.0 }
  0x6a   : > { %994 = vst.msk [vmem:[%s1146_s17 + $0xa0] sm:$0xf] %vm172_vm0, %v650_v35  ;;  %v394_v7 = vmax.f32 %v362_v9, 0.0  ;;  %v658_v26 = vor.u32 %v656_v47, %v655_v13  ;;  %v659_v12 = vrot.slane %v655_v13, 4 }
  0x6b   : > { %996 = vst [vmem:[%s1146_s17 + $0xa4] sm:$0x1] %v846_v8  ;;  %v363_v44 = vadd.f32 %v1211_v14, %v327_v15  ;;  %v661_v28 = vshrl.u32 %v423_v19, 16  ;;  %v664_v24 = vshll.u32 %v423_v19, 16  ;;  %v670_v31 = vshrl.u32 %v424_v30, 16 }
  0x6c   : > { %v673_v17 = vshll.u32 %v424_v30, 16  ;;  %v849_v5 = vsel %vm1273_vm5, %v658_v26, %v997_v23  ;;  %v425_v11 = vpack.c.bf16 %v393_v45, %v393_v45  ;;  %v426_v48 = vpack.c.bf16 %v394_v7, %v394_v7 }
  0x6d   : > { %v395_v16 = vmax.f32 %v363_v44, 0.0  ;;  %998 = vst [vmem:[%s1146_s17 + $0xa8] sm:$0xf] %v849_v5  ;;  %v663_v37 = vrot.slane %v661_v28, 7  ;;  %v672_v39 = vrot.slane %v670_v31, 7 }
  0x6e   : > { %v678_v58 = vshrl.u32 %v425_v11, 16  ;;  %v681_v14 = vshll.u32 %v425_v11, 16  ;;  %v687_v52 = vshrl.u32 %v426_v48, 16  ;;  %v690_v41 = vshll.u32 %v426_v48, 16 }
  0x6f   : > { %v666_v22 = vor.u32 %v664_v24, %v663_v37  ;;  %v668_v25 = vrot.slane %v663_v37, 4  ;;  %v675_v42 = vor.u32 %v673_v17, %v672_v39  ;;  %v676_v33 = vrot.slane %v672_v39, 4 }
  0x70   : > { %v680_v53 = vrot.slane %v678_v58, 7  ;;  %v689_v55 = vrot.slane %v687_v52, 7  ;;  %v427_v56 = vpack.c.bf16 %v395_v16, %v395_v16 }
  0x71   : > { %v667_v40 = vsel %vm1291_vm6, %v659_v12, %v666_v22  ;;  %v853_v34 = vsel %vm1406_vm7, %v668_v25, %v1000_v32  ;;  %v856_v0 = vsel %vm1273_vm5, %v675_v42, %v1002_v50 }
  0x72   : > { %999 = vst.msk [vmem:[%s1146_s17 + $0xac] sm:$0xf] %vm172_vm0, %v667_v40  ;;  %v683_v20 = vor.u32 %v681_v14, %v680_v53  ;;  %v685_v21 = vrot.slane %v680_v53, 4  ;;  %v692_v2 = vor.u32 %v690_v41, %v689_v55  ;;  %v695_v61 = vshrl.u32 %v427_v56, 16 }
  0x73   : > { %1001 = vst [vmem:[%s1146_s17 + $0xb0] sm:$0x1] %v853_v34  ;;  %v698_v62 = vshll.u32 %v427_v56, 16  ;;  %v693_v6 = vrot.slane %v689_v55, 4 }
  0x74   : > { %1003 = vst [vmem:[%s1146_s17 + $0xb4] sm:$0xf] %v856_v0  ;;  %v684_v54 = vsel %vm1291_vm6, %v676_v33, %v683_v20  ;;  %v860_v4 = vsel %vm1406_vm7, %v685_v21, %v1005_v60  ;;  %v863_v3 = vsel %vm1273_vm5, %v692_v2, %v1007_v43  ;;  %v697_v59 = vrot.slane %v695_v61, 7 }
  0x75   : > { %1004 = vst.msk [vmem:[%s1146_s17 + $0xb8] sm:$0xf] %vm172_vm0, %v684_v54 }
  0x76   : > { %1006 = vst [vmem:[%s1146_s17 + $0xbc] sm:$0x1] %v860_v4  ;;  %v700_v51 = vor.u32 %v698_v62, %v697_v59  ;;  %v702_v27 = vrot.slane %v697_v59, 4 }
  0x77   : > { %1008 = vst [vmem:[%s1146_s17 + $0xc0] sm:$0xf] %v863_v3 }
  0x78   : > { %v701_v49 = vsel %vm1291_vm6, %v693_v6, %v700_v51  ;;  %v867_v36 = vsel %vm1406_vm7, %v702_v27, %v1010_v46 }
  0x79   : > { %1009 = vst.msk [vmem:[%s1146_s17 + $0xc4] sm:$0xf] %vm172_vm0, %v701_v49 }
  0x7a   : > { %1011 = vst [vmem:[%s1146_s17 + $0xc8] sm:$0x1] %v867_v36 }
  0x7b PF: > { %s13_s12 = sadd.s32 1, %s1112_s12  }
  0x7c   : > { %p10_p4 = scmp.ge.s32.totalorder %s13_s12, 4  }
  0x7e   :  { %12 = sbr.rel (!%p10_p4) target bundleno = 1 (0x1), region = 63 }

// kernel: bottleneck_forward.9
= control target key start
LH: loop header
LB: loop body
LE: loop exit
PB: predicated region body
PF: predicated region fallthrough
CT: control target
= control target key end

     0   :  { %vm148_vm0 = vcmask 523264   ;;  %s606_s3 = inlined_call_operand.vmem [shape: bf16[64,128], index: 3, kind: input, shape index: {}]   ;;  %s607_s0 = inlined_call_operand.vmem [shape: bf16[128,64], index: 0, kind: input, shape index: {}]   ;;  %s608_s1 = inlined_call_operand.vmem [shape: f32[1,64], index: 1, kind: input, shape index: {}]   ;;  %s609_s2 = inlined_call_operand.vmem [shape: f32[1,64], index: 2, kind: input, shape index: {}]   ;;  %s610_s4 = inlined_call_operand.vmem [shape: bf16[128,128], index: 4, kind: output, shape index: {0}]   ;;  %s611_s5 = inlined_call_operand.vmem [shape: f32[1,1,256], index: 5, kind: output, shape index: {1}]  }
   0x1   :  { %v353_v0 = vld [vmem:[%s606_s3 + $0x18] sm:$0xff]  ;;  %v352_v1 = vld [vmem:[%s606_s3 + $0x10] sm:$0xff]  ;;  %v355_v2 = vld [vmem:[%s607_s0] sm:$0xff]  }
   0x2   :  { %177 = vmatpush.bf16.msra.mxu0 %v353_v0  ;;  %440 = vmatpush.bf16.msra.mxu1 %v353_v0  ;;  %v356_v3 = vunpack.c.l.bf16 %v355_v2  ;;  %v357_v4 = vunpack.c.h.bf16 %v355_v2  ;;  %v496_v5 = vld [vmem:[%s608_s1] ss:$0 sm:$0xff]  ;;  %v427_v7 = vld [vmem:[%s607_s0 + $0x10] sm:$0xff]   ;;  %v351_v18 = vld [vmem:[%s606_s3 + $0x8] sm:$0xff] }
   0x3   :  { %v501_v6 = vld [vmem:[%s609_s2] ss:$0 sm:$0xff]  ;;  %441 = vmatpush.bf16.msra.mxu2 %v353_v0  ;;  %442 = vmatpush.bf16.msra.mxu3 %v353_v0  ;;  %v431_v9 = vld [vmem:[%s607_s0 + $0x30] sm:$0xff]   ;;  %v364_v12 = vunpack.c.l.bf16 %v427_v7  ;;  %v365_v13 = vunpack.c.h.bf16 %v427_v7  ;;  %v426_v33 = vld [vmem:[%s607_s0 + $0x8] sm:$0xff]  }
   0x4   :  { %v429_v8 = vld [vmem:[%s607_s0 + $0x20] sm:$0xff]   ;;  %v56_v10 = vmul.f32 %v496_v5, %v356_v3  ;;  %v57_v11 = vmul.f32 %v496_v5, %v357_v4  ;;  %v380_v16 = vunpack.c.l.bf16 %v431_v9  ;;  %v381_v17 = vunpack.c.h.bf16 %v431_v9  ;;  %v428_v37 = vld [vmem:[%s607_s0 + $0x18] sm:$0xff]   ;;  %v430_v42 = vld [vmem:[%s607_s0 + $0x28] sm:$0xff]  }
   0x5   :  { %v372_v14 = vunpack.c.l.bf16 %v429_v8  ;;  %v373_v15 = vunpack.c.h.bf16 %v429_v8  ;;  %v60_v21 = vmul.f32 %v496_v5, %v364_v12  ;;  %v61_v22 = vmul.f32 %v496_v5, %v365_v13  ;;  %v350_v34 = vld [vmem:[%s606_s3] sm:$0xff]  ;;  %v432_v47 = vld [vmem:[%s607_s0 + $0x38] sm:$0xff]  }
   0x6   :  { %178 = vmatpush.bf16.msra.mxu0 %v352_v1  ;;  %443 = vmatpush.bf16.msra.mxu1 %v352_v1  ;;  %v76_v19 = vadd.f32 %v501_v6, %v56_v10  ;;  %v77_v20 = vadd.f32 %v501_v6, %v57_v11  ;;  %v68_v28 = vmul.f32 %v496_v5, %v380_v16  ;;  %v360_v45 = vunpack.c.l.bf16 %v426_v33 }
   0x7   :  { %444 = vmatpush.bf16.msra.mxu2 %v352_v1  ;;  %445 = vmatpush.bf16.msra.mxu3 %v352_v1  ;;  %v64_v23 = vmul.f32 %v496_v5, %v372_v14  ;;  %v65_v24 = vmul.f32 %v496_v5, %v373_v15  ;;  %v80_v27 = vadd.f32 %v501_v6, %v60_v21  ;;  %v361_v46 = vunpack.c.h.bf16 %v426_v33 }
   0x8   :  { %v92_v25 = vmax.f32 %v76_v19, 0.0  ;;  %v93_v26 = vmax.f32 %v77_v20, 0.0  ;;  %v81_v29 = vadd.f32 %v501_v6, %v61_v22  ;;  %v69_v32 = vmul.f32 %v496_v5, %v381_v17 }
   0x9   :  { %v84_v30 = vadd.f32 %v501_v6, %v64_v23  ;;  %v85_v31 = vadd.f32 %v501_v6, %v65_v24  ;;  %v96_v35 = vmax.f32 %v80_v27, 0.0  ;;  %v88_v36 = vadd.f32 %v501_v6, %v68_v28 }
   0xa   :  { %179 = vmatpush.bf16.msra.mxu0 %v351_v18  ;;  %446 = vmatpush.bf16.msra.mxu1 %v351_v18  ;;  %v97_v38 = vmax.f32 %v81_v29, 0.0  ;;  %v89_v41 = vadd.f32 %v501_v6, %v69_v32  ;;  %v108_v43 = vpack.c.bf16 %v93_v26, %v92_v25  ;;  %v368_v50 = vunpack.c.l.bf16 %v428_v37 }
   0xb   :  { %447 = vmatpush.bf16.msra.mxu2 %v351_v18  ;;  %v100_v39 = vmax.f32 %v84_v30, 0.0  ;;  %v101_v40 = vmax.f32 %v85_v31, 0.0  ;;  %448 = vmatpush.bf16.msra.mxu3 %v351_v18  ;;  %v104_v44 = vmax.f32 %v88_v36, 0.0  ;;  %v369_v51 = vunpack.c.h.bf16 %v428_v37 }
   0xc   :  { %v110_v48 = vpack.c.bf16 %v97_v38, %v96_v35  ;;  %v105_v49 = vmax.f32 %v89_v41, 0.0  ;;  %v376_v53 = vunpack.c.l.bf16 %v430_v42  ;;  %v377_v55 = vunpack.c.h.bf16 %v430_v42 }
   0xd   :  { %v112_v52 = vpack.c.bf16 %v101_v40, %v100_v39  ;;  %v384_v56 = vunpack.c.l.bf16 %v432_v47  ;;  %v58_v57 = vmul.f32 %v496_v5, %v360_v45  ;;  %v59_v58 = vmul.f32 %v496_v5, %v361_v46 }
   0xe   :  { %180 = vmatpush.bf16.msra.mxu0 %v350_v34  ;;  %449 = vmatpush.bf16.msra.mxu1 %v350_v34  ;;  %v114_v54 = vpack.c.bf16 %v105_v49, %v104_v44  ;;  %v385_v59 = vunpack.c.h.bf16 %v432_v47  ;;  %v62_v60 = vmul.f32 %v496_v5, %v368_v50  ;;  %v63_v61 = vmul.f32 %v496_v5, %v369_v51 }
   0xf   :  { %450 = vmatpush.bf16.msra.mxu2 %v350_v34  ;;  %451 = vmatpush.bf16.msra.mxu3 %v350_v34  ;;  %v66_v62 = vmul.f32 %v496_v5, %v376_v53  ;;  %v67_v63 = vmul.f32 %v496_v5, %v377_v55  ;;  %v70_v0 = vmul.f32 %v496_v5, %v384_v56 }
  0x10   :  { %v71_v1 = vmul.f32 %v496_v5, %v385_v59  ;;  %v78_v2 = vadd.f32 %v501_v6, %v58_v57  ;;  %v79_v3 = vadd.f32 %v501_v6, %v59_v58  ;;  %v82_v4 = vadd.f32 %v501_v6, %v62_v60 }
  0x11   :  { %342 = vmatmul.msk.bf16.vlgmr.msra.gmra.mxu0 %vm148_vm0, %v108_v43  ;;  %344 = vmatmul.msk.bf16.vlgmr.msra.gmra.mxu1 %vm148_vm0, %v110_v48  ;;  %v83_v7 = vadd.f32 %v501_v6, %v63_v61  ;;  %v86_v8 = vadd.f32 %v501_v6, %v66_v62  ;;  %v87_v9 = vadd.f32 %v501_v6, %v67_v63 }
  0x12   :  { %346 = vmatmul.msk.bf16.vlgmr.msra.gmra.mxu2 %vm148_vm0, %v112_v52  ;;  %348 = vmatmul.msk.bf16.vlgmr.msra.gmra.mxu3 %vm148_vm0, %v114_v54  ;;  %v90_v10 = vadd.f32 %v501_v6, %v70_v0  ;;  %v91_v11 = vadd.f32 %v501_v6, %v71_v1  ;;  %v94_v12 = vmax.f32 %v78_v2, 0.0  ;;  %v95_v13 = vmax.f32 %v79_v3, 0.0 }
  0x13   :  { %v98_v14 = vmax.f32 %v82_v4, 0.0  ;;  %v99_v5 = vmax.f32 %v83_v7, 0.0  ;;  %v102_v15 = vmax.f32 %v86_v8, 0.0  ;;  %v103_v16 = vmax.f32 %v87_v9, 0.0 }
  0x14   :  { %v106_v17 = vmax.f32 %v90_v10, 0.0  ;;  %v107_v18 = vmax.f32 %v91_v11, 0.0  ;;  %v109_v19 = vpack.c.bf16 %v95_v13, %v94_v12 }
  0x15   :  { %v111_v20 = vpack.c.bf16 %v99_v5, %v98_v14  ;;  %v113_v21 = vpack.c.bf16 %v103_v16, %v102_v15 }
  0x16   :  { %v115_v22 = vpack.c.bf16 %v107_v18, %v106_v17 }
  0x21   :  { %343 = vmatmul.msk.bf16.gmra.mxu0 %vm148_vm0, %v109_v19  ;;  %345 = vmatmul.msk.bf16.gmra.mxu1 %vm148_vm0, %v111_v20 }
  0x22   :  { %347 = vmatmul.msk.bf16.gmra.mxu2 %vm148_vm0, %v113_v21  ;;  %349 = vmatmul.msk.bf16.gmra.mxu3 %vm148_vm0, %v115_v22 }
  0x8e   :  { %v182_v6 = vpop.f32.mrf.mxu0  ;;  %v192_v23 = vpop.f32.mrf.mxu1 }
  0x8f   :  { %v280_v37 = vmul.f32 %v182_v6, %v182_v6  ;;  %v284_v51 = vmul.f32 %v192_v23, %v192_v23 }
  0x95   :  { %v202_v24 = vpop.f32.mrf.mxu2  ;;  %v570_v25 = vpop.f32.mrf.mxu3 }
  0x96   :  { %v184_v26 = vpop.f32.mrf.mxu0  ;;  %v194_v27 = vpop.f32.mrf.mxu1  ;;  %v288_v3 = vmul.f32 %v202_v24, %v202_v24  ;;  %v292_v16 = vmul.f32 %v570_v25, %v570_v25 }
  0x97   :  { %v389_v28 = vpack.c.bf16 %v184_v26, %v182_v6  ;;  %v399_v29 = vpack.c.bf16 %v194_v27, %v192_v23  ;;  %v281_v36 = vmul.f32 %v184_v26, %v184_v26  ;;  %v254_v39 = vadd.f32 %v184_v26, %v182_v6 }
  0x98   :  { %v285_v54 = vmul.f32 %v194_v27, %v194_v27 }
  0x99   :  { %390 = vst [vmem:[%s610_s4] sm:$0xff] %v389_v28   ;;  %v296_v40 = vadd.f32 %v281_v36, %v280_v37 }
  0x9a   :  { %434 = vst [vmem:[%s610_s4 + $0x10] sm:$0xff] %v399_v29  }
  0x9d   :  { %v204_v30 = vpop.f32.mrf.mxu2  ;;  %v214_v31 = vpop.f32.mrf.mxu3 }
  0x9e   :  { %v187_v32 = vpop.f32.mrf.mxu0  ;;  %v197_v33 = vpop.f32.mrf.mxu1  ;;  %v409_v34 = vpack.c.bf16 %v204_v30, %v202_v24  ;;  %v419_v35 = vpack.c.bf16 %v214_v31, %v570_v25  ;;  %v289_v8 = vmul.f32 %v204_v30, %v204_v30  ;;  %v293_v19 = vmul.f32 %v214_v31, %v214_v31 }
  0x9f   :  { %v282_v38 = vmul.f32 %v187_v32, %v187_v32  ;;  %v255_v41 = vadd.f32 %v254_v39, %v187_v32  ;;  %v286_v57 = vmul.f32 %v197_v33, %v197_v33 }
  0xa0   :  { %436 = vst [vmem:[%s610_s4 + $0x20] sm:$0xff] %v409_v34  }
  0xa1   :  { %438 = vst [vmem:[%s610_s4 + $0x30] sm:$0xff] %v419_v35   ;;  %v297_v44 = vadd.f32 %v296_v40, %v282_v38  ;;  %v275_v35 = vlaneseq }
  0xa3   :  { %vm277_vm1 = vcmp.lt.s32.totalorder %v275_v35, 128 }
  0xa5   :  { %v207_v42 = vpop.f32.mrf.mxu2  ;;  %v217_v43 = vpop.f32.mrf.mxu3 }
  0xa6   :  { %v189_v45 = vpop.f32.mrf.mxu0  ;;  %v199_v46 = vpop.f32.mrf.mxu1  ;;  %v290_v12 = vmul.f32 %v207_v42, %v207_v42  ;;  %v294_v6 = vmul.f32 %v217_v43, %v217_v43 }
  0xa7   :  { %v394_v47 = vpack.c.bf16 %v189_v45, %v187_v32  ;;  %v256_v48 = vadd.f32 %v255_v41, %v189_v45  ;;  %v283_v49 = vmul.f32 %v189_v45, %v189_v45  ;;  %v404_v50 = vpack.c.bf16 %v199_v46, %v197_v33 }
  0xa8   :  { %v287_v1 = vmul.f32 %v199_v46, %v199_v46 }
  0xa9   :  { %433 = vst [vmem:[%s610_s4 + $0x8] sm:$0xff] %v394_v47   ;;  %v257_v52 = vadd.f32 %v256_v48, %v192_v23  ;;  %v298_v53 = vadd.f32 %v297_v44, %v283_v49 }
  0xaa   :  { %435 = vst [vmem:[%s610_s4 + $0x18] sm:$0xff] %v404_v50  }
  0xab   :  { %v299_v55 = vadd.f32 %v298_v53, %v284_v51  ;;  %v258_v56 = vadd.f32 %v257_v52, %v194_v27 }
  0xad   :  { %v259_v58 = vadd.f32 %v258_v56, %v197_v33  ;;  %v300_v59 = vadd.f32 %v299_v55, %v285_v54  ;;  %v209_v60 = vpop.f32.mrf.mxu2  ;;  %v219_v61 = vpop.f32.mrf.mxu3 }
  0xae   :  { %v414_v62 = vpack.c.bf16 %v209_v60, %v207_v42  ;;  %v424_v63 = vpack.c.bf16 %v219_v61, %v217_v43  ;;  %v291_v15 = vmul.f32 %v209_v60, %v209_v60  ;;  %v295_v27 = vmul.f32 %v219_v61, %v219_v61 }
  0xaf   :  { %v260_v0 = vadd.f32 %v259_v58, %v199_v46  ;;  %v301_v2 = vadd.f32 %v300_v59, %v286_v57 }
  0xb0   :  { %437 = vst [vmem:[%s610_s4 + $0x28] sm:$0xff] %v414_v62  }
  0xb1   :  { %v261_v4 = vadd.f32 %v260_v0, %v202_v24  ;;  %v302_v7 = vadd.f32 %v301_v2, %v287_v1  ;;  %439 = vst [vmem:[%s610_s4 + $0x38] sm:$0xff] %v424_v63  }
  0xb3   :  { %v303_v9 = vadd.f32 %v302_v7, %v288_v3  ;;  %v262_v10 = vadd.f32 %v261_v4, %v204_v30 }
  0xb5   :  { %v263_v11 = vadd.f32 %v262_v10, %v207_v42  ;;  %v304_v13 = vadd.f32 %v303_v9, %v289_v8 }
  0xb7   :  { %v305_v14 = vadd.f32 %v304_v13, %v290_v12  ;;  %v264_v5 = vadd.f32 %v263_v11, %v209_v60 }
  0xb9   :  { %v265_v17 = vadd.f32 %v264_v5, %v570_v25  ;;  %v306_v18 = vadd.f32 %v305_v14, %v291_v15 }
  0xbb   :  { %v307_v20 = vadd.f32 %v306_v18, %v292_v16  ;;  %v266_v21 = vadd.f32 %v265_v17, %v214_v31 }
  0xbd   :  { %v267_v22 = vadd.f32 %v266_v21, %v217_v43  ;;  %v308_v23 = vadd.f32 %v307_v20, %v293_v19 }
  0xbf   :  { %v309_v24 = vadd.f32 %v308_v23, %v294_v6  ;;  %v268_v26 = vadd.f32 %v267_v22, %v219_v61 }
  0xc1   :  { %v269_v28 = vrot.slane %v268_v26, 4  ;;  %v310_v29 = vadd.f32 %v309_v24, %v295_v27 }
  0xc3   :  { %v270_v30 = vadd.f32 %v269_v28, %v268_v26  ;;  %v311_v32 = vrot.slane %v310_v29, 4 }
  0xc5   :  { %v271_v33 = vrot.slane %v270_v30, 2  ;;  %v312_v34 = vadd.f32 %v311_v32, %v310_v29 }
  0xc7   :  { %v272_v36 = vadd.f32 %v271_v33, %v270_v30  ;;  %v313_v37 = vrot.slane %v312_v34, 2 }
  0xc9   :  { %v273_v25 = vrot.slane %v272_v36, 1  ;;  %v314_v38 = vadd.f32 %v313_v37, %v312_v34 }
  0xcb   :  { %v274_v39 = vadd.f32 %v273_v25, %v272_v36  ;;  %v315_v31 = vrot.slane %v314_v38, 1 }
  0xcd   :  { %279 = vst.msk [vmem:[%s611_s5] sm:$0x1] %vm277_vm1, %v274_v39  ;;  %v316_v40 = vadd.f32 %v315_v31, %v314_v38 }
  0xcf   :  { %317 = vst.msk [vmem:[%s611_s5 + $0x1] sm:$0x1] %vm277_vm1, %v316_v40 }

// kernel: bottleneck_forward.10
= control target key start
LH: loop header
LB: loop body
LE: loop exit
PB: predicated region body
PF: predicated region fallthrough
CT: control target
= control target key end

     0   :  { %vm102_vm0 = vcmask 523264   ;;  %s507_s1 = inlined_call_operand.vmem [shape: bf16[64,128], index: 1, kind: input, shape index: {}]   ;;  %s508_s0 = inlined_call_operand.vmem [shape: bf16[128,64], index: 0, kind: input, shape index: {}]   ;;  %s509_s2 = inlined_call_operand.vmem [shape: bf16[128,128], index: 2, kind: output, shape index: {0}]   ;;  %s510_s3 = inlined_call_operand.vmem [shape: f32[1,1,256], index: 3, kind: output, shape index: {1}]  }
   0x1   :  { %v347_v0 = vld [vmem:[%s507_s1 + $0x18] sm:$0xff]  ;;  %v346_v1 = vld [vmem:[%s507_s1 + $0x10] sm:$0xff]  ;;  %v345_v2 = vld [vmem:[%s507_s1 + $0x8] sm:$0xff] }
   0x2   :  { %131 = vmatpush.bf16.msra.mxu0 %v347_v0  ;;  %395 = vmatpush.bf16.msra.mxu1 %v347_v0  ;;  %v344_v3 = vld [vmem:[%s507_s1] sm:$0xff]  ;;  %v338_v5 = vld [vmem:[%s508_s0 + $0x10] sm:$0xff]  ;;  %v337_v8 = vld [vmem:[%s508_s0 + $0x8] sm:$0xff] }
   0x3   :  { %396 = vmatpush.bf16.msra.mxu2 %v347_v0  ;;  %397 = vmatpush.bf16.msra.mxu3 %v347_v0  ;;  %v336_v4 = vld [vmem:[%s508_s0] sm:$0xff]  ;;  %v342_v7 = vld [vmem:[%s508_s0 + $0x30] sm:$0xff]  ;;  %v339_v9 = vld [vmem:[%s508_s0 + $0x18] sm:$0xff] }
   0x4   :  { %v340_v6 = vld [vmem:[%s508_s0 + $0x20] sm:$0xff]  ;;  %v341_v10 = vld [vmem:[%s508_s0 + $0x28] sm:$0xff]  ;;  %v343_v11 = vld [vmem:[%s508_s0 + $0x38] sm:$0xff] }
   0x6   :  { %132 = vmatpush.bf16.msra.mxu0 %v346_v1  ;;  %398 = vmatpush.bf16.msra.mxu1 %v346_v1 }
   0x7   :  { %399 = vmatpush.bf16.msra.mxu2 %v346_v1  ;;  %400 = vmatpush.bf16.msra.mxu3 %v346_v1 }
   0xa   :  { %133 = vmatpush.bf16.msra.mxu0 %v345_v2  ;;  %401 = vmatpush.bf16.msra.mxu1 %v345_v2 }
   0xb   :  { %402 = vmatpush.bf16.msra.mxu2 %v345_v2  ;;  %403 = vmatpush.bf16.msra.mxu3 %v345_v2 }
   0xe   :  { %134 = vmatpush.bf16.msra.mxu0 %v344_v3  ;;  %404 = vmatpush.bf16.msra.mxu1 %v344_v3 }
   0xf   :  { %405 = vmatpush.bf16.msra.mxu2 %v344_v3  ;;  %406 = vmatpush.bf16.msra.mxu3 %v344_v3 }
  0x11   :  { %328 = vmatmul.msk.bf16.vlgmr.msra.gmra.mxu0 %vm102_vm0, %v336_v4  ;;  %330 = vmatmul.msk.bf16.vlgmr.msra.gmra.mxu1 %vm102_vm0, %v338_v5 }
  0x12   :  { %332 = vmatmul.msk.bf16.vlgmr.msra.gmra.mxu2 %vm102_vm0, %v340_v6  ;;  %334 = vmatmul.msk.bf16.vlgmr.msra.gmra.mxu3 %vm102_vm0, %v342_v7 }
  0x21   :  { %329 = vmatmul.msk.bf16.gmra.mxu0 %vm102_vm0, %v337_v8  ;;  %331 = vmatmul.msk.bf16.gmra.mxu1 %vm102_vm0, %v339_v9 }
  0x22   :  { %333 = vmatmul.msk.bf16.gmra.mxu2 %vm102_vm0, %v341_v10  ;;  %335 = vmatmul.msk.bf16.gmra.mxu3 %vm102_vm0, %v343_v11 }
  0x8e   :  { %v136_v12 = vpop.f32.mrf.mxu0  ;;  %v146_v13 = vpop.f32.mrf.mxu1 }
  0x8f   :  { %v234_v27 = vmul.f32 %v136_v12, %v136_v12  ;;  %v238_v41 = vmul.f32 %v146_v13, %v146_v13 }
  0x95   :  { %v156_v14 = vpop.f32.mrf.mxu2  ;;  %v471_v15 = vpop.f32.mrf.mxu3 }
  0x96   :  { %v138_v16 = vpop.f32.mrf.mxu0  ;;  %v148_v17 = vpop.f32.mrf.mxu1  ;;  %v242_v57 = vmul.f32 %v156_v14, %v156_v14  ;;  %v246_v5 = vmul.f32 %v471_v15, %v471_v15 }
  0x97   :  { %v351_v18 = vpack.c.bf16 %v138_v16, %v136_v12  ;;  %v361_v19 = vpack.c.bf16 %v148_v17, %v146_v13  ;;  %v235_v26 = vmul.f32 %v138_v16, %v138_v16  ;;  %v208_v29 = vadd.f32 %v138_v16, %v136_v12 }
  0x98   :  { %v239_v44 = vmul.f32 %v148_v17, %v148_v17 }
  0x99   :  { %352 = vst [vmem:[%s509_s2] sm:$0xff] %v351_v18   ;;  %v250_v30 = vadd.f32 %v235_v26, %v234_v27 }
  0x9a   :  { %389 = vst [vmem:[%s509_s2 + $0x10] sm:$0xff] %v361_v19  }
  0x9d   :  { %v158_v20 = vpop.f32.mrf.mxu2  ;;  %v168_v21 = vpop.f32.mrf.mxu3 }
  0x9e   :  { %v141_v22 = vpop.f32.mrf.mxu0  ;;  %v151_v23 = vpop.f32.mrf.mxu1  ;;  %v371_v24 = vpack.c.bf16 %v158_v20, %v156_v14  ;;  %v381_v25 = vpack.c.bf16 %v168_v21, %v471_v15  ;;  %v243_v60 = vmul.f32 %v158_v20, %v158_v20  ;;  %v247_v8 = vmul.f32 %v168_v21, %v168_v21 }
  0x9f   :  { %v236_v28 = vmul.f32 %v141_v22, %v141_v22  ;;  %v209_v31 = vadd.f32 %v208_v29, %v141_v22  ;;  %v240_v47 = vmul.f32 %v151_v23, %v151_v23 }
  0xa0   :  { %391 = vst [vmem:[%s509_s2 + $0x20] sm:$0xff] %v371_v24  }
  0xa1   :  { %393 = vst [vmem:[%s509_s2 + $0x30] sm:$0xff] %v381_v25   ;;  %v251_v34 = vadd.f32 %v250_v30, %v236_v28  ;;  %v229_v25 = vlaneseq }
  0xa3   :  { %vm231_vm1 = vcmp.lt.s32.totalorder %v229_v25, 128 }
  0xa5   :  { %v161_v32 = vpop.f32.mrf.mxu2  ;;  %v171_v33 = vpop.f32.mrf.mxu3 }
  0xa6   :  { %v143_v35 = vpop.f32.mrf.mxu0  ;;  %v153_v36 = vpop.f32.mrf.mxu1  ;;  %v244_v0 = vmul.f32 %v161_v32, %v161_v32  ;;  %v248_v12 = vmul.f32 %v171_v33, %v171_v33 }
  0xa7   :  { %v356_v37 = vpack.c.bf16 %v143_v35, %v141_v22  ;;  %v210_v38 = vadd.f32 %v209_v31, %v143_v35  ;;  %v237_v39 = vmul.f32 %v143_v35, %v143_v35  ;;  %v366_v40 = vpack.c.bf16 %v153_v36, %v151_v23 }
  0xa8   :  { %v241_v55 = vmul.f32 %v153_v36, %v153_v36 }
  0xa9   :  { %388 = vst [vmem:[%s509_s2 + $0x8] sm:$0xff] %v356_v37   ;;  %v211_v42 = vadd.f32 %v210_v38, %v146_v13  ;;  %v252_v43 = vadd.f32 %v251_v34, %v237_v39 }
  0xaa   :  { %390 = vst [vmem:[%s509_s2 + $0x18] sm:$0xff] %v366_v40  }
  0xab   :  { %v253_v45 = vadd.f32 %v252_v43, %v238_v41  ;;  %v212_v46 = vadd.f32 %v211_v42, %v148_v17 }
  0xad   :  { %v213_v48 = vadd.f32 %v212_v46, %v151_v23  ;;  %v254_v49 = vadd.f32 %v253_v45, %v239_v44  ;;  %v163_v50 = vpop.f32.mrf.mxu2  ;;  %v173_v51 = vpop.f32.mrf.mxu3 }
  0xae   :  { %v376_v52 = vpack.c.bf16 %v163_v50, %v161_v32  ;;  %v386_v53 = vpack.c.bf16 %v173_v51, %v171_v33  ;;  %v245_v4 = vmul.f32 %v163_v50, %v163_v50  ;;  %v249_v17 = vmul.f32 %v173_v51, %v173_v51 }
  0xaf   :  { %v214_v54 = vadd.f32 %v213_v48, %v153_v36  ;;  %v255_v56 = vadd.f32 %v254_v49, %v240_v47 }
  0xb0   :  { %392 = vst [vmem:[%s509_s2 + $0x28] sm:$0xff] %v376_v52  }
  0xb1   :  { %v215_v58 = vadd.f32 %v214_v54, %v156_v14  ;;  %v256_v59 = vadd.f32 %v255_v56, %v241_v55  ;;  %394 = vst [vmem:[%s509_s2 + $0x38] sm:$0xff] %v386_v53  }
  0xb3   :  { %v257_v61 = vadd.f32 %v256_v59, %v242_v57  ;;  %v216_v62 = vadd.f32 %v215_v58, %v158_v20 }
  0xb5   :  { %v217_v63 = vadd.f32 %v216_v62, %v161_v32  ;;  %v258_v1 = vadd.f32 %v257_v61, %v243_v60 }
  0xb7   :  { %v259_v2 = vadd.f32 %v258_v1, %v244_v0  ;;  %v218_v3 = vadd.f32 %v217_v63, %v163_v50 }
  0xb9   :  { %v219_v6 = vadd.f32 %v218_v3, %v471_v15  ;;  %v260_v7 = vadd.f32 %v259_v2, %v245_v4 }
  0xbb   :  { %v261_v9 = vadd.f32 %v260_v7, %v246_v5  ;;  %v220_v10 = vadd.f32 %v219_v6, %v168_v21 }
  0xbd   :  { %v221_v11 = vadd.f32 %v220_v10, %v171_v33  ;;  %v262_v13 = vadd.f32 %v261_v9, %v247_v8 }
  0xbf   :  { %v263_v14 = vadd.f32 %v262_v13, %v248_v12  ;;  %v222_v16 = vadd.f32 %v221_v11, %v173_v51 }
  0xc1   :  { %v223_v18 = vrot.slane %v222_v16, 4  ;;  %v264_v19 = vadd.f32 %v263_v14, %v249_v17 }
  0xc3   :  { %v224_v20 = vadd.f32 %v223_v18, %v222_v16  ;;  %v265_v22 = vrot.slane %v264_v19, 4 }
  0xc5   :  { %v225_v23 = vrot.slane %v224_v20, 2  ;;  %v266_v24 = vadd.f32 %v265_v22, %v264_v19 }
  0xc7   :  { %v226_v26 = vadd.f32 %v225_v23, %v224_v20  ;;  %v267_v27 = vrot.slane %v266_v24, 2 }
  0xc9   :  { %v227_v15 = vrot.slane %v226_v26, 1  ;;  %v268_v28 = vadd.f32 %v267_v27, %v266_v24 }
  0xcb   :  { %v228_v29 = vadd.f32 %v227_v15, %v226_v26  ;;  %v269_v21 = vrot.slane %v268_v28, 1 }
  0xcd   :  { %233 = vst.msk [vmem:[%s510_s3] sm:$0x1] %vm231_vm1, %v228_v29  ;;  %v270_v30 = vadd.f32 %v269_v21, %v268_v28 }
  0xcf   :  { %271 = vst.msk [vmem:[%s510_s3 + $0x1] sm:$0x1] %vm231_vm1, %v270_v30 }

// kernel: bottleneck_forward.11
= control target key start
LH: loop header
LB: loop body
LE: loop exit
PB: predicated region body
PF: predicated region fallthrough
CT: control target
= control target key end

     0   :  { %s518_s0 = inlined_call_operand.vmem [shape: bf16[128,128], index: 0, kind: input, shape index: {}]   ;;  %s519_s1 = inlined_call_operand.vmem [shape: f32[1,128], index: 1, kind: input, shape index: {}]   ;;  %s520_s2 = inlined_call_operand.vmem [shape: f32[1,128], index: 2, kind: input, shape index: {}]   ;;  %s521_s3 = inlined_call_operand.vmem [shape: bf16[128,128], index: 3, kind: input, shape index: {}]   ;;  %s522_s4 = inlined_call_operand.vmem [shape: f32[1,128], index: 4, kind: input, shape index: {}]   ;;  %s523_s5 = inlined_call_operand.vmem [shape: f32[1,128], index: 5, kind: input, shape index: {}]   ;;  %s524_s6 = inlined_call_operand.hbm [shape: f32[128,128], index: 6, kind: output, shape index: {}]  }
   0x1   :  { %v235_v0 = vld [vmem:[%s518_s0] sm:$0xff]   ;;  %v298_v12 = vld [vmem:[%s518_s0 + $0x8] sm:$0xff]   ;;  %v299_v18 = vld [vmem:[%s518_s0 + $0x10] sm:$0xff]  }
   0x2   :  { %v389_v1 = vld [vmem:[%s519_s1] ss:$0 sm:$0xff]  ;;  %v236_v2 = vunpack.c.l.bf16 %v235_v0  ;;  %v237_v5 = vunpack.c.h.bf16 %v235_v0  ;;  %v305_v13 = vld [vmem:[%s521_s3 + $0x8] sm:$0xff]   ;;  %v240_v16 = vunpack.c.l.bf16 %v298_v12  ;;  %v306_v19 = vld [vmem:[%s521_s3 + $0x10] sm:$0xff]   ;;  %v241_v22 = vunpack.c.h.bf16 %v298_v12 }
   0x3   :  { %v394_v3 = vld [vmem:[%s520_s2] ss:$0 sm:$0xff]  ;;  %v272_v17 = vunpack.c.l.bf16 %v305_v13  ;;  %v273_v23 = vunpack.c.h.bf16 %v305_v13  ;;  %v244_v30 = vunpack.c.l.bf16 %v299_v18  ;;  %v276_v31 = vunpack.c.l.bf16 %v306_v19 }
   0x4   :  { %v267_v4 = vld [vmem:[%s521_s3] sm:$0xff]   ;;  %v60_v9 = vmul.f32 %v389_v1, %v236_v2  ;;  %v61_v11 = vmul.f32 %v389_v1, %v237_v5  ;;  %v62_v26 = vmul.f32 %v389_v1, %v240_v16  ;;  %v63_v28 = vmul.f32 %v389_v1, %v241_v22 }
   0x5   :  { %v268_v6 = vunpack.c.l.bf16 %v267_v4  ;;  %v402_v7 = vld [vmem:[%s522_s4] ss:$0 sm:$0xff]  ;;  %v269_v8 = vunpack.c.h.bf16 %v267_v4 }
   0x6   :  { %v408_v10 = vld [vmem:[%s523_s5] ss:$0 sm:$0xff]  ;;  %v80_v20 = vadd.f32 %v394_v3, %v60_v9  ;;  %v81_v21 = vadd.f32 %v394_v3, %v61_v11  ;;  %v134_v27 = vmul.f32 %v402_v7, %v272_v17  ;;  %v135_v29 = vmul.f32 %v402_v7, %v273_v23 }
   0x7   :  { %v132_v14 = vmul.f32 %v402_v7, %v268_v6  ;;  %v133_v15 = vmul.f32 %v402_v7, %v269_v8  ;;  %v82_v34 = vadd.f32 %v394_v3, %v62_v26 }
   0x8   :  { %v154_v35 = vadd.f32 %v408_v10, %v134_v27 }
   0x9   :  { %v152_v24 = vadd.f32 %v408_v10, %v132_v14  ;;  %v153_v25 = vadd.f32 %v408_v10, %v133_v15 }
   0xb   :  { %v168_v32 = vadd.f32 %v152_v24, %v80_v20  ;;  %v169_v33 = vadd.f32 %v153_v25, %v81_v21 }
   0xc   :  { %11 = vsyncpa [#allocation3], 0  ;;  %v83_v36 = vadd.f32 %v394_v3, %v63_v28  ;;  %v155_v37 = vadd.f32 %v408_v10, %v135_v29  ;;  %v64_v38 = vmul.f32 %v389_v1, %v244_v30  ;;  %v136_v39 = vmul.f32 %v402_v7, %v276_v31  ;;  %v300_v40 = vld [vmem:[%s518_s0 + $0x18] sm:$0xff]   ;;  %v301_v54 = vld [vmem:[%s518_s0 + $0x20] sm:$0xff]   ;;  %s222_s9 = sshll.u32 %s524_s6, 4  ;;  %s346_s10 = smov 128   ;;  %s223_s9 = int_to_ptr.hbm [resolvable:$true] %s222_s9 }
   0xd   :  { %v307_v41 = vld [vmem:[%s521_s3 + $0x18] sm:$0xff]   ;;  %v184_v42 = vmax.f32 %v168_v32, 0.0  ;;  %v185_v43 = vmax.f32 %v169_v33, 0.0  ;;  %v170_v44 = vadd.f32 %v154_v35, %v82_v34  ;;  %v245_v45 = vunpack.c.h.bf16 %v299_v18  ;;  %v308_v59 = vld [vmem:[%s521_s3 + $0x20] sm:$0xff]   ;;  %v302_v12 = vld [vmem:[%s518_s0 + $0x28] sm:$0xff]   ;;  %s347_s4 = smov 8  }
   0xe   :  { %v171_v46 = vadd.f32 %v155_v37, %v83_v36  ;;  %v84_v47 = vadd.f32 %v394_v3, %v64_v38  ;;  %v156_v48 = vadd.f32 %v408_v10, %v136_v39  ;;  %v277_v49 = vunpack.c.h.bf16 %v306_v19  ;;  %v309_v21 = vld [vmem:[%s521_s3 + $0x28] sm:$0xff]   ;;  %v303_v30 = vld [vmem:[%s518_s0 + $0x30] sm:$0xff]  }
   0xf   :  { %200 = vst [vmem:[#allocation2] sm:$0xff] %v184_v42  ;;  %v186_v50 = vmax.f32 %v170_v44, 0.0  ;;  %v65_v51 = vmul.f32 %v389_v1, %v245_v45  ;;  %v248_v52 = vunpack.c.l.bf16 %v300_v40  ;;  %v280_v53 = vunpack.c.l.bf16 %v307_v41  ;;  %v310_v35 = vld [vmem:[%s521_s3 + $0x30] sm:$0xff]  }
  0x10   :  { %201 = vst [vmem:[#allocation2 + $0x8] sm:$0xff] %v185_v43  ;;  %v187_v55 = vmax.f32 %v171_v46, 0.0  ;;  %v172_v56 = vadd.f32 %v156_v48, %v84_v47  ;;  %v137_v57 = vmul.f32 %v402_v7, %v277_v49  ;;  %v249_v58 = vunpack.c.h.bf16 %v300_v40  ;;  %v304_v48 = vld [vmem:[%s518_s0 + $0x38] sm:$0xff]   ;;  %s345_s0 = smov [#allocation2]  }
  0x11   :  { %202 = vst [vmem:[#allocation2 + $0x10] sm:$0xff] %v186_v50  ;;  %v85_v60 = vadd.f32 %v394_v3, %v65_v51  ;;  %v66_v61 = vmul.f32 %v389_v1, %v248_v52  ;;  %v138_v62 = vmul.f32 %v402_v7, %v280_v53  ;;  %v281_v63 = vunpack.c.h.bf16 %v307_v41  ;;  %v311_v53 = vld [vmem:[%s521_s3 + $0x38] sm:$0xff]   ;;  %s220_s3 = sshll.u32 %s345_s0, 4  ;;  %s221_s3 = int_to_ptr.vmem [resolvable:$true] %s220_s3 }
  0x12   :  { %203 = vst [vmem:[#allocation2 + $0x18] sm:$0xff] %v187_v55  ;;  %v188_v0 = vmax.f32 %v172_v56, 0.0  ;;  %v157_v2 = vadd.f32 %v408_v10, %v137_v57  ;;  %v67_v4 = vmul.f32 %v389_v1, %v249_v58  ;;  %v252_v5 = vunpack.c.l.bf16 %v301_v54 }
  0x13   :  { %v86_v6 = vadd.f32 %v394_v3, %v66_v61  ;;  %v158_v8 = vadd.f32 %v408_v10, %v138_v62  ;;  %v139_v9 = vmul.f32 %v402_v7, %v281_v63  ;;  %v284_v11 = vunpack.c.l.bf16 %v308_v59 }
  0x14   :  { %204 = vst [vmem:[#allocation2 + $0x20] sm:$0xff] %v188_v0  ;;  %v173_v13 = vadd.f32 %v157_v2, %v85_v60  ;;  %v87_v14 = vadd.f32 %v394_v3, %v67_v4  ;;  %v68_v15 = vmul.f32 %v389_v1, %v252_v5  ;;  %v253_v16 = vunpack.c.h.bf16 %v301_v54 }
  0x15   :  { %v174_v17 = vadd.f32 %v158_v8, %v86_v6  ;;  %v159_v18 = vadd.f32 %v408_v10, %v139_v9  ;;  %v140_v19 = vmul.f32 %v402_v7, %v284_v11  ;;  %v285_v20 = vunpack.c.h.bf16 %v308_v59 }
  0x16   :  { %v189_v22 = vmax.f32 %v173_v13, 0.0  ;;  %v88_v23 = vadd.f32 %v394_v3, %v68_v15  ;;  %v69_v24 = vmul.f32 %v389_v1, %v253_v16  ;;  %v256_v25 = vunpack.c.l.bf16 %v302_v12 }
  0x17   :  { %v190_v26 = vmax.f32 %v174_v17, 0.0  ;;  %v175_v27 = vadd.f32 %v159_v18, %v87_v14  ;;  %v160_v28 = vadd.f32 %v408_v10, %v140_v19  ;;  %v141_v29 = vmul.f32 %v402_v7, %v285_v20 }
  0x18   :  { %205 = vst [vmem:[#allocation2 + $0x28] sm:$0xff] %v189_v22  ;;  %v89_v31 = vadd.f32 %v394_v3, %v69_v24  ;;  %v70_v32 = vmul.f32 %v389_v1, %v256_v25  ;;  %v288_v33 = vunpack.c.l.bf16 %v309_v21  ;;  %v257_v34 = vunpack.c.h.bf16 %v302_v12 }
  0x19   :  { %206 = vst [vmem:[#allocation2 + $0x30] sm:$0xff] %v190_v26  ;;  %v191_v36 = vmax.f32 %v175_v27, 0.0  ;;  %v176_v37 = vadd.f32 %v160_v28, %v88_v23  ;;  %v161_v38 = vadd.f32 %v408_v10, %v141_v29  ;;  %v289_v39 = vunpack.c.h.bf16 %v309_v21 }
  0x1a   :  { %v90_v40 = vadd.f32 %v394_v3, %v70_v32  ;;  %v142_v41 = vmul.f32 %v402_v7, %v288_v33  ;;  %v71_v42 = vmul.f32 %v389_v1, %v257_v34  ;;  %v260_v43 = vunpack.c.l.bf16 %v303_v30 }
  0x1b   :  { %207 = vst [vmem:[#allocation2 + $0x38] sm:$0xff] %v191_v36  ;;  %v192_v44 = vmax.f32 %v176_v37, 0.0  ;;  %v177_v45 = vadd.f32 %v161_v38, %v89_v31  ;;  %v143_v46 = vmul.f32 %v402_v7, %v289_v39  ;;  %v292_v47 = vunpack.c.l.bf16 %v310_v35 }
  0x1c   :  { %v162_v49 = vadd.f32 %v408_v10, %v142_v41  ;;  %v91_v50 = vadd.f32 %v394_v3, %v71_v42  ;;  %v72_v51 = vmul.f32 %v389_v1, %v260_v43  ;;  %v261_v52 = vunpack.c.h.bf16 %v303_v30 }
  0x1d   :  { %208 = vst [vmem:[#allocation2 + $0x40] sm:$0xff] %v192_v44  ;;  %v193_v54 = vmax.f32 %v177_v45, 0.0  ;;  %v163_v55 = vadd.f32 %v408_v10, %v143_v46  ;;  %v144_v56 = vmul.f32 %v402_v7, %v292_v47  ;;  %v293_v57 = vunpack.c.h.bf16 %v310_v35 }
  0x1e   :  { %v178_v58 = vadd.f32 %v162_v49, %v90_v40  ;;  %v92_v59 = vadd.f32 %v394_v3, %v72_v51  ;;  %v73_v60 = vmul.f32 %v389_v1, %v261_v52  ;;  %v264_v61 = vunpack.c.l.bf16 %v304_v48 }
  0x1f   :  { %209 = vst [vmem:[#allocation2 + $0x48] sm:$0xff] %v193_v54  ;;  %v179_v62 = vadd.f32 %v163_v55, %v91_v50  ;;  %v164_v63 = vadd.f32 %v408_v10, %v144_v56  ;;  %v145_v0 = vmul.f32 %v402_v7, %v293_v57  ;;  %v296_v2 = vunpack.c.l.bf16 %v311_v53 }
  0x20   :  { %v194_v4 = vmax.f32 %v178_v58, 0.0  ;;  %v93_v5 = vadd.f32 %v394_v3, %v73_v60  ;;  %v74_v6 = vmul.f32 %v389_v1, %v264_v61  ;;  %v265_v8 = vunpack.c.h.bf16 %v304_v48 }
  0x21   :  { %v195_v9 = vmax.f32 %v179_v62, 0.0  ;;  %v180_v11 = vadd.f32 %v164_v63, %v92_v59  ;;  %v165_v12 = vadd.f32 %v408_v10, %v145_v0  ;;  %v146_v13 = vmul.f32 %v402_v7, %v296_v2 }
  0x22   :  { %210 = vst [vmem:[#allocation2 + $0x50] sm:$0xff] %v194_v4  ;;  %v94_v14 = vadd.f32 %v394_v3, %v74_v6  ;;  %v75_v15 = vmul.f32 %v389_v1, %v265_v8  ;;  %v297_v16 = vunpack.c.h.bf16 %v311_v53 }
  0x23   :  { %211 = vst [vmem:[#allocation2 + $0x58] sm:$0xff] %v195_v9  ;;  %v196_v17 = vmax.f32 %v180_v11, 0.0  ;;  %v181_v18 = vadd.f32 %v165_v12, %v93_v5  ;;  %v166_v19 = vadd.f32 %v408_v10, %v146_v13 }
  0x24   :  { %v95_v20 = vadd.f32 %v394_v3, %v75_v15  ;;  %v147_v21 = vmul.f32 %v402_v7, %v297_v16 }
  0x25   :  { %212 = vst [vmem:[#allocation2 + $0x60] sm:$0xff] %v196_v17  ;;  %v197_v22 = vmax.f32 %v181_v18, 0.0  ;;  %v182_v23 = vadd.f32 %v166_v19, %v94_v14 }
  0x26   :  { %v167_v24 = vadd.f32 %v408_v10, %v147_v21 }
  0x27   :  { %213 = vst [vmem:[#allocation2 + $0x68] sm:$0xff] %v197_v22  ;;  %v198_v25 = vmax.f32 %v182_v23, 0.0 }
  0x28   :  { %v183_v1 = vadd.f32 %v167_v24, %v95_v20 }
  0x29   :  { %214 = vst [vmem:[#allocation2 + $0x70] sm:$0xff] %v198_v25 }
  0x2a   :  { %v199_v26 = vmax.f32 %v183_v1, 0.0 }
  0x2c   :  { %215 = vst [vmem:[#allocation2 + $0x78] sm:$0xff] %v199_v26 }
  0x2d   :  { %228 = dma.vmem_to_hbm [thread:$0]  %s221_s3, 2048, %s223_s9, [#allocation3], %s346_s10, %s346_s10, %s347_s4  }
  0x2e   :  { %343 = dma.done.wait [#allocation3], 2048  }
  0x2f   :  { %344 = vsyncadd [#allocation3], 4294965248 }
  0x30   :  { %233 = vsyncpa [#allocation3], 1 }

// kernel: bottleneck_forward.8
= control target key start
LH: loop header
LB: loop body
LE: loop exit
PB: predicated region body
PF: predicated region fallthrough
CT: control target
= control target key end

     0   :  { %s1977_s12 = smov 0   ;;  %s2409_s0 = inlined_call_operand.vmem [shape: bf16[2,4,9,9,64], index: 0, kind: input, shape index: {}]   ;;  %s2410_s1 = inlined_call_operand.vmem [shape: bf16[576,64], index: 1, kind: input, shape index: {}]   ;;  %s2411_s2 = inlined_call_operand.vmem [shape: bf16[2,64,64], index: 2, kind: output, shape index: {0}]   ;;  %s2412_s3 = inlined_call_operand.vmem [shape: f32[2,1,128], index: 3, kind: output, shape index: {1}]  }
   0x1 LB: > { %s1555_s13 = sadd.s32 4294967295, %s1954_s12   ;;  %p1559_p0 = scmp.ge.s32.totalorder %s1954_s12, 1  ;;  %s1954_s12 = sphi %s1977_s12, %s14_s12  }
   0x2   : > { %p140_p1 = scmp.lt.s32.totalorder %s1954_s12, 3 }
   0x4   : > { %p141_p2 = pnand %p1559_p0, %p140_p1 }
   0x5   : > { %p167_p3 = scmp.lt.s32.totalorder (!%p141_p2), %s1555_s13, 1  ;;  %s1956_s18 = smov (!%p141_p2), 64  }
   0x6   : > { %144 = sbr.rel (%p141_p2) target bundleno = 481 (0x1e1), region = 28 }
   0xb   : > { %s2416_s13 = smov (!%p167_p3, %s1555_s13), 1  ;;  %vm264_vm0 = vsmask.f32 3328  ;;  %vm265_vm1 = vsmask.f32 7440  ;;  %vm189_vm3 = vcmask 519168  }
   0xc   : > { %s1938_s14 = smul.u32 288, %s2416_s13  ;;  %vm2011_vm2 = vmor %vm264_vm0, %vm265_vm1  ;;  %vm239_vm4 = vcmask 1043968   ;;  %vm1243_vm5 = vcmask 523264   ;;  %s179_s27 = scalar_lea.vmem %s2412_s3, %s2416_s13  ;;  %vm1438_vm6 = vcmask 516096   ;;  %vm1473_vm7 = vcmask 1040896  }
   0xe   : > { %s1991_s17 = scalar_lea.vmem %s2409_s0, %s1938_s14 }
   0xf   : > { %v1569_v0 = vld [vmem:[%s1991_s17 + $0x78] sm:$0xf]  ;;  %v1567_v2 = vld [vmem:[%s1991_s17 + $0x68] sm:$0xf]  ;;  %v1570_v4 = vld [vmem:[%s1991_s17 + $0x80] sm:$0xf] }
  0x10   : > { %v1565_v1 = vld [vmem:[%s1991_s17 + $0x58] sm:$0xf]  ;;  %227 = vrot.lane.b32.xlu1 %v1569_v0, %s1956_s18  ;;  %223 = vrot.lane.b32.xlu2 %v1567_v2, %s1956_s18  ;;  %v1587_v5 = vld [vmem:[%s1991_s17 + $0x90] sm:$0xf] }
  0x11   : > { %219 = vrot.lane.b32.xlu0 %v1565_v1, %s1956_s18  ;;  %v1589_v3 = vld [vmem:[%s1991_s17 + $0x98] sm:$0xf]  ;;  %v1588_v6 = vld [vmem:[%s1991_s17 + $0x94] sm:$0x1]  ;;  %v1566_v7 = vld [vmem:[%s1991_s17 + $0x60] sm:$0xf] }
  0x12   : > { %v492_v8 = vshrl.u32 %v1589_v3, 16  ;;  %v495_v9 = vshll.u32 %v1589_v3, 16  ;;  %v478_v10 = vshrl.u32 %v1587_v5, 16  ;;  %v481_v11 = vshll.u32 %v1587_v5, 16  ;;  %v1568_v12 = vld [vmem:[%s1991_s17 + $0x70] sm:$0xf] }
  0x13   : > { %v487_v14 = vshll.u32 %v1588_v6, 16  ;;  %v1590_v18 = vld [vmem:[%s1991_s17 + $0x9c] sm:$0x1]  ;;  %v1564_v22 = vld [vmem:[%s1991_s17 + $0x50] sm:$0xf] }
  0x14   : > { %v480_v13 = vrot.slane %v478_v10, 4  ;;  %v483_v15 = vrot.slane %v481_v11, 5  ;;  %v494_v16 = vrot.slane %v492_v8, 4  ;;  %v497_v17 = vrot.slane %v495_v9, 5  ;;  %v1563_v23 = vld [vmem:[%s1991_s17 + $0x48] sm:$0xf] }
  0x15   : > { %v489_v20 = vrot.slane %v487_v14, 5  ;;  %v501_v25 = vshll.u32 %v1590_v18, 16  ;;  %v1591_v27 = vld [vmem:[%s1991_s17 + $0xa0] sm:$0xf]  ;;  %v1593_v33 = vld [vmem:[%s1991_s17 + $0xa8] sm:$0xf] }
  0x16   : > { %v484_v19 = vor.u32 %v483_v15, %v480_v13  ;;  %v498_v24 = vor.u32 %v497_v17, %v494_v16  ;;  %v506_v29 = vshrl.u32 %v1591_v27, 16  ;;  %v509_v30 = vshll.u32 %v1591_v27, 16  ;;  %v1592_v36 = vld [vmem:[%s1991_s17 + $0xa4] sm:$0x1]  ;;  %v1611_v37 = vld [vmem:[%s1991_s17 + $0x50] sm:$0xf] }
  0x17   : > { %v503_v32 = vrot.slane %v501_v25, 5  ;;  %v520_v39 = vshrl.u32 %v1593_v33, 16  ;;  %v523_v40 = vshll.u32 %v1593_v33, 16  ;;  %v1612_v41 = vld [vmem:[%s1991_s17 + $0x58] sm:$0xf]  ;;  %v515_v43 = vshll.u32 %v1592_v36, 16 }
  0x18   : > { %229 = vrot.lane.b32.xlu1 %v1570_v4, %s1956_s18  ;;  %225 = vrot.lane.b32.xlu2 %v1568_v12, %s1956_s18  ;;  %v485_v21 = vrot.slane %v484_v19, 4  ;;  %v499_v31 = vrot.slane %v498_v24, 4  ;;  %v508_v34 = vrot.slane %v506_v29, 4  ;;  %v511_v35 = vrot.slane %v509_v30, 5  ;;  %v1594_v46 = vld [vmem:[%s1991_s17 + $0xac] sm:$0x1] }
  0x19   : > { %221 = vrot.lane.b32.xlu0 %v1566_v7, %s1956_s18  ;;  %v522_v44 = vrot.slane %v520_v39, 4  ;;  %v525_v45 = vrot.slane %v523_v40, 5  ;;  %v517_v48 = vrot.slane %v515_v43, 5  ;;  %v1572_v49 = vld [vmem:[%s1991_s17 + $0x98] sm:$0xf]  ;;  %v529_v52 = vshll.u32 %v1594_v46, 16 }
  0x1a   : > { %v490_v28 = vsel %vm2011_vm2, %v485_v21, %v489_v20  ;;  %v504_v38 = vsel %vm2011_vm2, %v499_v31, %v503_v32  ;;  %v512_v42 = vor.u32 %v511_v35, %v508_v34  ;;  %v1571_v50 = vld [vmem:[%s1991_s17 + $0x90] sm:$0xf]  ;;  %v1597_v59 = vld [vmem:[%s1991_s17 + $0xb8] sm:$0xf]  ;;  %v1596_v62 = vld [vmem:[%s1991_s17 + $0xb4] sm:$0x1] }
  0x1b   : > { %v526_v51 = vor.u32 %v525_v45, %v522_v44  ;;  %v1595_v53 = vld [vmem:[%s1991_s17 + $0xb0] sm:$0xf]  ;;  %v531_v58 = vrot.slane %v529_v52, 5  ;;  %v1613_v63 = vld [vmem:[%s1991_s17 + $0x60] sm:$0xf]  ;;  %v548_v1 = vshrl.u32 %v1597_v59, 16 }
  0x1c   : > { %v513_v47 = vrot.slane %v512_v42, 4  ;;  %v534_v55 = vshrl.u32 %v1595_v53, 16  ;;  %v537_v56 = vshll.u32 %v1595_v53, 16  ;;  %v551_v2 = vshll.u32 %v1597_v59, 16  ;;  %v1614_v3 = vld [vmem:[%s1991_s17 + $0x68] sm:$0xf] }
  0x1d   : > { %v527_v57 = vrot.slane %v526_v51, 4  ;;  %v543_v5 = vshll.u32 %v1596_v62, 16  ;;  %v550_v6 = vrot.slane %v548_v1, 4  ;;  %v1598_v8 = vld [vmem:[%s1991_s17 + $0xbc] sm:$0x1]  ;;  %v1891_v32 = vld [vmem:[%s2410_s1 + $0x28] sm:$0xff] }
  0x1e   : > { %v518_v54 = vsel %vm2011_vm2, %v513_v47, %v517_v48  ;;  %v536_v60 = vrot.slane %v534_v55, 4  ;;  %v539_v61 = vrot.slane %v537_v56, 5  ;;  %v553_v7 = vrot.slane %v551_v2, 5  ;;  %v1599_v11 = vld [vmem:[%s1991_s17 + $0xc0] sm:$0xf]  ;;  %v1893_v19 = vld [vmem:[%s2410_s1 + $0x38] sm:$0xff] }
  0x1f   : > { %v532_v0 = vsel %vm2011_vm2, %v527_v57, %v531_v58  ;;  %v545_v10 = vrot.slane %v543_v5, 5  ;;  %v1574_v12 = vld [vmem:[%s1991_s17 + $0xa8] sm:$0xf]  ;;  %v1573_v13 = vld [vmem:[%s1991_s17 + $0xa0] sm:$0xf]  ;;  %v557_v15 = vshll.u32 %v1598_v8, 16  ;;  %1923 = vmatpush.bf16.msra.mxu2 %v1893_v19  ;;  %1922 = vmatpush.bf16.msra.mxu1 %v1893_v19 }
  0x20   : > { %217 = vrot.lane.b32.xlu1 %v1564_v22, %s1956_s18  ;;  %589 = vrot.lane.b32.xlu2 %v490_v28, %s1956_s18  ;;  %v540_v4 = vor.u32 %v539_v61, %v536_v60  ;;  %v554_v14 = vor.u32 %v553_v7, %v550_v6  ;;  %v562_v17 = vshrl.u32 %v1599_v11, 16  ;;  %v565_v18 = vshll.u32 %v1599_v11, 16  ;;  %v1601_v22 = vld [vmem:[%s1991_s17 + $0xc8] sm:$0xf]  ;;  %v1600_v27 = vld [vmem:[%s1991_s17 + $0xc4] sm:$0x1] }
  0x21   : > { %215 = vrot.lane.b32.xlu0 %v1563_v23, %s1956_s18  ;;  %v559_v21 = vrot.slane %v557_v15, 5  ;;  %v1892_v23 = vld [vmem:[%s2410_s1 + $0x30] sm:$0xff]  ;;  %1256 = vmatpush.bf16.msra.mxu0 %v1893_v19  ;;  %v576_v30 = vshrl.u32 %v1601_v22, 16  ;;  %v579_v31 = vshll.u32 %v1601_v22, 16  ;;  %v1616_v33 = vld [vmem:[%s1991_s17 + $0x78] sm:$0xf] }
  0x22   : > { %v541_v9 = vrot.slane %v540_v4, 4  ;;  %v555_v20 = vrot.slane %v554_v14, 4  ;;  %v564_v24 = vrot.slane %v562_v17, 4  ;;  %v567_v25 = vrot.slane %v565_v18, 5  ;;  %v1615_v28 = vld [vmem:[%s1991_s17 + $0x70] sm:$0xf] }
  0x23   : > { %1925 = vmatpush.bf16.msra.mxu2 %v1892_v23  ;;  %v571_v35 = vshll.u32 %v1600_v27, 16  ;;  %1924 = vmatpush.bf16.msra.mxu1 %v1892_v23  ;;  %v578_v36 = vrot.slane %v576_v30, 4  ;;  %v1890_v39 = vld [vmem:[%s2410_s1 + $0x20] sm:$0xff]  ;;  %v1576_v42 = vld [vmem:[%s1991_s17 + $0xb8] sm:$0xf]  ;;  %v1887_v53 = vld [vmem:[%s2410_s1 + $0x8] sm:$0xff] }
  0x24   : > { %v546_v16 = vsel %vm2011_vm2, %v541_v9, %v545_v10  ;;  %v560_v29 = vsel %vm2011_vm2, %v555_v20, %v559_v21  ;;  %v568_v34 = vor.u32 %v567_v25, %v564_v24  ;;  %v1575_v43 = vld [vmem:[%s1991_s17 + $0xb0] sm:$0xf]  ;;  %v1889_v46 = vld [vmem:[%s2410_s1 + $0x18] sm:$0xff]  ;;  %v1617_v51 = vld [vmem:[%s1991_s17 + $0x80] sm:$0xf] }
  0x25   : > { %1257 = vmatpush.bf16.msra.mxu0 %v1892_v23  ;;  %v1578_v55 = vld [vmem:[%s1991_s17 + $0xc8] sm:$0xf]  ;;  %v1577_v56 = vld [vmem:[%s1991_s17 + $0xc0] sm:$0xf]  ;;  %v183_v57 = vld [vmem:[%s1991_s17 + $0x10] sm:$0xf] }
  0x26   : > { %v569_v40 = vrot.slane %v568_v34, 4  ;;  %v187_v58 = vld [vmem:[%s1991_s17 + $0x30] sm:$0xf]  ;;  %192 = vst.msk [vmem:[#allocation2 + $0x28] sm:$0xf] %vm189_vm3, %v183_v57  ;;  %v1886_v60 = vld [vmem:[%s2410_s1] sm:$0xff] }
  0x27   : > { %1927 = vmatpush.bf16.msra.mxu2 %v1891_v32  ;;  %1926 = vmatpush.bf16.msra.mxu1 %v1891_v32  ;;  %196 = vst.msk [vmem:[#allocation2 + $0x78] sm:$0xf] %vm189_vm3, %v187_v58  ;;  %v185_v59 = vld [vmem:[%s1991_s17 + $0x20] sm:$0xf]  ;;  %v1909_v61 = vld [vmem:[%s2410_s1 + $0xb8] sm:$0xff]  ;;  %v1907_v5 = vld [vmem:[%s2410_s1 + $0xa8] sm:$0xff] }
  0x28   : > { %655 = vrot.lane.b32.xlu1 %v1611_v37, %s1956_s18  ;;  %657 = vrot.lane.b32.xlu2 %v1612_v41, %s1956_s18  ;;  %v581_v37 = vrot.slane %v579_v31, 5  ;;  %v573_v41 = vrot.slane %v571_v35, 5  ;;  %194 = vst.msk [vmem:[#allocation2 + $0x50] sm:$0xf] %vm189_vm3, %v185_v59  ;;  %v1917_v62 = vld [vmem:[%s2410_s1 + $0xf8] sm:$0xff]  ;;  %v1915_v6 = vld [vmem:[%s2410_s1 + $0xe8] sm:$0xff] }
  0x29   : > { %591 = vrot.lane.b32.xlu0 %v504_v38, %s1956_s18  ;;  %v1602_v38 = vld [vmem:[%s1991_s17 + $0xcc] sm:$0x1]  ;;  %1258 = vmatpush.bf16.msra.mxu0 %v1891_v32  ;;  %v188_v1 = vld [vmem:[%s1991_s17 + $0x38] sm:$0xf]  ;;  %v186_v2 = vld [vmem:[%s1991_s17 + $0x28] sm:$0xf] }
  0x2a   : > { %v582_v44 = vor.u32 %v581_v37, %v578_v36  ;;  %v585_v45 = vshll.u32 %v1602_v38, 16  ;;  %v574_v47 = vsel %vm2011_vm2, %v569_v40, %v573_v41  ;;  %1343 = vmatpush.bf16.msra.mxu3 %v1917_v62  ;;  %197 = vst.msk [vmem:[#allocation2 + $0x8c] sm:$0xf] %vm189_vm3, %v188_v1  ;;  %v1579_v7 = vld [vmem:[%s1991_s17 + $0xd8] sm:$0xf]  ;;  %v1914_v8 = vld [vmem:[%s2410_s1 + $0xe0] sm:$0xff] }
  0x2b   : > { %1929 = vmatpush.bf16.msra.mxu2 %v1890_v39  ;;  %1928 = vmatpush.bf16.msra.mxu1 %v1890_v39  ;;  %195 = vst.msk [vmem:[#allocation2 + $0x64] sm:$0xf] %vm189_vm3, %v186_v2  ;;  %v1906_v9 = vld [vmem:[%s2410_s1 + $0xa0] sm:$0xff]  ;;  %v182_v10 = vld [vmem:[%s1991_s17 + $0x8] sm:$0xf]  ;;  %v1905_v14 = vld [vmem:[%s2410_s1 + $0x98] sm:$0xff] }
  0x2c   : > { %v583_v48 = vrot.slane %v582_v44, 4  ;;  %453 = vst.msk [vmem:[#allocation2 + $0x8] sm:$0xf] %vm189_vm3, %v1579_v7  ;;  %v181_v11 = vld [vmem:[%s1991_s17] sm:$0xf]  ;;  %v1913_v15 = vld [vmem:[%s2410_s1 + $0xd8] sm:$0xff] }
  0x2d   : > { %1259 = vmatpush.bf16.msra.mxu0 %v1890_v39  ;;  %191 = vst.msk [vmem:[#allocation2 + $0x14] sm:$0xf] %vm189_vm3, %v182_v10  ;;  %v1904_v17 = vld [vmem:[%s2410_s1 + $0x90] sm:$0xff]  ;;  %v1603_v19 = vld [vmem:[%s1991_s17 + $0x8] sm:$0xf]  ;;  %v1898_v27 = vld [vmem:[%s2410_s1 + $0x60] sm:$0xff] }
  0x2e   : > { %190 = vst.msk [vmem:[#allocation2] sm:$0xf] %vm189_vm3, %v181_v11  ;;  %v1604_v18 = vld [vmem:[%s1991_s17 + $0x10] sm:$0xf]  ;;  %v1580_v21 = vld [vmem:[%s1991_s17 + $0xe0] sm:$0xf] }
  0x2f   : > { %1931 = vmatpush.bf16.msra.mxu2 %v1889_v46  ;;  %1930 = vmatpush.bf16.msra.mxu1 %v1889_v46  ;;  %v1912_v20 = vld [vmem:[%s2410_s1 + $0xd0] sm:$0xff]  ;;  %631 = vst.msk [vmem:[#allocation2 + $0x20] sm:$0xf] %vm189_vm3, %v1604_v18  ;;  %v1899_v23 = vld [vmem:[%s2410_s1 + $0x68] sm:$0xff]  ;;  %v1910_v32 = vld [vmem:[%s2410_s1 + $0xc0] sm:$0xff] }
  0x30   : > { %414 = vrot.lane.b32.xlu1 %v1572_v49, %s1956_s18  ;;  %593 = vrot.lane.b32.xlu2 %v518_v54, %s1956_s18  ;;  %v587_v49 = vrot.slane %v585_v45, 5  ;;  %v1618_v54 = vld [vmem:[%s1991_s17 + $0x88] sm:$0xf]  ;;  %630 = vst.msk [vmem:[#allocation2 + $0xc] sm:$0xf] %vm189_vm3, %v1603_v19  ;;  %v1921_v44 = vld [vmem:[%s2410_s1 + $0x118] sm:$0xff] }
  0x31   : > { %412 = vrot.lane.b32.xlu0 %v1571_v50, %s1956_s18  ;;  %v1888_v50 = vld [vmem:[%s2410_s1 + $0x10] sm:$0xff]  ;;  %1260 = vmatpush.bf16.msra.mxu0 %v1889_v46  ;;  %454 = vst.msk [vmem:[#allocation2 + $0x1c] sm:$0xf] %vm189_vm3, %v1580_v21  ;;  %v1903_v24 = vld [vmem:[%s2410_s1 + $0x88] sm:$0xff]  ;;  %v248_v36 = vld [vmem:[%s1991_s17] sm:$0xf] }
  0x32   : > { %v588_v52 = vsel %vm2011_vm2, %v583_v48, %v587_v49  ;;  %v1911_v25 = vld [vmem:[%s2410_s1 + $0xc8] sm:$0xff]  ;;  %v268_v41 = vshrl.u32 %v248_v36, 16  ;;  %v1621_v57 = vld [vmem:[%s1991_s17 + $0x10] sm:$0xf]  ;;  %v1894_v19 = vld [vmem:[%s2410_s1 + $0x40] sm:$0xff] }
  0x33   : > { %1933 = vmatpush.bf16.msra.mxu2 %v1888_v50  ;;  %1932 = vmatpush.bf16.msra.mxu1 %v1888_v50  ;;  %v250_v30 = vld [vmem:[%s1991_s17 + $0x8] sm:$0xf]  ;;  %v251_v31 = vld [vmem:[%s1991_s17 + $0xc] sm:$0x1]  ;;  %v1582_v10 = vld [vmem:[%s1991_s17 + $0xf0] sm:$0xf] }
  0x34   : > { %v285_v34 = vshll.u32 %v250_v30, 16  ;;  %v291_v35 = vshll.u32 %v251_v31, 16  ;;  %v1619_v45 = vld [vmem:[%s1991_s17 + $0x8] sm:$0xf]  ;;  %v270_v49 = vrot.slane %v268_v41, 4 }
  0x35   : > { %1261 = vmatpush.bf16.msra.mxu0 %v1888_v50  ;;  %v1919_v11 = vld [vmem:[%s2410_s1 + $0x108] sm:$0xff]  ;;  %456 = vst.msk [vmem:[#allocation2 + $0x44] sm:$0xf] %vm189_vm3, %v1582_v10 }
  0x36   : > { %v287_v40 = vrot.slane %v285_v34, 5  ;;  %v293_v48 = vrot.slane %v291_v35, 5 }
  0x37   : > { %1935 = vmatpush.bf16.msra.mxu2 %v1887_v53  ;;  %1934 = vmatpush.bf16.msra.mxu1 %v1887_v53 }
  0x38   : > { %659 = vrot.lane.b32.xlu1 %v1613_v63, %s1956_s18  ;;  %661 = vrot.lane.b32.xlu2 %v1614_v3, %s1956_s18  ;;  %v1916_v63 = vld [vmem:[%s2410_s1 + $0xf0] sm:$0xff]  ;;  %v184_v3 = vld [vmem:[%s1991_s17 + $0x18] sm:$0xf] }
  0x39   : > { %595 = vrot.lane.b32.xlu0 %v532_v0, %s1956_s18  ;;  %1262 = vmatpush.bf16.msra.mxu0 %v1887_v53  ;;  %v1908_v0 = vld [vmem:[%s2410_s1 + $0xb0] sm:$0xff]  ;;  %193 = vst.msk [vmem:[#allocation2 + $0x3c] sm:$0xf] %vm189_vm3, %v184_v3  ;;  %v1620_v53 = vld [vmem:[%s1991_s17 + $0xc] sm:$0x1] }
  0x3a   : > { %1344 = vmatpush.bf16.msra.mxu3 %v1916_v63  ;;  %v704_v63 = vshrl.u32 %v1619_v45, 16  ;;  %v713_v1 = vshll.u32 %v1620_v53, 16  ;;  %v1622_v3 = vld [vmem:[%s1991_s17 + $0x14] sm:$0x1] }
  0x3b   : > { %1937 = vmatpush.bf16.msra.mxu2 %v1886_v60  ;;  %1936 = vmatpush.bf16.msra.mxu1 %v1886_v60  ;;  %v727_v18 = vshll.u32 %v1622_v3, 16 }
  0x3c   : > { %v706_v7 = vrot.slane %v704_v63, 4 }
  0x3d   : > { %1263 = vmatpush.bf16.msra.mxu0 %v1886_v60  ;;  %v1896_v60 = vld [vmem:[%s2410_s1 + $0x50] sm:$0xff]  ;;  %v729_v31 = vrot.slane %v727_v18, 5 }
  0x3e   : > { %1345 = vmatpush.bf16.msra.mxu3 %v1915_v6 }
  0x3f   : > { %1314 = vmatpush.bf16.msrb.mxu2 %v1909_v61  ;;  %v1605_v61 = vld [vmem:[%s1991_s17 + $0x18] sm:$0xf] }
  0x40   : > { %418 = vrot.lane.b32.xlu1 %v1574_v12, %s1956_s18  ;;  %597 = vrot.lane.b32.xlu2 %v546_v16, %s1956_s18  ;;  %v1900_v16 = vld [vmem:[%s2410_s1 + $0x70] sm:$0xff]  ;;  %632 = vst.msk [vmem:[#allocation2 + $0x34] sm:$0xf] %vm189_vm3, %v1605_v61 }
  0x41   : > { %416 = vrot.lane.b32.xlu0 %v1573_v13, %s1956_s18  ;;  %v1901_v13 = vld [vmem:[%s2410_s1 + $0x78] sm:$0xff]  ;;  %1376 = vmatpush.bf16.msrb.mxu0 %v1921_v44 }
  0x42   : > { %1346 = vmatpush.bf16.msra.mxu3 %v1914_v8  ;;  %1285 = vmatpush.bf16.msrb.mxu1 %v1901_v13 }
  0x43   : > { %1315 = vmatpush.bf16.msrb.mxu2 %v1908_v0  ;;  %v707_v0 = vshll.u32 %v1619_v45, 16 }
  0x45   : > { %v709_v8 = vrot.slane %v707_v0, 5 }
  0x46   : > { %1347 = vmatpush.bf16.msra.mxu3 %v1913_v15  ;;  %1286 = vmatpush.bf16.msrb.mxu1 %v1900_v16  ;;  %v1918_v15 = vld [vmem:[%s2410_s1 + $0x100] sm:$0xff] }
  0x47   : > { %1316 = vmatpush.bf16.msrb.mxu2 %v1907_v5  ;;  %v710_v16 = vor.u32 %v709_v8, %v706_v7 }
  0x48   : > { %663 = vrot.lane.b32.xlu1 %v1615_v28, %s1956_s18  ;;  %665 = vrot.lane.b32.xlu2 %v1616_v33, %s1956_s18  ;;  %v1902_v28 = vld [vmem:[%s2410_s1 + $0x80] sm:$0xff]  ;;  %v282_v33 = vshrl.u32 %v250_v30, 16 }
  0x49   : > { %599 = vrot.lane.b32.xlu0 %v560_v29, %s1956_s18  ;;  %v1581_v29 = vld [vmem:[%s1991_s17 + $0xe8] sm:$0xf] }
  0x4a   : > { %1348 = vmatpush.bf16.msra.mxu3 %v1912_v20  ;;  %1287 = vmatpush.bf16.msrb.mxu1 %v1899_v23  ;;  %455 = vst.msk [vmem:[#allocation2 + $0x30] sm:$0xf] %vm189_vm3, %v1581_v29  ;;  %v284_v39 = vrot.slane %v282_v33, 4  ;;  %v1583_v20 = vld [vmem:[%s1991_s17 + $0xf8] sm:$0xf]  ;;  %v711_v29 = vrot.slane %v710_v16, 4 }
  0x4b   : > { %1317 = vmatpush.bf16.msrb.mxu2 %v1906_v9  ;;  %v254_v23 = vld [vmem:[%s1991_s17 + $0x18] sm:$0xf]  ;;  %457 = vst.msk [vmem:[#allocation2 + $0x58] sm:$0xf] %vm189_vm3, %v1583_v20  ;;  %v258_v16 = vld [vmem:[%s1991_s17 + $0x28] sm:$0xf] }
  0x4e   : > { %1349 = vmatpush.bf16.msra.mxu3 %v1911_v25  ;;  %1288 = vmatpush.bf16.msrb.mxu1 %v1898_v27  ;;  %v310_v25 = vshrl.u32 %v254_v23, 16  ;;  %v313_v27 = vshll.u32 %v254_v23, 16 }
  0x4f   : > { %1318 = vmatpush.bf16.msrb.mxu2 %v1905_v14  ;;  %v1895_v14 = vld [vmem:[%s2410_s1 + $0x48] sm:$0xff] }
  0x50   : > { %422 = vrot.lane.b32.xlu1 %v1576_v42, %s1956_s18  ;;  %601 = vrot.lane.b32.xlu2 %v574_v47, %s1956_s18  ;;  %v249_v42 = vld [vmem:[%s1991_s17 + $0x4] sm:$0x1]  ;;  %v288_v47 = vor.u32 %v287_v40, %v284_v39  ;;  %v312_v34 = vrot.slane %v310_v25, 4  ;;  %v315_v35 = vrot.slane %v313_v27, 5 }
  0x51   : > { %420 = vrot.lane.b32.xlu0 %v1575_v43, %s1956_s18  ;;  %v271_v43 = vshll.u32 %v248_v36, 16  ;;  %v277_v50 = vshll.u32 %v249_v42, 16 }
  0x52   : > { %1350 = vmatpush.bf16.msra.mxu3 %v1910_v32  ;;  %v1623_v32 = vld [vmem:[%s1991_s17 + $0x18] sm:$0xf] }
  0x53   : > { %1319 = vmatpush.bf16.msrb.mxu2 %v1904_v17  ;;  %v279_v59 = vrot.slane %v277_v50, 5  ;;  %v715_v17 = vrot.slane %v713_v1, 5  ;;  %v735_v63 = vshll.u32 %v1623_v32, 16  ;;  %v1624_v1 = vld [vmem:[%s1991_s17 + $0x1c] sm:$0x1] }
  0x54   : > { %v741_v10 = vshll.u32 %v1624_v1, 16 }
  0x56   : > { %v743_v27 = vrot.slane %v741_v10, 5 }
  0x57   : > { %1320 = vmatpush.bf16.msrb.mxu2 %v1903_v24  ;;  %v255_v24 = vld [vmem:[%s1991_s17 + $0x1c] sm:$0x1] }
  0x58   : > { %667 = vrot.lane.b32.xlu1 %v1617_v51, %s1956_s18  ;;  %669 = vrot.lane.b32.xlu2 %v1618_v54, %s1956_s18  ;;  %v273_v51 = vrot.slane %v271_v43, 5  ;;  %v289_v54 = vrot.slane %v288_v47, 4  ;;  %v316_v47 = vor.u32 %v315_v35, %v312_v34  ;;  %v256_v34 = vld [vmem:[%s1991_s17 + $0x20] sm:$0xf] }
  0x59   : > { %603 = vrot.lane.b32.xlu0 %v588_v52, %s1956_s18  ;;  %v1897_v52 = vld [vmem:[%s2410_s1 + $0x58] sm:$0xff] }
  0x5a   : > { %v274_v58 = vor.u32 %v273_v51, %v270_v49  ;;  %1289 = vmatpush.bf16.msrb.mxu1 %v1897_v52  ;;  %v294_v62 = vsel %vm2011_vm2, %v289_v54, %v293_v48  ;;  %v253_v48 = vld [vmem:[%s1991_s17 + $0x14] sm:$0x1]  ;;  %v317_v54 = vrot.slane %v316_v47, 4  ;;  %v257_v47 = vld [vmem:[%s1991_s17 + $0x24] sm:$0x1] }
  0x5b   : > { %1321 = vmatpush.bf16.msrb.mxu2 %v1902_v28  ;;  %388 = vst.msk [vmem:[#allocation2 + $0x18] sm:$0xf] %vm189_vm3, %v294_v62  ;;  %v319_v28 = vshll.u32 %v255_v24, 16  ;;  %v305_v53 = vshll.u32 %v253_v48, 16  ;;  %v1607_v62 = vld [vmem:[%s1991_s17 + $0x28] sm:$0xf] }
  0x5c   : > { %v275_v2 = vrot.slane %v274_v58, 4  ;;  %v1608_v58 = vld [vmem:[%s1991_s17 + $0x30] sm:$0xf]  ;;  %634 = vst.msk [vmem:[#allocation2 + $0x5c] sm:$0xf] %vm189_vm3, %v1607_v62 }
  0x5d   : > { %v321_v36 = vrot.slane %v319_v28, 5  ;;  %635 = vst.msk [vmem:[#allocation2 + $0x70] sm:$0xf] %vm189_vm3, %v1608_v58  ;;  %v1610_v62 = vld [vmem:[%s1991_s17 + $0x40] sm:$0xf] }
  0x5e   : > { %v280_v9 = vsel %vm2011_vm2, %v275_v2, %v279_v59  ;;  %1290 = vmatpush.bf16.msrb.mxu1 %v1896_v60  ;;  %v307_v60 = vrot.slane %v305_v53, 5  ;;  %637 = vst.msk [vmem:[#allocation2 + $0x98] sm:$0xf] %vm189_vm3, %v1610_v62 }
  0x5f   : > { %387 = vst.msk [vmem:[#allocation2 + $0x4] sm:$0xf] %vm189_vm3, %v280_v9  ;;  %v322_v59 = vsel %vm2011_vm2, %v317_v54, %v321_v36  ;;  %v737_v9 = vrot.slane %v735_v63, 5  ;;  %v1609_v63 = vld [vmem:[%s1991_s17 + $0x38] sm:$0xf] }
  0x60   : > { %426 = vrot.lane.b32.xlu1 %v1578_v55, %s1956_s18  ;;  %v1920_v55 = vld [vmem:[%s2410_s1 + $0x110] sm:$0xff]  ;;  %390 = vst.msk [vmem:[#allocation2 + $0x40] sm:$0xf] %vm189_vm3, %v322_v59  ;;  %v1627_v59 = vld [vmem:[%s1991_s17 + $0x28] sm:$0xf] }
  0x61   : > { %424 = vrot.lane.b32.xlu0 %v1577_v56, %s1956_s18  ;;  %v1606_v56 = vld [vmem:[%s1991_s17 + $0x20] sm:$0xf]  ;;  %1377 = vmatpush.bf16.msrb.mxu0 %v1920_v55  ;;  %636 = vst.msk [vmem:[#allocation2 + $0x84] sm:$0xf] %vm189_vm3, %v1609_v63  ;;  %v1632_v63 = vld [vmem:[%s1991_s17 + $0x3c] sm:$0x1] }
  0x62   : > { %633 = vst.msk [vmem:[#allocation2 + $0x48] sm:$0xf] %vm189_vm3, %v1606_v56  ;;  %1291 = vmatpush.bf16.msrb.mxu1 %v1895_v14  ;;  %v732_v56 = vshrl.u32 %v1623_v32, 16  ;;  %v1585_v14 = vld [vmem:[%s1991_s17 + $0x108] sm:$0xf] }
  0x63   : > { %459 = vst.msk [vmem:[#allocation2 + $0x80] sm:$0xf] %vm189_vm3, %v1585_v14 }
  0x64   : > { %v734_v2 = vrot.slane %v732_v56, 4  ;;  %v333_v56 = vshll.u32 %v257_v47, 16 }
  0x65   : > { %1378 = vmatpush.bf16.msrb.mxu0 %v1919_v11 }
  0x66   : > { %1292 = vmatpush.bf16.msrb.mxu1 %v1894_v19  ;;  %v738_v18 = vor.u32 %v737_v9, %v734_v2  ;;  %v1628_v2 = vld [vmem:[%s1991_s17 + $0x2c] sm:$0x1] }
  0x68   : > { %v739_v25 = vrot.slane %v738_v18, 4 }
  0x69   : > { %1379 = vmatpush.bf16.msrb.mxu0 %v1918_v15  ;;  %v1626_v15 = vld [vmem:[%s1991_s17 + $0x24] sm:$0x1] }
  0x6a   : > { %v224_v4 = vpop.permute.xlu2 %223  ;;  %v755_v36 = vshll.u32 %v1626_v15, 16  ;;  %v744_v48 = vsel %vm2011_vm2, %v739_v25, %v743_v27 }
  0x6b   : > { %244 = vst.msk [vmem:[#allocation2 + $0x50] sm:$0xf] %vm239_vm4, %v224_v4  ;;  %v718_v4 = vshrl.u32 %v1621_v57, 16 }
  0x6c   : > { %v757_v58 = vrot.slane %v755_v36, 5  ;;  %825 = vst.msk [vmem:[#allocation2 + $0x38] sm:$0xf] %vm189_vm3, %v744_v48 }
  0x6d   : > { %v720_v21 = vrot.slane %v718_v4, 4 }
  0x72   : > { %v226_v12 = vpop.permute.xlu2 %225  ;;  %v1677_v19 = vld [vmem:[#allocation2 + $0x50] sm:$0xf] }
  0x73   : > { %245 = vst.msk [vmem:[#allocation2 + $0x64] sm:$0xf] %vm239_vm4, %v226_v12  ;;  %v721_v12 = vshll.u32 %v1621_v57, 16 }
  0x75   : > { %v723_v30 = vrot.slane %v721_v12, 5 }
  0x77   : > { %v724_v44 = vor.u32 %v723_v30, %v720_v21  ;;  %v338_v21 = vshrl.u32 %v258_v16, 16 }
  0x79   : > { %v725_v55 = vrot.slane %v724_v44, 4 }
  0x7a   : > { %v590_v22 = vpop.permute.xlu2 %589  ;;  %v1878_v20 = vld [vmem:[#allocation2 + $0x60] sm:$0xf0] }
  0x7b   : > { %613 = vst.msk [vmem:[#allocation2 + $0x8] sm:$0xf] %vm239_vm4, %v590_v22  ;;  %v730_v61 = vsel %vm2011_vm2, %v725_v55, %v729_v31  ;;  %v340_v31 = vrot.slane %v338_v21, 4  ;;  %v1678_v44 = vor.u32 %v1878_v20, %v1677_v19 }
  0x7c   : > { %824 = vst.msk [vmem:[#allocation2 + $0x24] sm:$0xf] %vm189_vm3, %v730_v61 }
  0x82   : > { %v228_v37 = vpop.permute.xlu1 %227  ;;  %v658_v46 = vpop.permute.xlu2 %657  ;;  %v1645_v24 = vld [vmem:[#allocation2 + $0x8] sm:$0xf] }
  0x83   : > { %v220_v38 = vpop.permute.xlu0 %219  ;;  %246 = vst.msk [vmem:[#allocation2 + $0x78] sm:$0xf] %vm239_vm4, %v228_v37  ;;  %v252_v37 = vld [vmem:[%s1991_s17 + $0x10] sm:$0xf]  ;;  %v1870_v55 = vld [vmem:[#allocation2 + $0x20] sm:$0xf0] }
  0x84   : > { %242 = vst.msk [vmem:[#allocation2 + $0x28] sm:$0xf] %vm239_vm4, %v220_v38  ;;  %v716_v38 = vsel %vm2011_vm2, %v711_v29, %v715_v17  ;;  %v296_v42 = vshrl.u32 %v252_v37, 16  ;;  %v299_v43 = vshll.u32 %v252_v37, 16  ;;  %v259_v17 = vld [vmem:[%s1991_s17 + $0x2c] sm:$0x1] }
  0x85   : > { %680 = vst.msk [vmem:[#allocation2 + $0x20] sm:$0xf] %vm239_vm4, %v658_v46  ;;  %v347_v23 = vshll.u32 %v259_v17, 16  ;;  %v1586_v17 = vld [vmem:[%s1991_s17 + $0x110] sm:$0xf] }
  0x86   : > { %823 = vst.msk [vmem:[#allocation2 + $0x10] sm:$0xf] %vm189_vm3, %v716_v38  ;;  %v298_v51 = vrot.slane %v296_v42, 4  ;;  %v301_v52 = vrot.slane %v299_v43, 5  ;;  %v327_v42 = vshll.u32 %v256_v34, 16 }
  0x87   : > { %460 = vst.msk [vmem:[#allocation2 + $0x94] sm:$0xf] %vm189_vm3, %v1586_v17 }
  0x88   : > { %v302_v57 = vor.u32 %v301_v52, %v298_v51  ;;  %v329_v53 = vrot.slane %v327_v42, 5 }
  0x8a   : > { %v230_v5 = vpop.permute.xlu1 %229  ;;  %v594_v13 = vpop.permute.xlu2 %593  ;;  %v1697_v22 = vld [vmem:[#allocation2 + $0x78] sm:$0xf]  ;;  %v303_v0 = vrot.slane %v302_v57, 4 }
  0x8b   : > { %v222_v6 = vpop.permute.xlu0 %221  ;;  %247 = vst.msk [vmem:[#allocation2 + $0x8c] sm:$0xf] %vm239_vm4, %v230_v5  ;;  %v1657_v33 = vld [vmem:[#allocation2 + $0x28] sm:$0xf] }
  0x8c   : > { %243 = vst.msk [vmem:[#allocation2 + $0x3c] sm:$0xf] %vm239_vm4, %v222_v6  ;;  %v1625_v6 = vld [vmem:[%s1991_s17 + $0x20] sm:$0xf]  ;;  %v308_v8 = vsel %vm2011_vm2, %v303_v0, %v307_v60  ;;  %v335_v0 = vrot.slane %v333_v56, 5 }
  0x8d   : > { %615 = vst.msk [vmem:[#allocation2 + $0x30] sm:$0xf] %vm239_vm4, %v594_v13  ;;  %v1584_v13 = vld [vmem:[%s1991_s17 + $0x100] sm:$0xf]  ;;  %v746_v28 = vshrl.u32 %v1625_v6, 16  ;;  %v749_v29 = vshll.u32 %v1625_v6, 16 }
  0x8e   : > { %389 = vst.msk [vmem:[#allocation2 + $0x2c] sm:$0xf] %vm189_vm3, %v308_v8  ;;  %v1647_v30 = vld [vmem:[#allocation2 + $0x1c] sm:$0xf0]  ;;  %v1653_v54 = vld [vmem:[#allocation2 + $0x10] sm:$0xf] }
  0x8f   : > { %458 = vst.msk [vmem:[#allocation2 + $0x6c] sm:$0xf] %vm189_vm3, %v1584_v13  ;;  %v748_v35 = vrot.slane %v746_v28, 4  ;;  %v751_v43 = vrot.slane %v749_v29, 5  ;;  %v1629_v6 = vld [vmem:[%s1991_s17 + $0x30] sm:$0xf] }
  0x90   : > { %v769_v8 = vshll.u32 %v1628_v2, 16  ;;  %v774_v18 = vshrl.u32 %v1629_v6, 16  ;;  %v777_v21 = vshll.u32 %v1629_v6, 16  ;;  %v261_v56 = vld [vmem:[%s1991_s17 + $0x34] sm:$0x1] }
  0x91   : > { %v752_v57 = vor.u32 %v751_v43, %v748_v35  ;;  %v260_v35 = vld [vmem:[%s1991_s17 + $0x30] sm:$0xf]  ;;  %v1631_v43 = vld [vmem:[%s1991_s17 + $0x38] sm:$0xf]  ;;  %v361_v62 = vshll.u32 %v261_v56, 16 }
  0x92   : > { %v218_v39 = vpop.permute.xlu1 %217  ;;  %v1883_v41 = vld [vmem:[#allocation2 + $0x88] sm:$0xf0]  ;;  %v662_v50 = vpop.permute.xlu2 %661  ;;  %v771_v20 = vrot.slane %v769_v8, 5  ;;  %v779_v28 = vrot.slane %v777_v21, 5  ;;  %v352_v47 = vshrl.u32 %v260_v35, 16 }
  0x93   : > { %v216_v40 = vpop.permute.xlu0 %215  ;;  %241 = vst.msk [vmem:[#allocation2 + $0x14] sm:$0xf] %vm239_vm4, %v218_v39  ;;  %v1873_v45 = vld [vmem:[#allocation2 + $0x38] sm:$0xf0]  ;;  %v1698_v46 = vor.u32 %v1883_v41, %v1697_v22  ;;  %v341_v22 = vshll.u32 %v258_v16, 16  ;;  %v324_v41 = vshrl.u32 %v256_v34, 16 }
  0x94   : > { %240 = vst.msk [vmem:[#allocation2] sm:$0xf] %vm239_vm4, %v216_v40  ;;  %v1658_v49 = vor.u32 %v1873_v45, %v1657_v33  ;;  %v349_v33 = vrot.slane %v347_v23, 5  ;;  %v753_v1 = vrot.slane %v752_v57, 4  ;;  %v1665_v29 = vld [vmem:[#allocation2 + $0x30] sm:$0xf] }
  0x95   : > { %1279 = vmatmul.bf16.vlgmr.msra.gmra.mxu2 %v1698_v46  ;;  %682 = vst.msk [vmem:[#allocation2 + $0x48] sm:$0xf] %vm239_vm4, %v662_v50  ;;  %v343_v32 = vrot.slane %v341_v22, 5  ;;  %v326_v52 = vrot.slane %v324_v41, 4  ;;  %v262_v34 = vld [vmem:[%s1991_s17 + $0x38] sm:$0xf] }
  0x96   : > { %1269 = vmatmul.bf16.vlgmr.msra.gmra.mxu1 %v1658_v49  ;;  %v366_v41 = vshrl.u32 %v262_v34, 16  ;;  %v369_v42 = vshll.u32 %v262_v34, 16 }
  0x97   : > { %v344_v40 = vor.u32 %v343_v32, %v340_v31  ;;  %v330_v61 = vor.u32 %v329_v53, %v326_v52  ;;  %v1633_v53 = vld [vmem:[%s1991_s17 + $0x40] sm:$0xf] }
  0x98   : > { %v371_v52 = vrot.slane %v369_v42, 5  ;;  %v802_v8 = vshrl.u32 %v1633_v53, 16 }
  0x99   : > { %v345_v51 = vrot.slane %v344_v40, 4  ;;  %v1673_v40 = vld [vmem:[#allocation2 + $0x38] sm:$0xf] }
  0x9a   : > { %v656_v3 = vpop.permute.xlu1 %655  ;;  %v1868_v5 = vld [vmem:[#allocation2 + $0x10] sm:$0xf0]  ;;  %v598_v12 = vpop.permute.xlu2 %597 }
  0x9b   : > { %v592_v4 = vpop.permute.xlu0 %591  ;;  %679 = vst.msk [vmem:[#allocation2 + $0xc] sm:$0xf] %vm239_vm4, %v656_v3  ;;  %v1637_v7 = vld [vmem:[#allocation2] sm:$0xf]  ;;  %v350_v60 = vsel %vm2011_vm2, %v345_v51, %v349_v33  ;;  %v331_v3 = vrot.slane %v330_v61, 4  ;;  %v368_v51 = vrot.slane %v366_v41, 4 }
  0x9c   : > { %614 = vst.msk [vmem:[#allocation2 + $0x1c] sm:$0xf] %vm239_vm4, %v592_v4  ;;  %v1638_v11 = vor.u32 %v1868_v5, %v1637_v7  ;;  %v760_v4 = vshrl.u32 %v1627_v59, 16  ;;  %v758_v5 = vsel %vm2011_vm2, %v753_v1, %v757_v58  ;;  %v763_v7 = vshll.u32 %v1627_v59, 16 }
  0x9d   : > { %617 = vst.msk [vmem:[#allocation2 + $0x58] sm:$0xf] %vm239_vm4, %v598_v12  ;;  %v1630_v12 = vld [vmem:[%s1991_s17 + $0x34] sm:$0x1]  ;;  %v336_v13 = vsel %vm2011_vm2, %v331_v3, %v335_v0  ;;  %v372_v57 = vor.u32 %v371_v52, %v368_v51  ;;  %v354_v59 = vrot.slane %v352_v47, 4  ;;  %v788_v0 = vshrl.u32 %v1631_v43, 16 }
  0x9e   : > { %1264 = vmatmul.bf16.vlgmr.msra.gmra.mxu0 %v1638_v11  ;;  %392 = vst.msk [vmem:[#allocation2 + $0x68] sm:$0xf] %vm189_vm3, %v350_v60  ;;  %v1654_v11 = vor.u32 %v1870_v55, %v1653_v54  ;;  %v762_v14 = vrot.slane %v760_v4, 4  ;;  %v765_v15 = vrot.slane %v763_v7, 5  ;;  %v783_v22 = vshll.u32 %v1630_v12, 16 }
  0x9f   : > { %826 = vst.msk [vmem:[#allocation2 + $0x4c] sm:$0xf] %vm189_vm3, %v758_v5  ;;  %v263_v55 = vld [vmem:[%s1991_s17 + $0x3c] sm:$0x1]  ;;  %v355_v60 = vshll.u32 %v260_v35, 16  ;;  %v373_v1 = vrot.slane %v372_v57, 4 }
  0xa0   : > { %v766_v19 = vor.u32 %v765_v15, %v762_v14  ;;  %391 = vst.msk [vmem:[#allocation2 + $0x54] sm:$0xf] %vm189_vm3, %v336_v13  ;;  %v785_v33 = vrot.slane %v783_v22, 5  ;;  %v375_v58 = vshll.u32 %v263_v55, 16  ;;  %v791_v4 = vshll.u32 %v1631_v43, 16 }
  0xa1   : > { %v357_v3 = vrot.slane %v355_v60, 5  ;;  %v363_v5 = vrot.slane %v361_v62, 5  ;;  %v790_v6 = vrot.slane %v788_v0, 4  ;;  %v797_v7 = vshll.u32 %v1632_v63, 16  ;;  %v1634_v13 = vld [vmem:[%s1991_s17 + $0x44] sm:$0x1] }
  0xa2   : > { %v415_v37 = vpop.permute.xlu1 %414  ;;  %v1867_v39 = vld [vmem:[#allocation2 + $0xc] sm:$0xf]  ;;  %v666_v50 = vpop.permute.xlu2 %665  ;;  %v767_v27 = vrot.slane %v766_v19, 4  ;;  %v377_v2 = vrot.slane %v375_v58, 5  ;;  %v793_v14 = vrot.slane %v791_v4, 5  ;;  %v805_v15 = vshll.u32 %v1633_v53, 16 }
  0xa3   : > { %v413_v38 = vpop.permute.xlu0 %412  ;;  %437 = vst.msk [vmem:[#allocation2 + $0x18] sm:$0xf] %vm239_vm4, %v415_v37  ;;  %v1869_v45 = vld [vmem:[#allocation2 + $0x18] sm:$0xf0]  ;;  %v1650_v46 = vor.u32 %v1867_v39, %v1647_v30  ;;  %v1667_v30 = vld [vmem:[#allocation2 + $0x44] sm:$0xf0]  ;;  %v358_v12 = vor.u32 %v357_v3, %v354_v59 }
  0xa4   : > { %436 = vst.msk [vmem:[#allocation2 + $0x4] sm:$0xf] %vm239_vm4, %v413_v38  ;;  %v1646_v49 = vor.u32 %v1869_v45, %v1645_v24  ;;  %v776_v24 = vrot.slane %v774_v18, 4  ;;  %v772_v31 = vsel %vm2011_vm2, %v767_v27, %v771_v20  ;;  %v794_v18 = vor.u32 %v793_v14, %v790_v6  ;;  %s1865_s17 = sshll.u32 %s2416_s13, 5 }
  0xa5   : > { %1351 = vmatmul.bf16.vlgmr.msra.gmra.mxu3 %v1650_v46  ;;  %684 = vst.msk [vmem:[#allocation2 + $0x70] sm:$0xf] %vm239_vm4, %v666_v50  ;;  %v359_v17 = vrot.slane %v358_v12, 4  ;;  %v799_v19 = vrot.slane %v797_v7, 5  ;;  %v807_v20 = vrot.slane %v805_v15, 5  ;;  %v811_v21 = vshll.u32 %v1634_v13, 16  ;;  %s2365_s24 = scalar_lea.vmem %s2411_s2, %s1865_s17 }
  0xa6   : > { %1274 = vmatmul.bf16.gmra.mxu1 %v1678_v44  ;;  %1322 = vmatmul.bf16.vlgmr.msrb.gmra.mxu2 %v1646_v49  ;;  %v780_v32 = vor.u32 %v779_v28, %v776_v24  ;;  %827 = vst.msk [vmem:[#allocation2 + $0x60] sm:$0xf] %vm189_vm3, %v772_v31  ;;  %v1875_v49 = vld [vmem:[#allocation2 + $0x48] sm:$0xf0]  ;;  %v795_v24 = vrot.slane %v794_v18, 4 }
  0xa7   : > { %v1674_v61 = vor.u32 %v1875_v49, %v1673_v40  ;;  %v813_v28 = vrot.slane %v811_v21, 5 }
  0xa8   : > { %v781_v46 = vrot.slane %v780_v32, 4  ;;  %v1685_v32 = vld [vmem:[#allocation2 + $0x58] sm:$0xf] }
  0xaa   : > { %v660_v9 = vpop.permute.xlu1 %659  ;;  %v602_v16 = vpop.permute.xlu2 %601  ;;  %v1639_v23 = vld [vmem:[#allocation2 + $0x14] sm:$0xf0]  ;;  %v786_v54 = vsel %vm2011_vm2, %v781_v46, %v785_v33 }
  0xab   : > { %v596_v10 = vpop.permute.xlu0 %595  ;;  %681 = vst.msk [vmem:[#allocation2 + $0x34] sm:$0xf] %vm239_vm4, %v660_v9  ;;  %v1866_v25 = vld [vmem:[#allocation2 + $0x4] sm:$0xf] }
  0xac   : > { %616 = vst.msk [vmem:[#allocation2 + $0x44] sm:$0xf] %vm239_vm4, %v596_v10  ;;  %v1642_v38 = vor.u32 %v1866_v25, %v1639_v23  ;;  %v364_v23 = vsel %vm2011_vm2, %v359_v17, %v363_v5 }
  0xad   : > { %619 = vst.msk [vmem:[#allocation2 + $0x80] sm:$0xf] %vm239_vm4, %v602_v16  ;;  %v804_v16 = vrot.slane %v802_v8, 4  ;;  %v1693_v41 = vld [vmem:[#allocation2 + $0x60] sm:$0xf] }
  0xae   : > { %1859 = vmatmul.msk.bf16.vlgmr.msrb.gmra.mxu0 %vm1243_vm5, %v1654_v11  ;;  %828 = vst.msk [vmem:[#allocation2 + $0x74] sm:$0xf] %vm189_vm3, %v786_v54  ;;  %v378_v11 = vsel %vm2011_vm2, %v373_v1, %v377_v2 }
  0xaf   : > { %394 = vst.msk [vmem:[#allocation2 + $0x90] sm:$0xf] %vm189_vm3, %v378_v11  ;;  %v808_v25 = vor.u32 %v807_v20, %v804_v16 }
  0xb0   : > { %393 = vst.msk [vmem:[#allocation2 + $0x7c] sm:$0xf] %vm189_vm3, %v364_v23 }
  0xb1   : > { %v809_v31 = vrot.slane %v808_v25, 4 }
  0xb2   : > { %v419_v36 = vpop.permute.xlu1 %418  ;;  %v1872_v39 = vld [vmem:[#allocation2 + $0x34] sm:$0xf]  ;;  %v670_v50 = vpop.permute.xlu2 %669 }
  0xb3   : > { %v417_v37 = vpop.permute.xlu0 %416  ;;  %439 = vst.msk [vmem:[#allocation2 + $0x40] sm:$0xf] %vm239_vm4, %v419_v36  ;;  %v1874_v44 = vld [vmem:[#allocation2 + $0x40] sm:$0xf0]  ;;  %v1670_v45 = vor.u32 %v1872_v39, %v1667_v30  ;;  %v800_v30 = vsel %vm2011_vm2, %v795_v24, %v799_v19 }
  0xb4   : > { %438 = vst.msk [vmem:[#allocation2 + $0x2c] sm:$0xf] %vm239_vm4, %v417_v37  ;;  %v1666_v48 = vor.u32 %v1874_v44, %v1665_v29  ;;  %v1687_v29 = vld [vmem:[#allocation2 + $0x6c] sm:$0xf0]  ;;  %v814_v37 = vsel %vm2011_vm2, %v809_v31, %v813_v28 }
  0xb5   : > { %1356 = vmatmul.bf16.gmra.mxu3 %v1670_v45  ;;  %686 = vst.msk [vmem:[#allocation2 + $0x98] sm:$0xf] %vm239_vm4, %v670_v50  ;;  %v1880_v42 = vld [vmem:[#allocation2 + $0x70] sm:$0xf0] }
  0xb6   : > { %1293 = vmatmul.bf16.vlgmr.msrb.gmra.mxu1 %v1642_v38  ;;  %1327 = vmatmul.bf16.gmra.mxu2 %v1666_v48  ;;  %829 = vst.msk [vmem:[#allocation2 + $0x88] sm:$0xf] %vm189_vm3, %v800_v30  ;;  %v1694_v45 = vor.u32 %v1880_v42, %v1693_v41  ;;  %v1705_v48 = vld [vmem:[#allocation2 + $0x80] sm:$0xf] }
  0xb7   : > { %830 = vst.msk [vmem:[#allocation2 + $0x9c] sm:$0xf] %vm189_vm3, %v814_v37 }
  0xba   : > { %v664_v9 = vpop.permute.xlu1 %663  ;;  %v1659_v22 = vld [vmem:[#allocation2 + $0x3c] sm:$0xf0] }
  0xbb   : > { %v600_v10 = vpop.permute.xlu0 %599  ;;  %683 = vst.msk [vmem:[#allocation2 + $0x5c] sm:$0xf] %vm239_vm4, %v664_v9  ;;  %v1871_v27 = vld [vmem:[#allocation2 + $0x2c] sm:$0xf] }
  0xbc   : > { %618 = vst.msk [vmem:[#allocation2 + $0x6c] sm:$0xf] %vm239_vm4, %v600_v10  ;;  %v1662_v35 = vor.u32 %v1871_v27, %v1659_v22  ;;  %v1707_v47 = vld [vmem:[#allocation2 + $0x94] sm:$0xf0] }
  0xbd   : > { %v1713_v56 = vld [vmem:[#allocation2 + $0x88] sm:$0xf] }
  0xbe   : > { %1860 = vmatmul.msk.bf16.gmra.mxu0 %vm1243_vm5, %v1674_v61  ;;  %v1885_v57 = vld [vmem:[#allocation2 + $0x98] sm:$0xf0] }
  0xbf   : > { %v1714_v58 = vor.u32 %v1885_v57, %v1713_v56 }
  0xc2   : > { %v423_v33 = vpop.permute.xlu1 %422  ;;  %v1877_v36 = vld [vmem:[#allocation2 + $0x5c] sm:$0xf] }
  0xc3   : > { %v421_v34 = vpop.permute.xlu0 %420  ;;  %441 = vst.msk [vmem:[#allocation2 + $0x68] sm:$0xf] %vm239_vm4, %v423_v33  ;;  %v1879_v38 = vld [vmem:[#allocation2 + $0x68] sm:$0xf0]  ;;  %v1690_v39 = vor.u32 %v1877_v36, %v1687_v29 }
  0xc4   : > { %440 = vst.msk [vmem:[#allocation2 + $0x54] sm:$0xf] %vm239_vm4, %v421_v34  ;;  %v1686_v40 = vor.u32 %v1879_v38, %v1685_v32 }
  0xc5   : > { %1361 = vmatmul.bf16.gmra.mxu3 %v1690_v39 }
  0xc6   : > { %1298 = vmatmul.bf16.gmra.mxu1 %v1662_v35  ;;  %1332 = vmatmul.bf16.gmra.mxu2 %v1686_v40 }
  0xca   : > { %v668_v43 = vpop.permute.xlu1 %667  ;;  %v1679_v46 = vld [vmem:[#allocation2 + $0x64] sm:$0xf0] }
  0xcb   : > { %v604_v44 = vpop.permute.xlu0 %603  ;;  %685 = vst.msk [vmem:[#allocation2 + $0x84] sm:$0xf] %vm239_vm4, %v668_v43  ;;  %v1876_v26 = vld [vmem:[#allocation2 + $0x54] sm:$0xf] }
  0xcc   : > { %620 = vst.msk [vmem:[#allocation2 + $0x94] sm:$0xf] %vm239_vm4, %v604_v44  ;;  %v1682_v49 = vor.u32 %v1876_v26, %v1679_v46 }
  0xce   : > { %1861 = vmatmul.msk.bf16.gmra.mxu0 %vm1243_vm5, %v1694_v45 }
  0xd2   : > { %v1882_v50 = vld [vmem:[#allocation2 + $0x84] sm:$0xf]  ;;  %v427_v51 = vpop.permute.xlu1 %426 }
  0xd3   : > { %v425_v52 = vpop.permute.xlu0 %424  ;;  %v1884_v53 = vld [vmem:[#allocation2 + $0x90] sm:$0xf0]  ;;  %v1710_v54 = vor.u32 %v1882_v50, %v1707_v47  ;;  %443 = vst.msk [vmem:[#allocation2 + $0x90] sm:$0xf] %vm239_vm4, %v427_v51 }
  0xd4   : > { %v1706_v55 = vor.u32 %v1884_v53, %v1705_v48  ;;  %442 = vst.msk [vmem:[#allocation2 + $0x7c] sm:$0xf] %vm239_vm4, %v425_v52 }
  0xd5   : > { %1366 = vmatmul.bf16.gmra.mxu3 %v1710_v54 }
  0xd6   : > { %1303 = vmatmul.bf16.gmra.mxu1 %v1682_v49  ;;  %1337 = vmatmul.bf16.gmra.mxu2 %v1706_v55 }
  0xda   : > { %v1699_v60 = vld [vmem:[#allocation2 + $0x8c] sm:$0xf0] }
  0xdb   : > { %v1881_v59 = vld [vmem:[#allocation2 + $0x7c] sm:$0xf] }
  0xdc   : > { %v1702_v61 = vor.u32 %v1881_v59, %v1699_v60 }
  0xde   : > { %1862 = vmatmul.msk.bf16.gmra.mxu0 %vm1243_vm5, %v1714_v58 }
  0xe6   : > { %1308 = vmatmul.bf16.gmra.mxu1 %v1702_v61 }
 0x113   : > { %v1270_v62 = vpop.f32.mrf.mxu1 }
 0x118   : > { %v2357_v63 = vpop.f32.mrf.mxu2 }
 0x11b   : > { %v1265_v0 = vpop.f32.mrf.mxu0  ;;  %v1272_v1 = vpop.f32.mrf.mxu1 }
 0x120   : > { %v2359_v2 = vpop.f32.mrf.mxu2 }
 0x123   : > { %v1267_v3 = vpop.f32.mrf.mxu0  ;;  %v1275_v4 = vpop.f32.mrf.mxu1 }
 0x128   : > { %v1352_v6 = vpop.f32.mrf.mxu3 }
 0x129   : > { %v1323_v5 = vpop.f32.mrf.mxu2 }
 0x12b   : > { %v1277_v7 = vpop.f32.mrf.mxu1  ;;  %v1381_v8 = vpop.f32.mrf.mxu0 }
 0x130   : > { %v1354_v10 = vpop.f32.mrf.mxu3 }
 0x131   : > { %v1325_v9 = vpop.f32.mrf.mxu2 }
 0x133   : > { %v1294_v11 = vpop.f32.mrf.mxu1  ;;  %v1383_v13 = vpop.f32.mrf.mxu0 }
 0x134   : > { %v1295_v12 = vadd.f32 %v1294_v11, %v1265_v0 }
 0x136   : > { %v1324_v14 = vadd.f32 %v1323_v5, %v1295_v12 }
 0x138   : > { %v1353_v15 = vadd.f32 %v1352_v6, %v1324_v14  ;;  %v1357_v21 = vpop.f32.mrf.mxu3 }
 0x139   : > { %v1328_v17 = vpop.f32.mrf.mxu2 }
 0x13a   : > { %v1382_v16 = vadd.f32 %v1381_v8, %v1353_v15 }
 0x13b   : > { %v1296_v18 = vpop.f32.mrf.mxu1  ;;  %v1386_v23 = vpop.f32.mrf.mxu0 }
 0x13c   : > { %v1401_v19 = vpack.c.bf16 %v1382_v16, %v1382_v16  ;;  %v1297_v20 = vadd.f32 %v1296_v18, %v1267_v3 }
 0x13e   : > { %1409 = vst.msk [vmem:[%s2365_s24] sm:$0xf] %vm189_vm3, %v1401_v19  ;;  %v1326_v22 = vadd.f32 %v1325_v9, %v1297_v20  ;;  %v1417_v9 = vsel %vm1243_vm5, %v1382_v16, 0.0 }
 0x140   : > { %v1355_v24 = vadd.f32 %v1354_v10, %v1326_v22  ;;  %v1359_v32 = vpop.f32.mrf.mxu3 }
 0x141   : > { %v1330_v30 = vpop.f32.mrf.mxu2 }
 0x142   : > { %v1384_v25 = vadd.f32 %v1383_v13, %v1355_v24 }
 0x143   : > { %v1299_v27 = vpop.f32.mrf.mxu1  ;;  %v1388_v34 = vpop.f32.mrf.mxu0 }
 0x144   : > { %v1402_v28 = vpack.c.bf16 %v1384_v25, %v1384_v25  ;;  %v1300_v29 = vadd.f32 %v1299_v27, %v1270_v62  ;;  %v1441_v61 = vmul.f32 %v1384_v25, %v1384_v25 }
 0x146   : > { %1410 = vst.msk [vmem:[%s2365_s24 + $0x4] sm:$0xf] %vm189_vm3, %v1402_v28  ;;  %v1329_v31 = vadd.f32 %v1328_v17, %v1300_v29  ;;  %v1449_v10 = vsel %vm1243_vm5, %v1441_v61, 0.0 }
 0x148   : > { %v1358_v33 = vadd.f32 %v1357_v21, %v1329_v31  ;;  %v1362_v42 = vpop.f32.mrf.mxu3 }
 0x149   : > { %v1333_v40 = vpop.f32.mrf.mxu2 }
 0x14a   : > { %v1387_v35 = vadd.f32 %v1386_v23, %v1358_v33 }
 0x14b   : > { %v1301_v36 = vpop.f32.mrf.mxu1  ;;  %v1391_v44 = vpop.f32.mrf.mxu0 }
 0x14c   : > { %v1403_v37 = vpack.c.bf16 %v1387_v35, %v1387_v35  ;;  %v1302_v38 = vadd.f32 %v1301_v36, %v1272_v1  ;;  %v1440_v1 = vmul.f32 %v1382_v16, %v1382_v16  ;;  %v1442_v5 = vmul.f32 %v1387_v35, %v1387_v35 }
 0x14d   : > { %v1420_v11 = vsel %vm1243_vm5, %v1387_v35, 0.0 }
 0x14e   : > { %1411 = vst.msk [vmem:[%s2365_s24 + $0x8] sm:$0xf] %vm189_vm3, %v1403_v37  ;;  %v1331_v39 = vadd.f32 %v1330_v30, %v1302_v38  ;;  %v1448_v13 = vsel %vm1243_vm5, %v1440_v1, 0.0  ;;  %v1451_v14 = vsel %vm1243_vm5, %v1442_v5, 0.0 }
 0x14f   : > { %v1450_v19 = vadd.f32 %v1449_v10, %v1448_v13 }
 0x150   : > { %v1360_v41 = vadd.f32 %v1359_v32, %v1331_v39  ;;  %v1364_v51 = vpop.f32.mrf.mxu3 }
 0x151   : > { %v1335_v49 = vpop.f32.mrf.mxu2  ;;  %v1452_v27 = vadd.f32 %v1451_v14, %v1450_v19 }
 0x152   : > { %v1389_v43 = vadd.f32 %v1388_v34, %v1360_v41 }
 0x153   : > { %v1304_v45 = vpop.f32.mrf.mxu1  ;;  %v1393_v55 = vpop.f32.mrf.mxu0 }
 0x154   : > { %v1404_v26 = vpack.c.bf16 %v1389_v43, %v1389_v43  ;;  %v1305_v46 = vadd.f32 %v1304_v45, %v1275_v4  ;;  %v1418_v4 = vsel %vm1243_vm5, %v1384_v25, 0.0  ;;  %v1422_v15 = vsel %vm1243_vm5, %v1389_v43, 0.0 }
 0x156   : > { %1412 = vst.msk [vmem:[%s2365_s24 + $0xc] sm:$0xf] %vm189_vm3, %v1404_v26  ;;  %v1334_v47 = vadd.f32 %v1333_v40, %v1305_v46 }
 0x158   : > { %v1363_v48 = vadd.f32 %v1362_v42, %v1334_v47  ;;  %v1367_v3 = vpop.f32.mrf.mxu3 }
 0x159   : > { %v1338_v59 = vpop.f32.mrf.mxu2 }
 0x15a   : > { %v1392_v50 = vadd.f32 %v1391_v44, %v1363_v48 }
 0x15b   : > { %v1306_v52 = vpop.f32.mrf.mxu1  ;;  %v1396_v8 = vpop.f32.mrf.mxu0 }
 0x15c   : > { %v1405_v53 = vpack.c.bf16 %v1392_v50, %v1392_v50  ;;  %v1307_v54 = vadd.f32 %v1306_v52, %v1277_v7  ;;  %v1443_v7 = vmul.f32 %v1389_v43, %v1389_v43  ;;  %v1444_v17 = vmul.f32 %v1392_v50, %v1392_v50 }
 0x15d   : > { %v1424_v22 = vsel %vm1243_vm5, %v1392_v50, 0.0 }
 0x15e   : > { %1413 = vst.msk [vmem:[%s2365_s24 + $0x10] sm:$0xf] %vm189_vm3, %v1405_v53  ;;  %v1336_v56 = vadd.f32 %v1335_v49, %v1307_v54  ;;  %v1453_v21 = vsel %vm1243_vm5, %v1443_v7, 0.0  ;;  %v1455_v30 = vsel %vm1243_vm5, %v1444_v17, 0.0 }
 0x15f   : > { %v1454_v34 = vadd.f32 %v1453_v21, %v1452_v27 }
 0x160   : > { %v1365_v57 = vadd.f32 %v1364_v51, %v1336_v56  ;;  %v1369_v36 = vpop.f32.mrf.mxu3 }
 0x161   : > { %v1340_v29 = vpop.f32.mrf.mxu2  ;;  %v1456_v39 = vadd.f32 %v1455_v30, %v1454_v34 }
 0x162   : > { %v1394_v58 = vadd.f32 %v1393_v55, %v1365_v57 }
 0x163   : > { %v1309_v60 = vpop.f32.mrf.mxu1  ;;  %v1398_v41 = vpop.f32.mrf.mxu0 }
 0x164   : > { %v1406_v62 = vpack.c.bf16 %v1394_v58, %v1394_v58  ;;  %v1310_v0 = vadd.f32 %v1309_v60, %v2357_v63  ;;  %v1419_v63 = vadd.f32 %v1418_v4, %v1417_v9  ;;  %v1445_v23 = vmul.f32 %v1394_v58, %v1394_v58 }
 0x165   : > { %v1426_v31 = vsel %vm1243_vm5, %v1394_v58, 0.0 }
 0x166   : > { %1414 = vst.msk [vmem:[%s2365_s24 + $0x14] sm:$0xf] %vm189_vm3, %v1406_v62  ;;  %v1339_v6 = vadd.f32 %v1338_v59, %v1310_v0  ;;  %v1421_v20 = vadd.f32 %v1420_v11, %v1419_v63  ;;  %v1457_v37 = vsel %vm1243_vm5, %v1445_v23, 0.0 }
 0x167   : > { %v1458_v45 = vadd.f32 %v1457_v37, %v1456_v39 }
 0x168   : > { %v1368_v12 = vadd.f32 %v1367_v3, %v1339_v6  ;;  %v1423_v28 = vadd.f32 %v1422_v15, %v1421_v20 }
 0x16a   : > { %v1397_v18 = vadd.f32 %v1396_v8, %v1368_v12  ;;  %v1425_v35 = vadd.f32 %v1424_v22, %v1423_v28 }
 0x16b   : > { %v1311_v16 = vpop.f32.mrf.mxu1 }
 0x16c   : > { %v1407_v24 = vpack.c.bf16 %v1397_v18, %v1397_v18  ;;  %v1312_v25 = vadd.f32 %v1311_v16, %v2359_v2  ;;  %v1446_v32 = vmul.f32 %v1397_v18, %v1397_v18  ;;  %v1428_v38 = vsel %vm1243_vm5, %v1397_v18, 0.0 }
 0x16d   : > { %v1427_v40 = vadd.f32 %v1426_v31, %v1425_v35 }
 0x16e   : > { %1415 = vst.msk [vmem:[%s2365_s24 + $0x18] sm:$0xf] %vm189_vm3, %v1407_v24  ;;  %v1341_v33 = vadd.f32 %v1340_v29, %v1312_v25  ;;  %v1459_v43 = vsel %vm1243_vm5, %v1446_v32, 0.0 }
 0x16f   : > { %v1429_v44 = vadd.f32 %v1428_v38, %v1427_v40  ;;  %v1460_v49 = vadd.f32 %v1459_v43, %v1458_v45 }
 0x170   : > { %v1370_v2 = vadd.f32 %v1369_v36, %v1341_v33 }
 0x172   : > { %v1399_v42 = vadd.f32 %v1398_v41, %v1370_v2 }
 0x174   : > { %v1408_v26 = vpack.c.bf16 %v1399_v42, %v1399_v42  ;;  %v1430_v46 = vsel %vm1243_vm5, %v1399_v42, 0.0  ;;  %v1447_v47 = vmul.f32 %v1399_v42, %v1399_v42 }
 0x175   : > { %v1431_v48 = vadd.f32 %v1430_v46, %v1429_v44 }
 0x176   : > { %1416 = vst.msk [vmem:[%s2365_s24 + $0x1c] sm:$0xf] %vm189_vm3, %v1408_v26  ;;  %v1461_v50 = vsel %vm1243_vm5, %v1447_v47, 0.0 }
 0x177   : > { %v1432_v51 = vrot.slane %v1431_v48, 4  ;;  %v1462_v52 = vadd.f32 %v1461_v50, %v1460_v49 }
 0x179   : > { %v1433_v53 = vadd.f32 %v1432_v51, %v1431_v48  ;;  %v1463_v54 = vrot.slane %v1462_v52, 4 }
 0x17b   : > { %v1464_v55 = vadd.f32 %v1463_v54, %v1462_v52  ;;  %v1434_v56 = vrot.slane %v1433_v53, 2 }
 0x17d   : > { %v1465_v57 = vrot.slane %v1464_v55, 2  ;;  %v1435_v58 = vadd.f32 %v1434_v56, %v1433_v53 }
 0x17f   : > { %v1466_v59 = vadd.f32 %v1465_v57, %v1464_v55  ;;  %v1436_v60 = vrot.slane %v1435_v58, 1 }
 0x181   : > { %v1467_v61 = vrot.slane %v1466_v59, 1  ;;  %v1437_v62 = vadd.f32 %v1436_v60, %v1435_v58 }
 0x183   : > { %v1468_v0 = vadd.f32 %v1467_v61, %v1466_v59  ;;  %1439 = vst.msk [vmem:[%s179_s27] sm:$0x1] %vm1438_vm6, %v1437_v62 }
 0x185   : > { %1470 = vrot.lane.b32.xlu2 %v1468_v0, %s1956_s18 }
 0x1df   : > { %v1471_v1 = vpop.permute.xlu2 %1470 }
 0x1e0   : > { %1474 = vst.msk [vmem:[%s179_s27] sm:$0x1] %vm1473_vm7, %v1471_v1 }
 0x1e1 PF: > { %s14_s12 = sadd.s32 1, %s1954_s12  }
 0x1e2   : > { %p11_p4 = scmp.ge.s32.totalorder %s14_s12, 4  }
 0x1e4   :  { %13 = sbr.rel (!%p11_p4) target bundleno = 1 (0x1), region = 75 }

</bundles_post_ra>
